<compile_context>
chip_gen: v6e
topology: v6e:2x2x1
jax: 0.10.0
libtpu: 0.0.40
codegen_flags: <defaults>
</compile_context>

<pallas_src>
import functools

import jax
import jax.numpy as jnp
from jax import lax
from jax.experimental import pallas as pl
from jax.experimental.pallas import tpu as pltpu


def _round_up(x, m):
    return (x + m - 1) // m * m


def _pad2(x, rows, cols):
    r, c = x.shape
    return jnp.pad(x, ((0, rows - r), (0, cols - c)))


# ----------------------------------------------------------------------------
# Fused kernel: NormLayer + L-layer LightGCL propagation + mean over layers.
#
# TODO(synk): NormLayer is not defined in the provided source; implemented as
#             scale * x / ||x||_2 (row-wise), ignoring the `adj` argument.
# ----------------------------------------------------------------------------
def _gnn_kernel(adj_ref, eu0_ref, ei0_ref, out_u_ref, out_i_ref,
                eu_st, ei_st, zu_acc, zi_acc,
                *, n_layers, norm_scale, tile_u, tile_i, adj_resident):
    l = pl.program_id(0)            # GNN layer (outermost)
    u = pl.program_id(1)            # user-row tile
    i = pl.program_id(2)            # item-row tile (innermost)
    nu = pl.num_programs(1)
    ni = pl.num_programs(2)

    u_off = pl.multiple_of(u * tile_u, tile_u)
    i_off = pl.multiple_of(i * tile_i, tile_i)

    def _norm(x):
        sq = jnp.sum(x * x, axis=1, keepdims=True)
        # rsqrt goes to the EUP slot; cheaper than sqrt + divide.
        return (norm_scale * x) * lax.rsqrt(jnp.maximum(sq, 1e-24))

    # --- layer-0 per-tile init: fused NormLayer + state + layer-sum seed ------
    @pl.when((l == 0) & (i == 0))
    def _init_user_tile():
        eu_n = _norm(eu0_ref[...])
        eu_st[pl.ds(u_off, tile_u), :] = eu_n.astype(eu_st.dtype)
        out_u_ref[pl.ds(u_off, tile_u), :] = eu_n          # layer-mean includes E[0]

    @pl.when((l == 0) & (u == 0))
    def _init_item_tile():
        ei_n = _norm(ei0_ref[...])
        ei_st[pl.ds(i_off, tile_i), :] = ei_n.astype(ei_st.dtype)
        out_i_ref[pl.ds(i_off, tile_i), :] = ei_n

    # --- partial matmuls for this adjacency tile ------------------------------
    if adj_resident:
        adj_blk = adj_ref[pl.ds(u_off, tile_u), pl.ds(i_off, tile_i)]
    else:
        adj_blk = adj_ref[...]                              # (tile_u, tile_i) bf16
    eu_blk = eu_st[pl.ds(u_off, tile_u), :]                 # (tile_u, Dp)     bf16
    ei_blk = ei_st[pl.ds(i_off, tile_i), :]                 # (tile_i, Dp)     bf16

    # Z_u[l] tile:  adj @ E_i[l-1]   (accumulate over item tiles, small scratch)
    zu_part = jnp.dot(adj_blk, ei_blk, preferred_element_type=jnp.float32)

    @pl.when(i == 0)
    def _zu_init():
        zu_acc[...] = zu_part

    @pl.when(i != 0)
    def _zu_accum():
        zu_acc[...] += zu_part

    # Z_i[l] tile:  adj.T @ E_u[l-1]  via transposed contraction (no adj.T input)
    zi_part = lax.dot_general(
        adj_blk, eu_blk,
        dimension_numbers=(((0,), (0,)), ((), ())),
        preferred_element_type=jnp.float32)

    @pl.when(u == 0)
    def _zi_init():
        zi_acc[pl.ds(i_off, tile_i), :] = zi_part

    @pl.when(u != 0)
    def _zi_accum():
        zi_acc[pl.ds(i_off, tile_i), :] += zi_part

    # Fold the 1/(L+1) mean scale into the last layer's commit (no final pass).
    inv = 1.0 / float(n_layers + 1)
    scale = jnp.where(l == n_layers - 1, inv, 1.0).astype(jnp.float32)

    # --- per-tile commits (distributed, no layer-boundary bubble) -------------
    # User tile u is complete once the last item tile has been consumed; the old
    # eu_st tile u is not read again within this layer after this step.
    @pl.when(i == ni - 1)
    def _commit_user_tile():
        zu = zu_acc[...]
        eu_st[pl.ds(u_off, tile_u), :] = zu.astype(eu_st.dtype)
        out_u_ref[pl.ds(u_off, tile_u), :] = (
            out_u_ref[pl.ds(u_off, tile_u), :] + zu) * scale

    # Item tile i is complete once the last user tile has been consumed.
    @pl.when(u == nu - 1)
    def _commit_item_tile():
        zi = zi_acc[pl.ds(i_off, tile_i), :]
        ei_st[pl.ds(i_off, tile_i), :] = zi.astype(ei_st.dtype)
        out_i_ref[pl.ds(i_off, tile_i), :] = (
            out_i_ref[pl.ds(i_off, tile_i), :] + zi) * scale


# ----------------------------------------------------------------------------
# VMEM budgeting (generation-aware, includes default double-buffering)
# ----------------------------------------------------------------------------
def _vmem_cap_bytes():
    cap = 128 * 1024 * 1024
    try:
        info = pltpu.get_tpu_info()
        cap = int(getattr(info, "vmem_capacity_bytes", cap))
    except Exception:
        pass
    # Leave headroom below physical (critical on v7x's 64 MiB); allow large
    # scoped VMEM on 128 MiB parts (v5e/v6e).
    return max(16 * 1024 * 1024, min(cap - 8 * 1024 * 1024, 110 * 1024 * 1024))


def _estimated_vmem_bytes(Up, Ip, Dp, tile_u, tile_i, adj_resident):
    dbl = 2                                                     # default double-buffering
    adj = dbl * (Up * Ip if adj_resident else tile_u * tile_i) * 2   # bf16 adjacency
    e0_in = dbl * (tile_u + tile_i) * Dp * 4                    # tiled f32 eu0/ei0
    outs = dbl * (Up + Ip) * Dp * 4                             # resident f32 outputs
    scratch = (Up + Ip) * Dp * 2 + (tile_u + Ip) * Dp * 4       # bf16 state + f32 accs
    return adj + e0_in + outs + scratch


def gnn_propagate_pallas(adj_bf16, eu0, ei0, *, gnn_layer, norm_scale,
                         tile_u, tile_i, adj_resident=None):
    Up, Ip = adj_bf16.shape
    Dp = eu0.shape[1]
    nu = Up // tile_u
    ni = Ip // tile_i

    cap = _vmem_cap_bytes()
    if adj_resident is None:
        # Keep the adjacency fully resident (fetched once, never re-streamed per
        # layer) whenever it comfortably fits the VMEM budget.
        adj_resident = (_estimated_vmem_bytes(Up, Ip, Dp, tile_u, tile_i, True)
                        <= int(0.85 * cap))
    est = _estimated_vmem_bytes(Up, Ip, Dp, tile_u, tile_i, adj_resident)
    vmem_limit = int(min(cap, max(32 * 1024 * 1024, int(1.25 * est) + (4 << 20))))

    kernel = functools.partial(
        _gnn_kernel, n_layers=int(gnn_layer), norm_scale=float(norm_scale),
        tile_u=int(tile_u), tile_i=int(tile_i), adj_resident=bool(adj_resident))

    if adj_resident:
        adj_spec = pl.BlockSpec((Up, Ip), lambda l, u, i: (0, 0))
    else:
        adj_spec = pl.BlockSpec((tile_u, tile_i), lambda l, u, i: (u, i))

    # eu0/ei0 are only needed during the layer-0 init sweep; conditional index
    # maps keep the block index constant afterwards so they are DMA'd only once.
    eu0_spec = pl.BlockSpec(
        (tile_u, Dp), lambda l, u, i: (jnp.where(l == 0, u, 0), 0))
    ei0_spec = pl.BlockSpec(
        (tile_i, Dp), lambda l, u, i: (jnp.where((l == 0) & (u == 0), i, 0), 0))

    return pl.pallas_call(
        kernel,
        out_shape=(
            jax.ShapeDtypeStruct((Up, Dp), jnp.float32),
            jax.ShapeDtypeStruct((Ip, Dp), jnp.float32),
        ),
        grid_spec=pltpu.PrefetchScalarGridSpec(
            num_scalar_prefetch=0,
            grid=(int(gnn_layer), nu, ni),
            in_specs=[adj_spec, eu0_spec, ei0_spec],
            out_specs=(
                # Resident f32 outputs double as the layer-sum accumulators.
                pl.BlockSpec((Up, Dp), lambda l, u, i: (0, 0)),
                pl.BlockSpec((Ip, Dp), lambda l, u, i: (0, 0)),
            ),
            scratch_shapes=[
                pltpu.VMEM((Up, Dp), jnp.bfloat16),   # E_u[l-1] state (bf16 MXU operand)
                pltpu.VMEM((Ip, Dp), jnp.bfloat16),   # E_i[l-1] state
                pltpu.VMEM((tile_u, Dp), jnp.float32),  # per-u-tile Z_u accumulator
                pltpu.VMEM((Ip, Dp), jnp.float32),      # Z_i accumulator (across u)
            ]),
        compiler_params=pltpu.CompilerParams(
            # state is carried across every grid axis -> all arbitrary
            dimension_semantics=("arbitrary", "arbitrary", "arbitrary"),
            vmem_limit_bytes=vmem_limit),
    )(adj_bf16, eu0, ei0)


# ----------------------------------------------------------------------------
# Wrapper reproducing Student_LightGCL.forward(..., is_test=True)
# ----------------------------------------------------------------------------
@functools.partial(jax.jit, static_argnames=("n_users", "n_items", "gnn_layer",
                                             "norm_scale", "tile_u", "tile_i",
                                             "adj_resident"))
def student_lightgcl_forward_test(adj_norm, user_weight, item_weight, *,
                                  n_users, n_items, gnn_layer, norm_scale,
                                  tile_u=256, tile_i=256, adj_resident=None):
    assert gnn_layer >= 1
    D = user_weight.shape[1]
    Dp = _round_up(max(D, 128), 128)                 # lane-dense outputs
    Up = _round_up(max(n_users, tile_u), tile_u)
    Ip = _round_up(max(n_items, tile_i), tile_i)

    # Zero-padding is exact: padded adjacency rows/cols and embedding rows/cols
    # are zero and contribute nothing to the propagation.
    adj_p = _pad2(adj_norm.astype(jnp.float32), Up, Ip).astype(jnp.bfloat16)
    eu0 = _pad2(user_weight.astype(jnp.float32), Up, Dp)
    ei0 = _pad2(item_weight.astype(jnp.float32), Ip, Dp)

    out_u, out_i = gnn_propagate_pallas(
        adj_p, eu0, ei0, gnn_layer=gnn_layer, norm_scale=norm_scale,
        tile_u=tile_u, tile_i=tile_i, adj_resident=adj_resident)
    return out_u[:n_users, :D], out_i[:n_items, :D]


# ----------------------------------------------------------------------------
# Pure-JAX reference (same bf16-operand / f32-accumulate numerics) for checking
# ----------------------------------------------------------------------------
def _reference_forward(adj_norm, user_w, item_w, n_users, n_items, gnn_layer,
                       norm_scale):
    comb = jnp.concatenate([user_w, item_w], axis=0).astype(jnp.float32)
    sq = jnp.sum(comb * comb, axis=1, keepdims=True)
    normed = norm_scale * comb * lax.rsqrt(jnp.maximum(sq, 1e-24))
    eu = normed[:n_users]
    ei = normed[n_users:n_users + n_items]
    adj_b = adj_norm.astype(jnp.bfloat16)
    acc_u, acc_i = eu, ei
    eu_b = eu.astype(jnp.bfloat16)
    ei_b = ei.astype(jnp.bfloat16)
    for _ in range(gnn_layer):
        zu = jnp.dot(adj_b, ei_b, preferred_element_type=jnp.float32)
        zi = jnp.dot(adj_b.T, eu_b, preferred_element_type=jnp.float32)
        acc_u = acc_u + zu
        acc_i = acc_i + zi
        eu_b = zu.astype(jnp.bfloat16)
        ei_b = zi.astype(jnp.bfloat16)
    return acc_u / (gnn_layer + 1), acc_i / (gnn_layer + 1)


# ----------------------------------------------------------------------------
# Deterministic parameter init (xavier_uniform, as in the module __init__)
# ----------------------------------------------------------------------------
def xavier_uniform(key, shape):
    fan_in, fan_out = shape[0], shape[1]
    bound = (6.0 / (fan_in + fan_out)) ** 0.5
    return jax.random.uniform(key, shape, jnp.float32, minval=-bound,
                              maxval=bound)


if __name__ == "__main__":
    # Small but tiling-exercising shapes: padded to 512 x 768 with 256-tiles,
    # grid (2, 2, 3) -> exercises '='/'+=' accumulation and per-tile commits.
    n_users, n_items, emb_dim, gnn_layer = 300, 600, 32, 2
    norm_scale = 1.0

    key = jax.random.PRNGKey(0)
    k_u, k_i, k_adj = jax.random.split(key, 3)

    user_weight = xavier_uniform(k_u, (n_users, emb_dim))
    item_weight = xavier_uniform(k_i, (n_items, emb_dim))

    # Dense stand-in for the (normalized) sparse bipartite adjacency.
    raw = (jax.random.uniform(k_adj, (n_users, n_items)) < 0.05).astype(jnp.float32)
    row_deg = jnp.maximum(raw.sum(axis=1, keepdims=True), 1.0)
    col_deg = jnp.maximum(raw.sum(axis=0, keepdims=True), 1.0)
    adj_norm = raw / jnp.sqrt(row_deg) / jnp.sqrt(col_deg)

    ref_u, ref_i = _reference_forward(adj_norm, user_weight, item_weight,
                                      n_users, n_items, gnn_layer, norm_scale)

    # Exercise both the streamed-adjacency path (forced) and the auto path
    # (which keeps the adjacency resident at these sizes).
    for resident in (False, None):
        user_out, item_out = student_lightgcl_forward_test(
            adj_norm, user_weight, item_weight,
            n_users=n_users, n_items=n_items,
            gnn_layer=gnn_layer, norm_scale=norm_scale,
            tile_u=256, tile_i=256, adj_resident=resident)
        jax.block_until_ready((user_out, item_out))

        assert user_out.shape == (n_users, emb_dim)
        assert item_out.shape == (n_items, emb_dim)
        assert bool(jnp.all(jnp.isfinite(user_out)))
        assert bool(jnp.all(jnp.isfinite(item_out)))
        assert bool(jnp.allclose(user_out, ref_u, atol=5e-3, rtol=5e-2))
        assert bool(jnp.allclose(item_out, ref_i, atol=5e-3, rtol=5e-2))

    print("KERNEL_OK")
</pallas_src>

<mosaic_0001>
module attributes {stable_mosaic.version = 11 : i64} {
  func.func @_gnn_kernel(%arg0: i32, %arg1: i32, %arg2: i32, %arg3: memref<256x256xbf16, #tpu.memory_space<vmem>>, %arg4: memref<256x128xf32, #tpu.memory_space<vmem>>, %arg5: memref<256x128xf32, #tpu.memory_space<vmem>>, %arg6: memref<512x128xf32, #tpu.memory_space<vmem>>, %arg7: memref<768x128xf32, #tpu.memory_space<vmem>>, %arg8: memref<512x128xbf16, #tpu.memory_space<vmem>>, %arg9: memref<768x128xbf16, #tpu.memory_space<vmem>>, %arg10: memref<256x128xf32, #tpu.memory_space<vmem>>, %arg11: memref<768x128xf32, #tpu.memory_space<vmem>>) attributes {dimension_semantics = [#tpu.dimension_semantics<arbitrary>, #tpu.dimension_semantics<arbitrary>, #tpu.dimension_semantics<arbitrary>], iteration_bounds = array<i64: 2, 2, 3>, scalar_prefetch = 0 : i64, scratch_operands = 4 : i64, tpu.core_type = #tpu.core_type<tc>, window_params = [{transform_indices = @transform_0, window_bounds = array<i64: 256, 256>}, {transform_indices = @transform_1, window_bounds = array<i64: 256, 128>}, {transform_indices = @transform_2, window_bounds = array<i64: 256, 128>}, {pipeline_mode = #tpu.pipeline_mode<synchronous>, transform_indices = @transform_3, window_bounds = array<i64: 512, 128>}, {pipeline_mode = #tpu.pipeline_mode<synchronous>, transform_indices = @transform_4, window_bounds = array<i64: 768, 128>}]} {
    %c256_i32 = arith.constant 256 : i32
    %0 = arith.muli %arg1, %c256_i32 : i32
    %1 = tpu.assume_multiple %0, 256 : i32
    %c256_i32_0 = arith.constant 256 : i32
    %2 = arith.muli %arg2, %c256_i32_0 : i32
    %3 = tpu.assume_multiple %2, 256 : i32
    %c0_i32 = arith.constant 0 : i32
    %4 = arith.cmpi eq, %arg0, %c0_i32 : i32
    %c0_i32_1 = arith.constant 0 : i32
    %5 = arith.cmpi eq, %arg2, %c0_i32_1 : i32
    %6 = arith.andi %4, %5 : i1
    %7 = arith.extui %6 : i1 to i32
    %c0_i32_2 = arith.constant 0 : i32
    %8 = arith.cmpi ne, %7, %c0_i32_2 : i32
    scf.if %8 {
      %c0_23 = arith.constant 0 : index
      %c0_24 = arith.constant 0 : index
      %41 = vector.load %arg4[%c0_23, %c0_24] : memref<256x128xf32, #tpu.memory_space<vmem>>, vector<256x128xf32>
      %42 = arith.mulf %41, %41 : vector<256x128xf32>
      %cst_25 = arith.constant dense<0.000000e+00> : vector<256xf32>
      %43 = vector.multi_reduction <add>, %42, %cst_25 [1] : vector<256x128xf32> to vector<256xf32>
      %44 = vector.shape_cast %43 : vector<256xf32> to vector<256x1xf32>
      %cst_26 = arith.constant 1.000000e+00 : f32
      %45 = vector.broadcast %cst_26 : f32 to vector<256x128xf32>
      %46 = arith.mulf %45, %41 : vector<256x128xf32>
      %cst_27 = arith.constant 1.000000e-24 : f32
      %47 = vector.broadcast %cst_27 : f32 to vector<256x1xf32>
      %48 = arith.maximumf %44, %47 : vector<256x1xf32>
      %49 = math.rsqrt %48 : vector<256x1xf32>
      %50 = vector.broadcast %49 : vector<256x1xf32> to vector<256x128xf32>
      %51 = arith.mulf %46, %50 : vector<256x128xf32>
      %52 = arith.truncf %51 : vector<256x128xf32> to vector<256x128xbf16>
      %53 = arith.index_cast %1 : i32 to index
      %c0_28 = arith.constant 0 : index
      %54 = vector.load %arg8[%53, %c0_28] : memref<512x128xbf16, #tpu.memory_space<vmem>>, vector<256x128xbf16>
      tpu.vector_store %arg8[%53, %c0_28], %52 {strides = array<i32>} : memref<512x128xbf16, #tpu.memory_space<vmem>>, vector<256x128xbf16>,
      %55 = arith.index_cast %1 : i32 to index
      %c0_29 = arith.constant 0 : index
      %56 = vector.load %arg6[%55, %c0_29] : memref<512x128xf32, #tpu.memory_space<vmem>>, vector<256x128xf32>
      tpu.vector_store %arg6[%55, %c0_29], %51 {strides = array<i32>} : memref<512x128xf32, #tpu.memory_space<vmem>>, vector<256x128xf32>,
    } else {
    }
    %c0_i32_3 = arith.constant 0 : i32
    %9 = arith.cmpi eq, %arg0, %c0_i32_3 : i32
    %c0_i32_4 = arith.constant 0 : i32
    %10 = arith.cmpi eq, %arg1, %c0_i32_4 : i32
    %11 = arith.andi %9, %10 : i1
    %12 = arith.extui %11 : i1 to i32
    %c0_i32_5 = arith.constant 0 : i32
    %13 = arith.cmpi ne, %12, %c0_i32_5 : i32
    scf.if %13 {
      %c0_23 = arith.constant 0 : index
      %c0_24 = arith.constant 0 : index
      %41 = vector.load %arg5[%c0_23, %c0_24] : memref<256x128xf32, #tpu.memory_space<vmem>>, vector<256x128xf32>
      %42 = arith.mulf %41, %41 : vector<256x128xf32>
      %cst_25 = arith.constant dense<0.000000e+00> : vector<256xf32>
      %43 = vector.multi_reduction <add>, %42, %cst_25 [1] : vector<256x128xf32> to vector<256xf32>
      %44 = vector.shape_cast %43 : vector<256xf32> to vector<256x1xf32>
      %cst_26 = arith.constant 1.000000e+00 : f32
      %45 = vector.broadcast %cst_26 : f32 to vector<256x128xf32>
      %46 = arith.mulf %45, %41 : vector<256x128xf32>
      %cst_27 = arith.constant 1.000000e-24 : f32
      %47 = vector.broadcast %cst_27 : f32 to vector<256x1xf32>
      %48 = arith.maximumf %44, %47 : vector<256x1xf32>
      %49 = math.rsqrt %48 : vector<256x1xf32>
      %50 = vector.broadcast %49 : vector<256x1xf32> to vector<256x128xf32>
      %51 = arith.mulf %46, %50 : vector<256x128xf32>
      %52 = arith.truncf %51 : vector<256x128xf32> to vector<256x128xbf16>
      %53 = arith.index_cast %3 : i32 to index
      %c0_28 = arith.constant 0 : index
      %54 = vector.load %arg9[%53, %c0_28] : memref<768x128xbf16, #tpu.memory_space<vmem>>, vector<256x128xbf16>
      tpu.vector_store %arg9[%53, %c0_28], %52 {strides = array<i32>} : memref<768x128xbf16, #tpu.memory_space<vmem>>, vector<256x128xbf16>,
      %55 = arith.index_cast %3 : i32 to index
      %c0_29 = arith.constant 0 : index
      %56 = vector.load %arg7[%55, %c0_29] : memref<768x128xf32, #tpu.memory_space<vmem>>, vector<256x128xf32>
      tpu.vector_store %arg7[%55, %c0_29], %51 {strides = array<i32>} : memref<768x128xf32, #tpu.memory_space<vmem>>, vector<256x128xf32>,
    } else {
    }
    %c0 = arith.constant 0 : index
    %c0_6 = arith.constant 0 : index
    %14 = vector.load %arg3[%c0, %c0_6] : memref<256x256xbf16, #tpu.memory_space<vmem>>, vector<256x256xbf16>
    %15 = arith.index_cast %1 : i32 to index
    %c0_7 = arith.constant 0 : index
    %16 = vector.load %arg8[%15, %c0_7] : memref<512x128xbf16, #tpu.memory_space<vmem>>, vector<256x128xbf16>
    %17 = arith.index_cast %3 : i32 to index
    %c0_8 = arith.constant 0 : index
    %18 = vector.load %arg9[%17, %c0_8] : memref<768x128xbf16, #tpu.memory_space<vmem>>, vector<256x128xbf16>
    %cst = arith.constant dense<0.000000e+00> : vector<256x128xf32>
    %19 = tpu.matmul %14, %18, %cst {dimension_numbers = #tpu.dot_dimension_numbers<[1], [0], [0], [1], [0, 0, 1, 1], [], []>} : vector<256x256xbf16>, vector<256x128xbf16>, vector<256x128xf32> -> vector<256x128xf32>
    %c0_i32_9 = arith.constant 0 : i32
    %20 = arith.cmpi eq, %arg2, %c0_i32_9 : i32
    %21 = arith.extui %20 : i1 to i32
    %c0_i32_10 = arith.constant 0 : i32
    %22 = arith.cmpi ne, %21, %c0_i32_10 : i32
    scf.if %22 {
      %c0_23 = arith.constant 0 : index
      %c0_24 = arith.constant 0 : index
      %41 = vector.load %arg10[%c0_23, %c0_24] : memref<256x128xf32, #tpu.memory_space<vmem>>, vector<256x128xf32>
      tpu.vector_store %arg10[%c0_23, %c0_24], %19 {strides = array<i32>} : memref<256x128xf32, #tpu.memory_space<vmem>>, vector<256x128xf32>,
    } else {
    }
    %c0_i32_11 = arith.constant 0 : i32
    %23 = arith.cmpi ne, %arg2, %c0_i32_11 : i32
    %24 = arith.extui %23 : i1 to i32
    %c0_i32_12 = arith.constant 0 : i32
    %25 = arith.cmpi ne, %24, %c0_i32_12 : i32
    scf.if %25 {
      %c0_23 = arith.constant 0 : index
      %c0_24 = arith.constant 0 : index
      %41 = vector.load %arg10[%c0_23, %c0_24] : memref<256x128xf32, #tpu.memory_space<vmem>>, vector<256x128xf32>
      %42 = arith.addf %41, %19 : vector<256x128xf32>
      %c0_25 = arith.constant 0 : index
      %c0_26 = arith.constant 0 : index
      %43 = vector.load %arg10[%c0_25, %c0_26] : memref<256x128xf32, #tpu.memory_space<vmem>>, vector<256x128xf32>
      tpu.vector_store %arg10[%c0_25, %c0_26], %42 {strides = array<i32>} : memref<256x128xf32, #tpu.memory_space<vmem>>, vector<256x128xf32>,
    } else {
    }
    %cst_13 = arith.constant dense<0.000000e+00> : vector<256x128xf32>
    %26 = tpu.matmul %14, %16, %cst_13 {dimension_numbers = #tpu.dot_dimension_numbers<[0], [0], [1], [1], [0, 1, 1, 1], [], []>} : vector<256x256xbf16>, vector<256x128xbf16>, vector<256x128xf32> -> vector<256x128xf32>
    %c0_i32_14 = arith.constant 0 : i32
    %27 = arith.cmpi eq, %arg1, %c0_i32_14 : i32
    %28 = arith.extui %27 : i1 to i32
    %c0_i32_15 = arith.constant 0 : i32
    %29 = arith.cmpi ne, %28, %c0_i32_15 : i32
    scf.if %29 {
      %41 = arith.index_cast %3 : i32 to index
      %c0_23 = arith.constant 0 : index
      %42 = vector.load %arg11[%41, %c0_23] : memref<768x128xf32, #tpu.memory_space<vmem>>, vector<256x128xf32>
      tpu.vector_store %arg11[%41, %c0_23], %26 {strides = array<i32>} : memref<768x128xf32, #tpu.memory_space<vmem>>, vector<256x128xf32>,
    } else {
    }
    %c0_i32_16 = arith.constant 0 : i32
    %30 = arith.cmpi ne, %arg1, %c0_i32_16 : i32
    %31 = arith.extui %30 : i1 to i32
    %c0_i32_17 = arith.constant 0 : i32
    %32 = arith.cmpi ne, %31, %c0_i32_17 : i32
    scf.if %32 {
      %41 = arith.index_cast %3 : i32 to index
      %c0_23 = arith.constant 0 : index
      %42 = vector.load %arg11[%41, %c0_23] : memref<768x128xf32, #tpu.memory_space<vmem>>, vector<256x128xf32>
      %43 = arith.addf %42, %26 : vector<256x128xf32>
      %44 = arith.index_cast %3 : i32 to index
      %c0_24 = arith.constant 0 : index
      %45 = vector.load %arg11[%44, %c0_24] : memref<768x128xf32, #tpu.memory_space<vmem>>, vector<256x128xf32>
      tpu.vector_store %arg11[%44, %c0_24], %43 {strides = array<i32>} : memref<768x128xf32, #tpu.memory_space<vmem>>, vector<256x128xf32>,
    } else {
    }
    %c1_i32 = arith.constant 1 : i32
    %33 = arith.cmpi eq, %arg0, %c1_i32 : i32
    %cst_18 = arith.constant 0.333333343 : f32
    %cst_19 = arith.constant 1.000000e+00 : f32
    %34 = arith.select %33, %cst_18, %cst_19 : f32
    %c2_i32 = arith.constant 2 : i32
    %35 = arith.cmpi eq, %arg2, %c2_i32 : i32
    %36 = arith.extui %35 : i1 to i32
    %c0_i32_20 = arith.constant 0 : i32
    %37 = arith.cmpi ne, %36, %c0_i32_20 : i32
    scf.if %37 {
      %c0_23 = arith.constant 0 : index
      %c0_24 = arith.constant 0 : index
      %41 = vector.load %arg10[%c0_23, %c0_24] : memref<256x128xf32, #tpu.memory_space<vmem>>, vector<256x128xf32>
      %42 = arith.truncf %41 : vector<256x128xf32> to vector<256x128xbf16>
      %43 = arith.index_cast %1 : i32 to index
      %c0_25 = arith.constant 0 : index
      %44 = vector.load %arg8[%43, %c0_25] : memref<512x128xbf16, #tpu.memory_space<vmem>>, vector<256x128xbf16>
      tpu.vector_store %arg8[%43, %c0_25], %42 {strides = array<i32>} : memref<512x128xbf16, #tpu.memory_space<vmem>>, vector<256x128xbf16>,
      %45 = arith.index_cast %1 : i32 to index
      %c0_26 = arith.constant 0 : index
      %46 = vector.load %arg6[%45, %c0_26] : memref<512x128xf32, #tpu.memory_space<vmem>>, vector<256x128xf32>
      %47 = arith.addf %46, %41 : vector<256x128xf32>
      %48 = vector.broadcast %34 : f32 to vector<256x128xf32>
      %49 = arith.mulf %47, %48 : vector<256x128xf32>
      %50 = arith.index_cast %1 : i32 to index
      %c0_27 = arith.constant 0 : index
      %51 = vector.load %arg6[%50, %c0_27] : memref<512x128xf32, #tpu.memory_space<vmem>>, vector<256x128xf32>
      tpu.vector_store %arg6[%50, %c0_27], %49 {strides = array<i32>} : memref<512x128xf32, #tpu.memory_space<vmem>>, vector<256x128xf32>,
    } else {
    }
    %c1_i32_21 = arith.constant 1 : i32
    %38 = arith.cmpi eq, %arg1, %c1_i32_21 : i32
    %39 = arith.extui %38 : i1 to i32
    %c0_i32_22 = arith.constant 0 : i32
    %40 = arith.cmpi ne, %39, %c0_i32_22 : i32
    scf.if %40 {
      %41 = arith.index_cast %3 : i32 to index
      %c0_23 = arith.constant 0 : index
      %42 = vector.load %arg11[%41, %c0_23] : memref<768x128xf32, #tpu.memory_space<vmem>>, vector<256x128xf32>
      %43 = arith.truncf %42 : vector<256x128xf32> to vector<256x128xbf16>
      %44 = arith.index_cast %3 : i32 to index
      %c0_24 = arith.constant 0 : index
      %45 = vector.load %arg9[%44, %c0_24] : memref<768x128xbf16, #tpu.memory_space<vmem>>, vector<256x128xbf16>
      tpu.vector_store %arg9[%44, %c0_24], %43 {strides = array<i32>} : memref<768x128xbf16, #tpu.memory_space<vmem>>, vector<256x128xbf16>,
      %46 = arith.index_cast %3 : i32 to index
      %c0_25 = arith.constant 0 : index
      %47 = vector.load %arg7[%46, %c0_25] : memref<768x128xf32, #tpu.memory_space<vmem>>, vector<256x128xf32>
      %48 = arith.addf %47, %42 : vector<256x128xf32>
      %49 = vector.broadcast %34 : f32 to vector<256x128xf32>
      %50 = arith.mulf %48, %49 : vector<256x128xf32>
      %51 = arith.index_cast %3 : i32 to index
      %c0_26 = arith.constant 0 : index
      %52 = vector.load %arg7[%51, %c0_26] : memref<768x128xf32, #tpu.memory_space<vmem>>, vector<256x128xf32>
      tpu.vector_store %arg7[%51, %c0_26], %50 {strides = array<i32>} : memref<768x128xf32, #tpu.memory_space<vmem>>, vector<256x128xf32>,
    } else {
    }
    return
  }
  func.func @transform_0(%arg0: i32, %arg1: i32, %arg2: i32) -> (i32, i32) {
    %c0_i32 = arith.constant 0 : i32
    return %arg1, %arg2 : i32, i32
  }
  func.func @transform_1(%arg0: i32, %arg1: i32, %arg2: i32) -> (i32, i32) {
    %c0_i32 = arith.constant 0 : i32
    %0 = arith.cmpi eq, %arg0, %c0_i32 : i32
    %c0_i32_0 = arith.constant 0 : i32
    %1 = arith.select %0, %arg1, %c0_i32_0 : i32
    %c0_i32_1 = arith.constant 0 : i32
    %c0_i32_2 = arith.constant 0 : i32
    return %1, %c0_i32_1 : i32, i32
  }
  func.func @transform_2(%arg0: i32, %arg1: i32, %arg2: i32) -> (i32, i32) {
    %c0_i32 = arith.constant 0 : i32
    %0 = arith.cmpi eq, %arg0, %c0_i32 : i32
    %c0_i32_0 = arith.constant 0 : i32
    %1 = arith.cmpi eq, %arg1, %c0_i32_0 : i32
    %2 = arith.andi %0, %1 : i1
    %c0_i32_1 = arith.constant 0 : i32
    %3 = arith.select %2, %arg2, %c0_i32_1 : i32
    %c0_i32_2 = arith.constant 0 : i32
    %c0_i32_3 = arith.constant 0 : i32
    return %3, %c0_i32_2 : i32, i32
  }
  func.func @transform_3(%arg0: i32, %arg1: i32, %arg2: i32) -> (i32, i32) {
    %c0_i32 = arith.constant 0 : i32
    %c0_i32_0 = arith.constant 0 : i32
    %c0_i32_1 = arith.constant 0 : i32
    return %c0_i32, %c0_i32_0 : i32, i32
  }
  func.func @transform_4(%arg0: i32, %arg1: i32, %arg2: i32) -> (i32, i32) {
    %c0_i32 = arith.constant 0 : i32
    %c0_i32_0 = arith.constant 0 : i32
    %c0_i32_1 = arith.constant 0 : i32
    return %c0_i32, %c0_i32_0 : i32, i32
  }
}

</mosaic_0001>

<bundles_post_ra>
// kernel: student_lightgcl_forward_test.1
= control target key start
LH: loop header
LB: loop body
LE: loop exit
PB: predicated region body
PF: predicated region fallthrough
CT: control target
= control target key end

     0   :  { %s6434_s0 = inlined_call_operand.vmem [shape: bf16[512,768], index: 0, kind: input, shape index: {}]   ;;  %s6435_s1 = inlined_call_operand.vmem [shape: f32[512,128], index: 1, kind: input, shape index: {}]   ;;  %s6436_s2 = inlined_call_operand.vmem [shape: f32[768,128], index: 2, kind: input, shape index: {}]   ;;  %s6437_s3 = inlined_call_operand.vmem [shape: f32[512,128], index: 3, kind: output, shape index: {0}]   ;;  %s6438_s4 = inlined_call_operand.vmem [shape: f32[768,128], index: 4, kind: output, shape index: {1}]  }
   0x1   :  { %6466 = sst [smem:[#allocation55_spill]] %s6434_s0 }
   0x2   :  { %s4508_s15 = smov 0   ;;  %s4510_s16 = smov 0  }
   0x3   :  { %s4512_s17 = smov 0   ;;  %s4514_s18 = smov 0  }
   0x4   :  { %s4516_s19 = smov 0   ;;  %s4518_s20 = smov 0  }
   0x5   :  { %s4520_s21 = smov 0   ;;  %s4522_s22 = smov 0  }
   0x6   :  { %s4524_s23 = smov 0  }
   0x7 LB: > { %s27_s24 = sadd.s32 1, %s4469_s20  ;;  %s30_s25 = sadd.s32 1, %s4473_s21  ;;  %s4481_s23 = sphi %s4524_s23, %s15_s23   ;;  %s4477_s22 = sphi %s4522_s22, %s6572_s22   ;;  %s4473_s21 = sphi %s4520_s21, %s6571_s21   ;;  %s4469_s20 = sphi %s4518_s20, %s6570_s20   ;;  %s4465_s19 = sphi %s4516_s19, %s6569_s19   ;;  %s4461_s18 = sphi %s4514_s18, %s6568_s18   ;;  %s4457_s17 = sphi %s4512_s17, %s6567_s17   ;;  %s4453_s16 = sphi %s4510_s16, %s6566_s16   ;;  %s4449_s15 = sphi %s4508_s15, %s6565_s15  }
   0x8   : > { %p28_p0 = scmp.ge.s32.totalorder %s27_s24, 3  ;;  %p50_p1 = scmp.ne.s32.totalorder %s4453_s16, %s4449_s15 }
   0x9   : > { %p51_p2 = scmp.eq.s32.totalorder %s4481_s23, 0  ;;  %s34_s26 = sadd.s32 1, %s4477_s22 }
   0xa   : > { %s6574_s24 = smov (%p28_p0, %s27_s24), 0  ;;  %s6576_s25 = smov (!%p28_p0, %s30_s25), %s4473_s21 }
   0xb   : > { %p32_p3 = scmp.ge.s32.totalorder %s6576_s25, 2  ;;  %s39_s27 = ssub.s32 %s4469_s20, %s6574_s24 }
   0xc   : > { %p52_p4 = por %p51_p2, %p50_p1  ;;  %s43_s29 = sadd.s32 1, %s4453_s16 }
   0xd   : > { %s6578_s25 = smov (%p32_p3, %s6576_s25), 0  ;;  %s6580_s26 = smov (!%p32_p3, %s34_s26), %s4477_s22 }
   0xe   : > { %s38_s28 = ssub.s32 %s4473_s21, %s6578_s25  ;;  %p36_p5 = scmp.ge.s32.totalorder %s6580_s26, 2 }
   0xf   : > { %s40_s30 = sor.u32 %s39_s27, %s38_s28  ;;  %p3195_p7 = scmp.ge.s32.totalorder %s4481_s23, 12 }
  0x10   : > { %p41_p6 = scmp.eq.s32.totalorder %s40_s30, 0  ;;  %s6582_s26 = smov (%p36_p5, %s6580_s26), 0 }
  0x11   : > { %6467 = sst [smem:[#allocation7_spill]] %s6582_s26  ;;  %184 = sbr.rel (%p3195_p7) target bundleno = 48 (0x30), region = 16 }
  0x12   : > { %s4573_s5 = scalar_select %p41_p6, %s4453_s16, %s43_s29  }
  0x16   : > { %187 = sbr.rel (!%p52_p4) target bundleno = 48 (0x30), region = 20  ;;  %s189_s6 = sand.u32 (%p52_p4), 1, %s4453_s16  }
  0x17   : > { %s3198_s7 = sshll.u32 (%p52_p4), %s4469_s20, 1  ;;  %s3196_s8 = sshll.u32 (%p52_p4), %s189_s6, 8 }
  0x18   : > { %s4146_s9 = smul.u32 (%p52_p4), 192, %s4473_s21  ;;  %s6468_s0 = sld [smem:[#allocation55_spill]] (%p52_p4) }
  0x19   : > { %s4587_s27 = scalar_lea.vmem (%p52_p4), [#allocation6], %s3196_s8 }
  0x1a   : > { %s195_s10 = sadd.s32 (%p52_p4), %s4146_s9, %s3198_s7 }
  0x1b   : > { %s3200_s11 = sshll.u32 %s195_s10, 2 }
  0x1e   : > { %s4582_s14 = scalar_lea.vmem %s6468_s0, %s3200_s11 }
  0x1f   : > { %v288_v0 = vld [vmem:[%s4582_s14] sm:$0xff]  ;;  %v290_v1 = vld [vmem:[%s4582_s14 + $0x18] sm:$0xff]  ;;  %v292_v2 = vld [vmem:[%s4582_s14 + $0x30] sm:$0xff] }
  0x20   : > { %289 = vst [vmem:[%s4587_s27] sm:$0xff] %v288_v0  ;;  %291 = vst [vmem:[%s4587_s27 + $0x8] sm:$0xff] %v290_v1  ;;  %v294_v3 = vld [vmem:[%s4582_s14 + $0x48] sm:$0xff]  ;;  %v296_v4 = vld [vmem:[%s4582_s14 + $0x60] sm:$0xff] }
  0x21   : > { %293 = vst [vmem:[%s4587_s27 + $0x10] sm:$0xff] %v292_v2  ;;  %v298_v5 = vld [vmem:[%s4582_s14 + $0x78] sm:$0xff]  ;;  %295 = vst [vmem:[%s4587_s27 + $0x18] sm:$0xff] %v294_v3  ;;  %v300_v6 = vld [vmem:[%s4582_s14 + $0x90] sm:$0xff] }
  0x22   : > { %297 = vst [vmem:[%s4587_s27 + $0x20] sm:$0xff] %v296_v4  ;;  %299 = vst [vmem:[%s4587_s27 + $0x28] sm:$0xff] %v298_v5  ;;  %v302_v7 = vld [vmem:[%s4582_s14 + $0xa8] sm:$0xff]  ;;  %v304_v8 = vld [vmem:[%s4582_s14 + $0xc0] sm:$0xff] }
  0x23   : > { %301 = vst [vmem:[%s4587_s27 + $0x30] sm:$0xff] %v300_v6  ;;  %303 = vst [vmem:[%s4587_s27 + $0x38] sm:$0xff] %v302_v7  ;;  %v306_v9 = vld [vmem:[%s4582_s14 + $0xd8] sm:$0xff]  ;;  %v308_v10 = vld [vmem:[%s4582_s14 + $0xf0] sm:$0xff] }
  0x24   : > { %305 = vst [vmem:[%s4587_s27 + $0x40] sm:$0xff] %v304_v8  ;;  %v310_v11 = vld [vmem:[%s4582_s14 + $0x108] sm:$0xff]  ;;  %307 = vst [vmem:[%s4587_s27 + $0x48] sm:$0xff] %v306_v9  ;;  %v312_v12 = vld [vmem:[%s4582_s14 + $0x120] sm:$0xff] }
  0x25   : > { %309 = vst [vmem:[%s4587_s27 + $0x50] sm:$0xff] %v308_v10  ;;  %311 = vst [vmem:[%s4587_s27 + $0x58] sm:$0xff] %v310_v11  ;;  %v314_v13 = vld [vmem:[%s4582_s14 + $0x138] sm:$0xff]  ;;  %v316_v14 = vld [vmem:[%s4582_s14 + $0x150] sm:$0xff] }
  0x26   : > { %313 = vst [vmem:[%s4587_s27 + $0x60] sm:$0xff] %v312_v12  ;;  %315 = vst [vmem:[%s4587_s27 + $0x68] sm:$0xff] %v314_v13  ;;  %v318_v15 = vld [vmem:[%s4582_s14 + $0x168] sm:$0xff]  ;;  %v320_v16 = vld [vmem:[%s4582_s14 + $0x180] sm:$0xff] }
  0x27   : > { %317 = vst [vmem:[%s4587_s27 + $0x70] sm:$0xff] %v316_v14  ;;  %v322_v17 = vld [vmem:[%s4582_s14 + $0x198] sm:$0xff]  ;;  %319 = vst [vmem:[%s4587_s27 + $0x78] sm:$0xff] %v318_v15  ;;  %v324_v18 = vld [vmem:[%s4582_s14 + $0x1b0] sm:$0xff] }
  0x28   : > { %321 = vst [vmem:[%s4587_s27 + $0x80] sm:$0xff] %v320_v16  ;;  %323 = vst [vmem:[%s4587_s27 + $0x88] sm:$0xff] %v322_v17  ;;  %v326_v19 = vld [vmem:[%s4582_s14 + $0x1c8] sm:$0xff]  ;;  %v328_v20 = vld [vmem:[%s4582_s14 + $0x1e0] sm:$0xff] }
  0x29   : > { %325 = vst [vmem:[%s4587_s27 + $0x90] sm:$0xff] %v324_v18  ;;  %327 = vst [vmem:[%s4587_s27 + $0x98] sm:$0xff] %v326_v19  ;;  %v330_v21 = vld [vmem:[%s4582_s14 + $0x1f8] sm:$0xff]  ;;  %v332_v22 = vld [vmem:[%s4582_s14 + $0x210] sm:$0xff] }
  0x2a   : > { %329 = vst [vmem:[%s4587_s27 + $0xa0] sm:$0xff] %v328_v20  ;;  %v334_v23 = vld [vmem:[%s4582_s14 + $0x228] sm:$0xff]  ;;  %331 = vst [vmem:[%s4587_s27 + $0xa8] sm:$0xff] %v330_v21  ;;  %v336_v24 = vld [vmem:[%s4582_s14 + $0x240] sm:$0xff] }
  0x2b   : > { %333 = vst [vmem:[%s4587_s27 + $0xb0] sm:$0xff] %v332_v22  ;;  %335 = vst [vmem:[%s4587_s27 + $0xb8] sm:$0xff] %v334_v23  ;;  %v338_v25 = vld [vmem:[%s4582_s14 + $0x258] sm:$0xff]  ;;  %v340_v26 = vld [vmem:[%s4582_s14 + $0x270] sm:$0xff] }
  0x2c   : > { %337 = vst [vmem:[%s4587_s27 + $0xc0] sm:$0xff] %v336_v24  ;;  %339 = vst [vmem:[%s4587_s27 + $0xc8] sm:$0xff] %v338_v25  ;;  %v342_v27 = vld [vmem:[%s4582_s14 + $0x288] sm:$0xff]  ;;  %v344_v28 = vld [vmem:[%s4582_s14 + $0x2a0] sm:$0xff] }
  0x2d   : > { %341 = vst [vmem:[%s4587_s27 + $0xd0] sm:$0xff] %v340_v26  ;;  %v346_v29 = vld [vmem:[%s4582_s14 + $0x2b8] sm:$0xff]  ;;  %343 = vst [vmem:[%s4587_s27 + $0xd8] sm:$0xff] %v342_v27  ;;  %v348_v30 = vld [vmem:[%s4582_s14 + $0x2d0] sm:$0xff] }
  0x2e   : > { %345 = vst [vmem:[%s4587_s27 + $0xe0] sm:$0xff] %v344_v28  ;;  %347 = vst [vmem:[%s4587_s27 + $0xe8] sm:$0xff] %v346_v29  ;;  %v350_v31 = vld [vmem:[%s4582_s14 + $0x2e8] sm:$0xff] }
  0x2f   : > { %349 = vst [vmem:[%s4587_s27 + $0xf0] sm:$0xff] %v348_v30  ;;  %351 = vst [vmem:[%s4587_s27 + $0xf8] sm:$0xff] %v350_v31 }
  0x30 PF: > { %p3201_p8 = scmp.ge.s32.totalorder %s4481_s23, 1  ;;  %p388_p9 = scmp.lt.s32.totalorder %s4481_s23, 13 }
  0x32   : > { %p389_p10 = pnand %p3201_p8, %p388_p9 }
  0x34   : > { %392 = sbr.rel (%p389_p10) target bundleno = 1481 (0x5c9), region = 66 }
  0x39   : > { %s395_s28 = sand.u32 1, %s4449_s15   ;;  %p434_p11 = scmp.eq.s32.totalorder %s4465_s19, 0 }
  0x3a   : > { %s3202_s29 = sshll.u32 %s395_s28, 8  ;;  %p445_p12 = scmp.eq.s32.totalorder %s4461_s18, 0 }
  0x3b   : > { %s4656_s30 = sshll.u32 %s4461_s18, 8  ;;  %s4670_s8 = sshll.u32 %s4457_s17, 8 }
  0x3c   : > { %s435_s6 = scalar_select %p434_p11, %s4461_s18, 0 }
  0x3d   : > { %p4665_p13 = pnand %p445_p12, %p434_p11  ;;  %p464_p0 = scmp.eq.s32.totalorder %s4457_s17, 0 }
  0x3e   : > { %s3203_s9 = sshll.u32 %s435_s6, 5  ;;  %s4690_s26 = scalar_lea.vmem [#allocation6], %s3202_s29 }
  0x3f   : > { %p437_p1 = scmp.lt.s32.totalorder %s3203_s9, 63  ;;  %p465_p2 = pnand %p464_p0, %p434_p11 }
  0x40   : > { %s3205_s15 = scalar_select %p4665_p13, 0, %s4457_s17 }
  0x41   : > { %s6584_s9 = smov (!%p437_p1, %s3203_s9), 63 }
  0x42   : > { %s3206_s10 = sshll.u32 %s3205_s15, 5  ;;  %s3204_s11 = sshll.u32 %s6584_s9, 3 }
  0x43   : > { %p450_p3 = scmp.lt.s32.totalorder %s3206_s10, 95  ;;  %s4683_s14 = scalar_lea.vmem %s6435_s1, %s3204_s11 }
  0x44   : > { %468 = sbr.rel (%p465_p2) target bundleno = 296 (0x128), region = 74  ;;  %s4856_s15 = scalar_lea.vmem (!%p465_p2), %s6437_s3, %s4656_s30 }
  0x45   : > { %s6586_s10 = smov (!%p450_p3, %s3206_s10), 95 }
  0x46   : > { %s3207_s27 = sshll.u32 %s6586_s10, 3  ;;  %s821_s10 = sshra.s32 (!%p465_p2), %s4656_s30, 3 }
  0x47   : > { %s4688_s0 = scalar_lea.vmem %s6436_s2, %s3207_s27  ;;  %s3242_s11 = sshll.u32 (!%p465_p2), %s821_s10, 2 }
  0x48   : > { %s4867_s12 = scalar_lea.vmem (!%p465_p2), [#allocation2], %s3242_s11 }
  0x49   : > { %v4693_v32 = vld [vmem:[%s4683_s14 + $0x10] sm:$0xff]  ;;  %v4696_v33 = vld [vmem:[%s4683_s14] sm:$0xff]  ;;  %v4699_v34 = vld [vmem:[%s4683_s14 + $0x18] sm:$0xff] }
  0x4a   : > { %v503_v35 = vmul.f32 %v4693_v32, %v4693_v32  ;;  %v501_v36 = vmul.f32 %v4696_v33, %v4696_v33  ;;  %v4706_v37 = vld [vmem:[%s4683_s14 + $0x8] sm:$0xff]  ;;  %v504_v38 = vmul.f32 %v4699_v34, %v4699_v34  ;;  %v4716_v41 = vld [vmem:[%s4683_s14 + $0x20] sm:$0xff]  ;;  %v4723_v44 = vld [vmem:[%s4683_s14 + $0x38] sm:$0xff] }
  0x4b   : > { %v502_v39 = vmul.f32 %v4706_v37, %v4706_v37  ;;  %v4713_v40 = vld [vmem:[%s4683_s14 + $0x28] sm:$0xff]  ;;  %v505_v43 = vmul.f32 %v4716_v41, %v4716_v41  ;;  %v4726_v45 = vld [vmem:[%s4683_s14 + $0x30] sm:$0xff]  ;;  %v508_v46 = vmul.f32 %v4723_v44, %v4723_v44  ;;  %v4736_v49 = vld [vmem:[%s4683_s14 + $0x40] sm:$0xff] }
  0x4c   : > { %537 = vadd.xlane.f32.xlu1 %v503_v35  ;;  %533 = vadd.xlane.f32.xlu0 %v501_v36  ;;  %v506_v42 = vmul.f32 %v4713_v40, %v4713_v40  ;;  %v507_v47 = vmul.f32 %v4726_v45, %v4726_v45  ;;  %v4733_v48 = vld [vmem:[%s4683_s14 + $0x48] sm:$0xff]  ;;  %v509_v51 = vmul.f32 %v4736_v49, %v4736_v49  ;;  %v4743_v52 = vld [vmem:[%s4683_s14 + $0x58] sm:$0xff]  ;;  %v4746_v53 = vld [vmem:[%s4683_s14 + $0x50] sm:$0xff] }
  0x4d   : > { %v510_v50 = vmul.f32 %v4733_v48, %v4733_v48  ;;  %v512_v54 = vmul.f32 %v4743_v52, %v4743_v52  ;;  %v511_v55 = vmul.f32 %v4746_v53, %v4746_v53  ;;  %v4753_v56 = vld [vmem:[%s4683_s14 + $0x68] sm:$0xff]  ;;  %v4756_v57 = vld [vmem:[%s4683_s14 + $0x60] sm:$0xff]  ;;  %v4763_v60 = vld [vmem:[%s4683_s14 + $0x78] sm:$0xff] }
  0x4e   : > { %v514_v58 = vmul.f32 %v4753_v56, %v4753_v56  ;;  %v513_v59 = vmul.f32 %v4756_v57, %v4756_v57  ;;  %v4766_v61 = vld [vmem:[%s4683_s14 + $0x70] sm:$0xff]  ;;  %v516_v62 = vmul.f32 %v4763_v60, %v4763_v60  ;;  %v4773_v0 = vld [vmem:[%s4683_s14 + $0x88] sm:$0xff]  ;;  %v4776_v1 = vld [vmem:[%s4683_s14 + $0x80] sm:$0xff] }
  0x4f   : > { %v515_v63 = vmul.f32 %v4766_v61, %v4766_v61  ;;  %v518_v2 = vmul.f32 %v4773_v0, %v4773_v0  ;;  %v517_v3 = vmul.f32 %v4776_v1, %v4776_v1  ;;  %v4783_v4 = vld [vmem:[%s4683_s14 + $0x98] sm:$0xff]  ;;  %v4786_v5 = vld [vmem:[%s4683_s14 + $0x90] sm:$0xff]  ;;  %v4793_v8 = vld [vmem:[%s4683_s14 + $0xa8] sm:$0xff] }
  0x50   : > { %539 = vadd.xlane.f32.xlu1 %v504_v38  ;;  %535 = vadd.xlane.f32.xlu0 %v502_v39  ;;  %v520_v6 = vmul.f32 %v4783_v4, %v4783_v4  ;;  %v519_v7 = vmul.f32 %v4786_v5, %v4786_v5  ;;  %v4796_v9 = vld [vmem:[%s4683_s14 + $0xa0] sm:$0xff]  ;;  %v522_v10 = vmul.f32 %v4793_v8, %v4793_v8  ;;  %v4803_v12 = vld [vmem:[%s4683_s14 + $0xb8] sm:$0xff]  ;;  %v4806_v13 = vld [vmem:[%s4683_s14 + $0xb0] sm:$0xff] }
  0x51   : > { %v521_v11 = vmul.f32 %v4796_v9, %v4796_v9  ;;  %v524_v14 = vmul.f32 %v4803_v12, %v4803_v12  ;;  %v523_v15 = vmul.f32 %v4806_v13, %v4806_v13  ;;  %v4813_v16 = vld [vmem:[%s4683_s14 + $0xc8] sm:$0xff]  ;;  %v4816_v17 = vld [vmem:[%s4683_s14 + $0xc0] sm:$0xff]  ;;  %v4823_v20 = vld [vmem:[%s4683_s14 + $0xd8] sm:$0xff] }
  0x52   : > { %v526_v18 = vmul.f32 %v4813_v16, %v4813_v16  ;;  %v525_v19 = vmul.f32 %v4816_v17, %v4816_v17  ;;  %v4826_v21 = vld [vmem:[%s4683_s14 + $0xd0] sm:$0xff]  ;;  %v528_v22 = vmul.f32 %v4823_v20, %v4823_v20  ;;  %v4833_v24 = vld [vmem:[%s4683_s14 + $0xe8] sm:$0xff]  ;;  %v4836_v25 = vld [vmem:[%s4683_s14 + $0xe0] sm:$0xff] }
  0x53   : > { %v527_v23 = vmul.f32 %v4826_v21, %v4826_v21  ;;  %v530_v26 = vmul.f32 %v4833_v24, %v4833_v24  ;;  %v529_v27 = vmul.f32 %v4836_v25, %v4836_v25  ;;  %v4843_v28 = vld [vmem:[%s4683_s14 + $0xf8] sm:$0xff]  ;;  %v4846_v29 = vld [vmem:[%s4683_s14 + $0xf0] sm:$0xff] }
  0x54   : > { %543 = vadd.xlane.f32.xlu1 %v506_v42  ;;  %541 = vadd.xlane.f32.xlu0 %v505_v43  ;;  %v532_v30 = vmul.f32 %v4843_v28, %v4843_v28  ;;  %v531_v31 = vmul.f32 %v4846_v29, %v4846_v29 }
  0x58   : > { %547 = vadd.xlane.f32.xlu1 %v508_v46  ;;  %545 = vadd.xlane.f32.xlu0 %v507_v47 }
  0x5c   : > { %551 = vadd.xlane.f32.xlu1 %v510_v50  ;;  %549 = vadd.xlane.f32.xlu0 %v509_v51 }
  0x60   : > { %555 = vadd.xlane.f32.xlu1 %v512_v54  ;;  %553 = vadd.xlane.f32.xlu0 %v511_v55 }
  0x64   : > { %559 = vadd.xlane.f32.xlu1 %v514_v58  ;;  %557 = vadd.xlane.f32.xlu0 %v513_v59 }
  0x68   : > { %563 = vadd.xlane.f32.xlu1 %v516_v62  ;;  %561 = vadd.xlane.f32.xlu0 %v515_v63 }
  0x6c   : > { %567 = vadd.xlane.f32.xlu1 %v518_v2  ;;  %565 = vadd.xlane.f32.xlu0 %v517_v3 }
  0x70   : > { %571 = vadd.xlane.f32.xlu1 %v520_v6  ;;  %569 = vadd.xlane.f32.xlu0 %v519_v7 }
  0x74   : > { %575 = vadd.xlane.f32.xlu1 %v522_v10  ;;  %573 = vadd.xlane.f32.xlu0 %v521_v11 }
  0x78   : > { %579 = vadd.xlane.f32.xlu1 %v524_v14  ;;  %577 = vadd.xlane.f32.xlu0 %v523_v15 }
  0x7c   : > { %583 = vadd.xlane.f32.xlu1 %v526_v18  ;;  %581 = vadd.xlane.f32.xlu0 %v525_v19 }
  0x80   : > { %587 = vadd.xlane.f32.xlu1 %v528_v22  ;;  %585 = vadd.xlane.f32.xlu0 %v527_v23 }
  0x84   : > { %591 = vadd.xlane.f32.xlu1 %v530_v26  ;;  %589 = vadd.xlane.f32.xlu0 %v529_v27 }
  0x88   : > { %595 = vadd.xlane.f32.xlu1 %v532_v30  ;;  %593 = vadd.xlane.f32.xlu0 %v531_v31 }
  0xd5   : > { %v538_v35 = vpop.xlane.xlu1 %537  ;;  %v534_v36 = vpop.xlane.xlu0 %533 }
  0xd6   : > { %v599_v38 = vmax.f32 %v538_v35, 1e-24  ;;  %v597_v39 = vmax.f32 %v534_v36, 1e-24 }
  0xd8   : > { %4219 = vrsqrt.f32 %v599_v38 }
  0xd9   : > { %4221 = vrsqrt.f32 %v597_v39  ;;  %v540_v42 = vpop.xlane.xlu1 %539  ;;  %v536_v43 = vpop.xlane.xlu0 %535 }
  0xda   : > { %v600_v46 = vmax.f32 %v540_v42, 1e-24  ;;  %v598_v47 = vmax.f32 %v536_v43, 1e-24 }
  0xdc   : > { %4223 = vrsqrt.f32 %v600_v46 }
  0xdd   : > { %4225 = vrsqrt.f32 %v598_v47  ;;  %v544_v50 = vpop.xlane.xlu1 %543  ;;  %v542_v51 = vpop.xlane.xlu0 %541 }
  0xde   : > { %v602_v54 = vmax.f32 %v544_v50, 1e-24  ;;  %v601_v55 = vmax.f32 %v542_v51, 1e-24 }
  0xe0   : > { %4227 = vrsqrt.f32 %v602_v54 }
  0xe1   : > { %4229 = vrsqrt.f32 %v601_v55  ;;  %v548_v58 = vpop.xlane.xlu1 %547  ;;  %v546_v59 = vpop.xlane.xlu0 %545 }
  0xe2   : > { %v604_v62 = vmax.f32 %v548_v58, 1e-24  ;;  %v603_v63 = vmax.f32 %v546_v59, 1e-24 }
  0xe4   : > { %4231 = vrsqrt.f32 %v604_v62 }
  0xe5   : > { %v4220_v2 = vpop.eup %4219  ;;  %4233 = vrsqrt.f32 %v603_v63  ;;  %v552_v3 = vpop.xlane.xlu1 %551 }
  0xe6   : > { %v550_v6 = vpop.xlane.xlu0 %549  ;;  %v4222_v7 = vpop.eup %4221  ;;  %v663_v10 = vmul.f32 %v4220_v2, %v4693_v32  ;;  %v606_v11 = vmax.f32 %v552_v3, 1e-24 }
  0xe7   : > { %v605_v14 = vmax.f32 %v550_v6, 1e-24  ;;  %v661_v15 = vmul.f32 %v4222_v7, %v4696_v33 }
  0xe8   : > { %860 = vst [vmem:[%s4856_s15 + $0x10] sm:$0xff] %v663_v10  ;;  %4235 = vrsqrt.f32 %v606_v11 }
  0xe9   : > { %v4224_v18 = vpop.eup %4223  ;;  %858 = vst [vmem:[%s4856_s15] sm:$0xff] %v661_v15  ;;  %4237 = vrsqrt.f32 %v605_v14  ;;  %v556_v19 = vpop.xlane.xlu1 %555 }
  0xea   : > { %v554_v22 = vpop.xlane.xlu0 %553  ;;  %v4226_v23 = vpop.eup %4225  ;;  %v664_v26 = vmul.f32 %v4224_v18, %v4699_v34  ;;  %v608_v27 = vmax.f32 %v556_v19, 1e-24 }
  0xeb   : > { %v607_v30 = vmax.f32 %v554_v22, 1e-24  ;;  %v662_v32 = vmul.f32 %v4226_v23, %v4706_v37 }
  0xec   : > { %v3550_v31 = vpack.c.bf16 %v664_v26, %v663_v10  ;;  %861 = vst [vmem:[%s4856_s15 + $0x18] sm:$0xff] %v664_v26  ;;  %4239 = vrsqrt.f32 %v608_v27 }
  0xed   : > { %v4228_v33 = vpop.eup %4227  ;;  %v3545_v35 = vpack.c.bf16 %v662_v32, %v661_v15  ;;  %859 = vst [vmem:[%s4856_s15 + $0x8] sm:$0xff] %v662_v32  ;;  %4241 = vrsqrt.f32 %v607_v30  ;;  %v560_v36 = vpop.xlane.xlu1 %559 }
  0xee   : > { %v558_v38 = vpop.xlane.xlu0 %557  ;;  %v4230_v39 = vpop.eup %4229  ;;  %3862 = vst [vmem:[%s4867_s12 + $0x8] sm:$0xff] %v3550_v31   ;;  %v666_v34 = vmul.f32 %v4228_v33, %v4713_v40  ;;  %v610_v37 = vmax.f32 %v560_v36, 1e-24 }
  0xef   : > { %v609_v42 = vmax.f32 %v558_v38, 1e-24  ;;  %3546 = vst [vmem:[%s4867_s12] sm:$0xff] %v3545_v35   ;;  %v665_v43 = vmul.f32 %v4230_v39, %v4716_v41 }
  0xf0   : > { %863 = vst [vmem:[%s4856_s15 + $0x28] sm:$0xff] %v666_v34  ;;  %4243 = vrsqrt.f32 %v610_v37 }
  0xf1   : > { %v4232_v46 = vpop.eup %4231  ;;  %v3555_v47 = vpack.c.bf16 %v666_v34, %v665_v43  ;;  %862 = vst [vmem:[%s4856_s15 + $0x20] sm:$0xff] %v665_v43  ;;  %4245 = vrsqrt.f32 %v609_v42  ;;  %v564_v50 = vpop.xlane.xlu1 %563 }
  0xf2   : > { %v562_v51 = vpop.xlane.xlu0 %561  ;;  %v4234_v54 = vpop.eup %4233  ;;  %v668_v55 = vmul.f32 %v4232_v46, %v4723_v44  ;;  %v612_v40 = vmax.f32 %v564_v50, 1e-24 }
  0xf3   : > { %v611_v58 = vmax.f32 %v562_v51, 1e-24  ;;  %3863 = vst [vmem:[%s4867_s12 + $0x10] sm:$0xff] %v3555_v47   ;;  %v667_v59 = vmul.f32 %v4234_v54, %v4726_v45 }
  0xf4   : > { %865 = vst [vmem:[%s4856_s15 + $0x38] sm:$0xff] %v668_v55  ;;  %4247 = vrsqrt.f32 %v612_v40 }
  0xf5   : > { %v4236_v41 = vpop.eup %4235  ;;  %v3560_v62 = vpack.c.bf16 %v668_v55, %v667_v59  ;;  %864 = vst [vmem:[%s4856_s15 + $0x30] sm:$0xff] %v667_v59  ;;  %4249 = vrsqrt.f32 %v611_v58  ;;  %v568_v63 = vpop.xlane.xlu1 %567 }
  0xf6   : > { %v566_v2 = vpop.xlane.xlu0 %565  ;;  %v4238_v3 = vpop.eup %4237  ;;  %v670_v6 = vmul.f32 %v4236_v41, %v4733_v48  ;;  %v614_v44 = vmax.f32 %v568_v63, 1e-24 }
  0xf7   : > { %v613_v7 = vmax.f32 %v566_v2, 1e-24  ;;  %3864 = vst [vmem:[%s4867_s12 + $0x18] sm:$0xff] %v3560_v62   ;;  %v669_v10 = vmul.f32 %v4238_v3, %v4736_v49 }
  0xf8   : > { %867 = vst [vmem:[%s4856_s15 + $0x48] sm:$0xff] %v670_v6  ;;  %4251 = vrsqrt.f32 %v614_v44 }
  0xf9   : > { %v4240_v45 = vpop.eup %4239  ;;  %v3565_v11 = vpack.c.bf16 %v670_v6, %v669_v10  ;;  %866 = vst [vmem:[%s4856_s15 + $0x40] sm:$0xff] %v669_v10  ;;  %4253 = vrsqrt.f32 %v613_v7  ;;  %v572_v14 = vpop.xlane.xlu1 %571 }
  0xfa   : > { %v570_v15 = vpop.xlane.xlu0 %569  ;;  %v4242_v18 = vpop.eup %4241  ;;  %v672_v19 = vmul.f32 %v4240_v45, %v4743_v52  ;;  %v616_v48 = vmax.f32 %v572_v14, 1e-24 }
  0xfb   : > { %v615_v22 = vmax.f32 %v570_v15, 1e-24  ;;  %3865 = vst [vmem:[%s4867_s12 + $0x20] sm:$0xff] %v3565_v11   ;;  %v671_v23 = vmul.f32 %v4242_v18, %v4746_v53 }
  0xfc   : > { %869 = vst [vmem:[%s4856_s15 + $0x58] sm:$0xff] %v672_v19  ;;  %4255 = vrsqrt.f32 %v616_v48 }
  0xfd   : > { %v4244_v49 = vpop.eup %4243  ;;  %v3570_v26 = vpack.c.bf16 %v672_v19, %v671_v23  ;;  %868 = vst [vmem:[%s4856_s15 + $0x50] sm:$0xff] %v671_v23  ;;  %4257 = vrsqrt.f32 %v615_v22  ;;  %v576_v27 = vpop.xlane.xlu1 %575 }
  0xfe   : > { %v574_v30 = vpop.xlane.xlu0 %573  ;;  %v4246_v32 = vpop.eup %4245  ;;  %v674_v31 = vmul.f32 %v4244_v49, %v4753_v56  ;;  %v618_v52 = vmax.f32 %v576_v27, 1e-24 }
  0xff   : > { %v617_v33 = vmax.f32 %v574_v30, 1e-24  ;;  %3866 = vst [vmem:[%s4867_s12 + $0x28] sm:$0xff] %v3570_v26   ;;  %v673_v35 = vmul.f32 %v4246_v32, %v4756_v57 }
 0x100   : > { %871 = vst [vmem:[%s4856_s15 + $0x68] sm:$0xff] %v674_v31  ;;  %4259 = vrsqrt.f32 %v618_v52 }
 0x101   : > { %v4248_v53 = vpop.eup %4247  ;;  %v3575_v36 = vpack.c.bf16 %v674_v31, %v673_v35  ;;  %870 = vst [vmem:[%s4856_s15 + $0x60] sm:$0xff] %v673_v35  ;;  %4261 = vrsqrt.f32 %v617_v33  ;;  %v580_v38 = vpop.xlane.xlu1 %579 }
 0x102   : > { %v578_v39 = vpop.xlane.xlu0 %577  ;;  %v4250_v34 = vpop.eup %4249  ;;  %v676_v37 = vmul.f32 %v4248_v53, %v4763_v60  ;;  %v620_v56 = vmax.f32 %v580_v38, 1e-24 }
 0x103   : > { %v619_v42 = vmax.f32 %v578_v39, 1e-24  ;;  %3867 = vst [vmem:[%s4867_s12 + $0x30] sm:$0xff] %v3575_v36   ;;  %v675_v43 = vmul.f32 %v4250_v34, %v4766_v61 }
 0x104   : > { %873 = vst [vmem:[%s4856_s15 + $0x78] sm:$0xff] %v676_v37  ;;  %4263 = vrsqrt.f32 %v620_v56 }
 0x105   : > { %v4252_v57 = vpop.eup %4251  ;;  %v3580_v46 = vpack.c.bf16 %v676_v37, %v675_v43  ;;  %872 = vst [vmem:[%s4856_s15 + $0x70] sm:$0xff] %v675_v43  ;;  %4265 = vrsqrt.f32 %v619_v42  ;;  %v584_v47 = vpop.xlane.xlu1 %583 }
 0x106   : > { %v582_v50 = vpop.xlane.xlu0 %581  ;;  %v4254_v51 = vpop.eup %4253  ;;  %v678_v54 = vmul.f32 %v4252_v57, %v4773_v0  ;;  %v622_v60 = vmax.f32 %v584_v47, 1e-24 }
 0x107   : > { %v621_v55 = vmax.f32 %v582_v50, 1e-24  ;;  %3868 = vst [vmem:[%s4867_s12 + $0x38] sm:$0xff] %v3580_v46   ;;  %v677_v40 = vmul.f32 %v4254_v51, %v4776_v1 }
 0x108   : > { %875 = vst [vmem:[%s4856_s15 + $0x88] sm:$0xff] %v678_v54  ;;  %4267 = vrsqrt.f32 %v622_v60 }
 0x109   : > { %v4256_v61 = vpop.eup %4255  ;;  %v3585_v58 = vpack.c.bf16 %v678_v54, %v677_v40  ;;  %874 = vst [vmem:[%s4856_s15 + $0x80] sm:$0xff] %v677_v40  ;;  %4269 = vrsqrt.f32 %v621_v55  ;;  %v588_v59 = vpop.xlane.xlu1 %587 }
 0x10a   : > { %v586_v41 = vpop.xlane.xlu0 %585  ;;  %v4258_v62 = vpop.eup %4257  ;;  %v680_v63 = vmul.f32 %v4256_v61, %v4783_v4  ;;  %v624_v0 = vmax.f32 %v588_v59, 1e-24 }
 0x10b   : > { %v623_v2 = vmax.f32 %v586_v41, 1e-24  ;;  %3869 = vst [vmem:[%s4867_s12 + $0x40] sm:$0xff] %v3585_v58   ;;  %v679_v3 = vmul.f32 %v4258_v62, %v4786_v5 }
 0x10c   : > { %877 = vst [vmem:[%s4856_s15 + $0x98] sm:$0xff] %v680_v63  ;;  %4271 = vrsqrt.f32 %v624_v0 }
 0x10d   : > { %v4260_v1 = vpop.eup %4259  ;;  %v3590_v6 = vpack.c.bf16 %v680_v63, %v679_v3  ;;  %876 = vst [vmem:[%s4856_s15 + $0x90] sm:$0xff] %v679_v3  ;;  %4273 = vrsqrt.f32 %v623_v2  ;;  %v592_v44 = vpop.xlane.xlu1 %591 }
 0x10e   : > { %v590_v7 = vpop.xlane.xlu0 %589  ;;  %v4262_v10 = vpop.eup %4261  ;;  %v682_v45 = vmul.f32 %v4260_v1, %v4793_v8  ;;  %v626_v4 = vmax.f32 %v592_v44, 1e-24 }
 0x10f   : > { %v625_v11 = vmax.f32 %v590_v7, 1e-24  ;;  %3870 = vst [vmem:[%s4867_s12 + $0x48] sm:$0xff] %v3590_v6   ;;  %v681_v14 = vmul.f32 %v4262_v10, %v4796_v9 }
 0x110   : > { %879 = vst [vmem:[%s4856_s15 + $0xa8] sm:$0xff] %v682_v45  ;;  %4275 = vrsqrt.f32 %v626_v4 }
 0x111   : > { %v4264_v5 = vpop.eup %4263  ;;  %v3595_v15 = vpack.c.bf16 %v682_v45, %v681_v14  ;;  %878 = vst [vmem:[%s4856_s15 + $0xa0] sm:$0xff] %v681_v14  ;;  %4277 = vrsqrt.f32 %v625_v11  ;;  %v596_v18 = vpop.xlane.xlu1 %595 }
 0x112   : > { %v594_v19 = vpop.xlane.xlu0 %593  ;;  %v4266_v48 = vpop.eup %4265  ;;  %v684_v8 = vmul.f32 %v4264_v5, %v4803_v12  ;;  %v628_v22 = vmax.f32 %v596_v18, 1e-24 }
 0x113   : > { %v627_v23 = vmax.f32 %v594_v19, 1e-24  ;;  %3871 = vst [vmem:[%s4867_s12 + $0x50] sm:$0xff] %v3595_v15   ;;  %v683_v9 = vmul.f32 %v4266_v48, %v4806_v13 }
 0x114   : > { %881 = vst [vmem:[%s4856_s15 + $0xb8] sm:$0xff] %v684_v8  ;;  %4279 = vrsqrt.f32 %v628_v22 }
 0x115   : > { %v4268_v49 = vpop.eup %4267  ;;  %v3600_v26 = vpack.c.bf16 %v684_v8, %v683_v9  ;;  %880 = vst [vmem:[%s4856_s15 + $0xb0] sm:$0xff] %v683_v9  ;;  %4281 = vrsqrt.f32 %v627_v23 }
 0x116   : > { %v4270_v27 = vpop.eup %4269  ;;  %v686_v30 = vmul.f32 %v4268_v49, %v4813_v16 }
 0x117   : > { %3872 = vst [vmem:[%s4867_s12 + $0x58] sm:$0xff] %v3600_v26   ;;  %v685_v12 = vmul.f32 %v4270_v27, %v4816_v17 }
 0x118   : > { %883 = vst [vmem:[%s4856_s15 + $0xc8] sm:$0xff] %v686_v30 }
 0x119   : > { %v4272_v32 = vpop.eup %4271  ;;  %v3605_v13 = vpack.c.bf16 %v686_v30, %v685_v12  ;;  %882 = vst [vmem:[%s4856_s15 + $0xc0] sm:$0xff] %v685_v12 }
 0x11a   : > { %v4274_v31 = vpop.eup %4273  ;;  %v688_v52 = vmul.f32 %v4272_v32, %v4823_v20 }
 0x11b   : > { %3873 = vst [vmem:[%s4867_s12 + $0x60] sm:$0xff] %v3605_v13   ;;  %v687_v33 = vmul.f32 %v4274_v31, %v4826_v21 }
 0x11c   : > { %885 = vst [vmem:[%s4856_s15 + $0xd8] sm:$0xff] %v688_v52 }
 0x11d   : > { %v4276_v16 = vpop.eup %4275  ;;  %v3610_v35 = vpack.c.bf16 %v688_v52, %v687_v33  ;;  %884 = vst [vmem:[%s4856_s15 + $0xd0] sm:$0xff] %v687_v33 }
 0x11e   : > { %v4278_v17 = vpop.eup %4277  ;;  %v690_v53 = vmul.f32 %v4276_v16, %v4833_v24 }
 0x11f   : > { %3874 = vst [vmem:[%s4867_s12 + $0x68] sm:$0xff] %v3610_v35   ;;  %v689_v36 = vmul.f32 %v4278_v17, %v4836_v25 }
 0x120   : > { %887 = vst [vmem:[%s4856_s15 + $0xe8] sm:$0xff] %v690_v53 }
 0x121   : > { %v4280_v38 = vpop.eup %4279  ;;  %v3615_v20 = vpack.c.bf16 %v690_v53, %v689_v36  ;;  %886 = vst [vmem:[%s4856_s15 + $0xe0] sm:$0xff] %v689_v36 }
 0x122   : > { %v4282_v39 = vpop.eup %4281  ;;  %v692_v21 = vmul.f32 %v4280_v38, %v4843_v28 }
 0x123   : > { %3875 = vst [vmem:[%s4867_s12 + $0x70] sm:$0xff] %v3615_v20   ;;  %v691_v34 = vmul.f32 %v4282_v39, %v4846_v29 }
 0x124   : > { %889 = vst [vmem:[%s4856_s15 + $0xf8] sm:$0xff] %v692_v21 }
 0x125   : > { %v3620_v37 = vpack.c.bf16 %v692_v21, %v691_v34  ;;  %888 = vst [vmem:[%s4856_s15 + $0xf0] sm:$0xff] %v691_v34 }
 0x127   : > { %3876 = vst [vmem:[%s4867_s12 + $0x78] sm:$0xff] %v3620_v37  }
 0x128 PF: > { %894 = sbr.rel (%p4665_p13) target bundleno = 524 (0x20c), region = 78  ;;  %s5107_s13 = scalar_lea.vmem (!%p4665_p13), %s6438_s4, %s4670_s8 }
 0x129   : > { %s1247_s14 = sshra.s32 (!%p4665_p13), %s4670_s8, 3 }
 0x12a   : > { %s3275_s27 = sshll.u32 (!%p4665_p13), %s1247_s14, 2 }
 0x12b   : > { %s5118_s28 = scalar_lea.vmem (!%p4665_p13), [#allocation3], %s3275_s27 }
 0x12d   : > { %v4944_v24 = vld [vmem:[%s4688_s0 + $0x10] sm:$0xff]  ;;  %v4947_v25 = vld [vmem:[%s4688_s0] sm:$0xff]  ;;  %v4950_v28 = vld [vmem:[%s4688_s0 + $0x18] sm:$0xff] }
 0x12e   : > { %v929_v29 = vmul.f32 %v4944_v24, %v4944_v24  ;;  %v927_v56 = vmul.f32 %v4947_v25, %v4947_v25  ;;  %v4957_v42 = vld [vmem:[%s4688_s0 + $0x8] sm:$0xff]  ;;  %v930_v43 = vmul.f32 %v4950_v28, %v4950_v28  ;;  %v4967_v47 = vld [vmem:[%s4688_s0 + $0x20] sm:$0xff]  ;;  %v4974_v54 = vld [vmem:[%s4688_s0 + $0x38] sm:$0xff] }
 0x12f   : > { %v928_v57 = vmul.f32 %v4957_v42, %v4957_v42  ;;  %v4964_v46 = vld [vmem:[%s4688_s0 + $0x28] sm:$0xff]  ;;  %v931_v51 = vmul.f32 %v4967_v47, %v4967_v47  ;;  %v4977_v60 = vld [vmem:[%s4688_s0 + $0x30] sm:$0xff]  ;;  %v934_v55 = vmul.f32 %v4974_v54, %v4974_v54  ;;  %v4987_v58 = vld [vmem:[%s4688_s0 + $0x40] sm:$0xff] }
 0x130   : > { %963 = vadd.xlane.f32.xlu1 %v929_v29  ;;  %959 = vadd.xlane.f32.xlu0 %v927_v56  ;;  %v932_v50 = vmul.f32 %v4964_v46, %v4964_v46  ;;  %v933_v40 = vmul.f32 %v4977_v60, %v4977_v60  ;;  %v4984_v61 = vld [vmem:[%s4688_s0 + $0x48] sm:$0xff]  ;;  %v935_v41 = vmul.f32 %v4987_v58, %v4987_v58  ;;  %v4994_v62 = vld [vmem:[%s4688_s0 + $0x58] sm:$0xff]  ;;  %v4997_v63 = vld [vmem:[%s4688_s0 + $0x50] sm:$0xff] }
 0x131   : > { %v936_v59 = vmul.f32 %v4984_v61, %v4984_v61  ;;  %v938_v0 = vmul.f32 %v4994_v62, %v4994_v62  ;;  %v937_v2 = vmul.f32 %v4997_v63, %v4997_v63  ;;  %v5004_v3 = vld [vmem:[%s4688_s0 + $0x68] sm:$0xff]  ;;  %v5007_v1 = vld [vmem:[%s4688_s0 + $0x60] sm:$0xff]  ;;  %v5014_v7 = vld [vmem:[%s4688_s0 + $0x78] sm:$0xff] }
 0x132   : > { %v940_v6 = vmul.f32 %v5004_v3, %v5004_v3  ;;  %v939_v44 = vmul.f32 %v5007_v1, %v5007_v1  ;;  %v5017_v10 = vld [vmem:[%s4688_s0 + $0x70] sm:$0xff]  ;;  %v942_v45 = vmul.f32 %v5014_v7, %v5014_v7  ;;  %v5024_v11 = vld [vmem:[%s4688_s0 + $0x88] sm:$0xff]  ;;  %v5027_v14 = vld [vmem:[%s4688_s0 + $0x80] sm:$0xff] }
 0x133   : > { %v941_v4 = vmul.f32 %v5017_v10, %v5017_v10  ;;  %v944_v5 = vmul.f32 %v5024_v11, %v5024_v11  ;;  %v943_v15 = vmul.f32 %v5027_v14, %v5027_v14  ;;  %v5034_v18 = vld [vmem:[%s4688_s0 + $0x98] sm:$0xff]  ;;  %v5037_v19 = vld [vmem:[%s4688_s0 + $0x90] sm:$0xff]  ;;  %v5044_v22 = vld [vmem:[%s4688_s0 + $0xa8] sm:$0xff] }
 0x134   : > { %965 = vadd.xlane.f32.xlu1 %v930_v43  ;;  %961 = vadd.xlane.f32.xlu0 %v928_v57  ;;  %v946_v48 = vmul.f32 %v5034_v18, %v5034_v18  ;;  %v945_v8 = vmul.f32 %v5037_v19, %v5037_v19  ;;  %v5047_v23 = vld [vmem:[%s4688_s0 + $0xa0] sm:$0xff]  ;;  %v948_v9 = vmul.f32 %v5044_v22, %v5044_v22  ;;  %v5054_v26 = vld [vmem:[%s4688_s0 + $0xb8] sm:$0xff]  ;;  %v5057_v27 = vld [vmem:[%s4688_s0 + $0xb0] sm:$0xff] }
 0x135   : > { %v947_v49 = vmul.f32 %v5047_v23, %v5047_v23  ;;  %v950_v30 = vmul.f32 %v5054_v26, %v5054_v26  ;;  %v949_v12 = vmul.f32 %v5057_v27, %v5057_v27  ;;  %v5064_v32 = vld [vmem:[%s4688_s0 + $0xc8] sm:$0xff]  ;;  %v5067_v13 = vld [vmem:[%s4688_s0 + $0xc0] sm:$0xff]  ;;  %v5074_v33 = vld [vmem:[%s4688_s0 + $0xd8] sm:$0xff] }
 0x136   : > { %v952_v31 = vmul.f32 %v5064_v32, %v5064_v32  ;;  %v951_v52 = vmul.f32 %v5067_v13, %v5067_v13  ;;  %v5077_v16 = vld [vmem:[%s4688_s0 + $0xd0] sm:$0xff]  ;;  %v954_v35 = vmul.f32 %v5074_v33, %v5074_v33  ;;  %v5084_v53 = vld [vmem:[%s4688_s0 + $0xe8] sm:$0xff]  ;;  %v5087_v36 = vld [vmem:[%s4688_s0 + $0xe0] sm:$0xff] }
 0x137   : > { %v953_v17 = vmul.f32 %v5077_v16, %v5077_v16  ;;  %v956_v38 = vmul.f32 %v5084_v53, %v5084_v53  ;;  %v955_v20 = vmul.f32 %v5087_v36, %v5087_v36  ;;  %v5094_v39 = vld [vmem:[%s4688_s0 + $0xf8] sm:$0xff]  ;;  %v5097_v21 = vld [vmem:[%s4688_s0 + $0xf0] sm:$0xff] }
 0x138   : > { %969 = vadd.xlane.f32.xlu1 %v932_v50  ;;  %967 = vadd.xlane.f32.xlu0 %v931_v51  ;;  %v958_v34 = vmul.f32 %v5094_v39, %v5094_v39  ;;  %v957_v37 = vmul.f32 %v5097_v21, %v5097_v21 }
 0x13c   : > { %973 = vadd.xlane.f32.xlu1 %v934_v55  ;;  %971 = vadd.xlane.f32.xlu0 %v933_v40 }
 0x140   : > { %977 = vadd.xlane.f32.xlu1 %v936_v59  ;;  %975 = vadd.xlane.f32.xlu0 %v935_v41 }
 0x144   : > { %981 = vadd.xlane.f32.xlu1 %v938_v0  ;;  %979 = vadd.xlane.f32.xlu0 %v937_v2 }
 0x148   : > { %985 = vadd.xlane.f32.xlu1 %v940_v6  ;;  %983 = vadd.xlane.f32.xlu0 %v939_v44 }
 0x14c   : > { %989 = vadd.xlane.f32.xlu1 %v942_v45  ;;  %987 = vadd.xlane.f32.xlu0 %v941_v4 }
 0x150   : > { %993 = vadd.xlane.f32.xlu1 %v944_v5  ;;  %991 = vadd.xlane.f32.xlu0 %v943_v15 }
 0x154   : > { %997 = vadd.xlane.f32.xlu1 %v946_v48  ;;  %995 = vadd.xlane.f32.xlu0 %v945_v8 }
 0x158   : > { %1001 = vadd.xlane.f32.xlu1 %v948_v9  ;;  %999 = vadd.xlane.f32.xlu0 %v947_v49 }
 0x15c   : > { %1005 = vadd.xlane.f32.xlu1 %v950_v30  ;;  %1003 = vadd.xlane.f32.xlu0 %v949_v12 }
 0x160   : > { %1009 = vadd.xlane.f32.xlu1 %v952_v31  ;;  %1007 = vadd.xlane.f32.xlu0 %v951_v52 }
 0x164   : > { %1013 = vadd.xlane.f32.xlu1 %v954_v35  ;;  %1011 = vadd.xlane.f32.xlu0 %v953_v17 }
 0x168   : > { %1017 = vadd.xlane.f32.xlu1 %v956_v38  ;;  %1015 = vadd.xlane.f32.xlu0 %v955_v20 }
 0x16c   : > { %1021 = vadd.xlane.f32.xlu1 %v958_v34  ;;  %1019 = vadd.xlane.f32.xlu0 %v957_v37 }
 0x1b9   : > { %v964_v29 = vpop.xlane.xlu1 %963  ;;  %v960_v56 = vpop.xlane.xlu0 %959 }
 0x1ba   : > { %v1025_v43 = vmax.f32 %v964_v29, 1e-24  ;;  %v1023_v57 = vmax.f32 %v960_v56, 1e-24 }
 0x1bc   : > { %4283 = vrsqrt.f32 %v1025_v43 }
 0x1bd   : > { %4285 = vrsqrt.f32 %v1023_v57  ;;  %v966_v50 = vpop.xlane.xlu1 %965  ;;  %v962_v51 = vpop.xlane.xlu0 %961 }
 0x1be   : > { %v1026_v55 = vmax.f32 %v966_v50, 1e-24  ;;  %v1024_v40 = vmax.f32 %v962_v51, 1e-24 }
 0x1c0   : > { %4287 = vrsqrt.f32 %v1026_v55 }
 0x1c1   : > { %4289 = vrsqrt.f32 %v1024_v40  ;;  %v970_v59 = vpop.xlane.xlu1 %969  ;;  %v968_v41 = vpop.xlane.xlu0 %967 }
 0x1c2   : > { %v1028_v0 = vmax.f32 %v970_v59, 1e-24  ;;  %v1027_v2 = vmax.f32 %v968_v41, 1e-24 }
 0x1c4   : > { %4291 = vrsqrt.f32 %v1028_v0 }
 0x1c5   : > { %4293 = vrsqrt.f32 %v1027_v2  ;;  %v974_v6 = vpop.xlane.xlu1 %973  ;;  %v972_v44 = vpop.xlane.xlu0 %971 }
 0x1c6   : > { %v1030_v45 = vmax.f32 %v974_v6, 1e-24  ;;  %v1029_v4 = vmax.f32 %v972_v44, 1e-24 }
 0x1c8   : > { %4295 = vrsqrt.f32 %v1030_v45 }
 0x1c9   : > { %v4284_v5 = vpop.eup %4283  ;;  %4297 = vrsqrt.f32 %v1029_v4  ;;  %v978_v15 = vpop.xlane.xlu1 %977 }
 0x1ca   : > { %v976_v48 = vpop.xlane.xlu0 %975  ;;  %v4286_v8 = vpop.eup %4285  ;;  %v1089_v9 = vmul.f32 %v4284_v5, %v4944_v24  ;;  %v1032_v49 = vmax.f32 %v978_v15, 1e-24 }
 0x1cb   : > { %v1031_v30 = vmax.f32 %v976_v48, 1e-24  ;;  %v1087_v12 = vmul.f32 %v4286_v8, %v4947_v25 }
 0x1cc   : > { %1286 = vst [vmem:[%s5107_s13 + $0x10] sm:$0xff] %v1089_v9  ;;  %4299 = vrsqrt.f32 %v1032_v49 }
 0x1cd   : > { %v4288_v31 = vpop.eup %4287  ;;  %1284 = vst [vmem:[%s5107_s13] sm:$0xff] %v1087_v12  ;;  %4301 = vrsqrt.f32 %v1031_v30  ;;  %v982_v52 = vpop.xlane.xlu1 %981 }
 0x1ce   : > { %v980_v35 = vpop.xlane.xlu0 %979  ;;  %v4290_v17 = vpop.eup %4289  ;;  %v1090_v38 = vmul.f32 %v4288_v31, %v4950_v28  ;;  %v1034_v20 = vmax.f32 %v982_v52, 1e-24 }
 0x1cf   : > { %v1033_v34 = vmax.f32 %v980_v35, 1e-24  ;;  %v1088_v24 = vmul.f32 %v4290_v17, %v4957_v42 }
 0x1d0   : > { %v3630_v37 = vpack.c.bf16 %v1090_v38, %v1089_v9  ;;  %1287 = vst [vmem:[%s5107_s13 + $0x18] sm:$0xff] %v1090_v38  ;;  %4303 = vrsqrt.f32 %v1034_v20 }
 0x1d1   : > { %v4292_v25 = vpop.eup %4291  ;;  %v3625_v29 = vpack.c.bf16 %v1088_v24, %v1087_v12  ;;  %1285 = vst [vmem:[%s5107_s13 + $0x8] sm:$0xff] %v1088_v24  ;;  %4305 = vrsqrt.f32 %v1033_v34  ;;  %v986_v56 = vpop.xlane.xlu1 %985 }
 0x1d2   : > { %v984_v43 = vpop.xlane.xlu0 %983  ;;  %v4294_v57 = vpop.eup %4293  ;;  %3877 = vst [vmem:[%s5118_s28 + $0x8] sm:$0xff] %v3630_v37   ;;  %v1092_v28 = vmul.f32 %v4292_v25, %v4964_v46  ;;  %v1036_v42 = vmax.f32 %v986_v56, 1e-24 }
 0x1d3   : > { %v1035_v50 = vmax.f32 %v984_v43, 1e-24  ;;  %3626 = vst [vmem:[%s5118_s28] sm:$0xff] %v3625_v29   ;;  %v1091_v51 = vmul.f32 %v4294_v57, %v4967_v47 }
 0x1d4   : > { %1289 = vst [vmem:[%s5107_s13 + $0x28] sm:$0xff] %v1092_v28  ;;  %4307 = vrsqrt.f32 %v1036_v42 }
 0x1d5   : > { %v4296_v55 = vpop.eup %4295  ;;  %v3635_v40 = vpack.c.bf16 %v1092_v28, %v1091_v51  ;;  %1288 = vst [vmem:[%s5107_s13 + $0x20] sm:$0xff] %v1091_v51  ;;  %4309 = vrsqrt.f32 %v1035_v50  ;;  %v990_v59 = vpop.xlane.xlu1 %989 }
 0x1d6   : > { %v988_v41 = vpop.xlane.xlu0 %987  ;;  %v4298_v0 = vpop.eup %4297  ;;  %v1094_v2 = vmul.f32 %v4296_v55, %v4974_v54  ;;  %v1038_v46 = vmax.f32 %v990_v59, 1e-24 }
 0x1d7   : > { %v1037_v6 = vmax.f32 %v988_v41, 1e-24  ;;  %3878 = vst [vmem:[%s5118_s28 + $0x10] sm:$0xff] %v3635_v40   ;;  %v1093_v44 = vmul.f32 %v4298_v0, %v4977_v60 }
 0x1d8   : > { %1291 = vst [vmem:[%s5107_s13 + $0x38] sm:$0xff] %v1094_v2  ;;  %4311 = vrsqrt.f32 %v1038_v46 }
 0x1d9   : > { %v4300_v47 = vpop.eup %4299  ;;  %v3640_v45 = vpack.c.bf16 %v1094_v2, %v1093_v44  ;;  %1290 = vst [vmem:[%s5107_s13 + $0x30] sm:$0xff] %v1093_v44  ;;  %4313 = vrsqrt.f32 %v1037_v6  ;;  %v994_v4 = vpop.xlane.xlu1 %993 }
 0x1da   : > { %v992_v5 = vpop.xlane.xlu0 %991  ;;  %v4302_v15 = vpop.eup %4301  ;;  %v1096_v48 = vmul.f32 %v4300_v47, %v4984_v61  ;;  %v1040_v54 = vmax.f32 %v994_v4, 1e-24 }
 0x1db   : > { %v1039_v8 = vmax.f32 %v992_v5, 1e-24  ;;  %3879 = vst [vmem:[%s5118_s28 + $0x18] sm:$0xff] %v3640_v45   ;;  %v1095_v9 = vmul.f32 %v4302_v15, %v4987_v58 }
 0x1dc   : > { %1293 = vst [vmem:[%s5107_s13 + $0x48] sm:$0xff] %v1096_v48  ;;  %4315 = vrsqrt.f32 %v1040_v54 }
 0x1dd   : > { %v4304_v60 = vpop.eup %4303  ;;  %v3645_v49 = vpack.c.bf16 %v1096_v48, %v1095_v9  ;;  %1292 = vst [vmem:[%s5107_s13 + $0x40] sm:$0xff] %v1095_v9  ;;  %4317 = vrsqrt.f32 %v1039_v8  ;;  %v998_v30 = vpop.xlane.xlu1 %997 }
 0x1de   : > { %v996_v12 = vpop.xlane.xlu0 %995  ;;  %v4306_v31 = vpop.eup %4305  ;;  %v1098_v52 = vmul.f32 %v4304_v60, %v4994_v62  ;;  %v1042_v61 = vmax.f32 %v998_v30, 1e-24 }
 0x1df   : > { %v1041_v35 = vmax.f32 %v996_v12, 1e-24  ;;  %3880 = vst [vmem:[%s5118_s28 + $0x20] sm:$0xff] %v3645_v49   ;;  %v1097_v17 = vmul.f32 %v4306_v31, %v4997_v63 }
 0x1e0   : > { %1295 = vst [vmem:[%s5107_s13 + $0x58] sm:$0xff] %v1098_v52  ;;  %4319 = vrsqrt.f32 %v1042_v61 }
 0x1e1   : > { %v4308_v58 = vpop.eup %4307  ;;  %v3650_v38 = vpack.c.bf16 %v1098_v52, %v1097_v17  ;;  %1294 = vst [vmem:[%s5107_s13 + $0x50] sm:$0xff] %v1097_v17  ;;  %4321 = vrsqrt.f32 %v1041_v35  ;;  %v1002_v20 = vpop.xlane.xlu1 %1001 }
 0x1e2   : > { %v1000_v34 = vpop.xlane.xlu0 %999  ;;  %v4310_v24 = vpop.eup %4309  ;;  %v1100_v37 = vmul.f32 %v4308_v58, %v5004_v3  ;;  %v1044_v62 = vmax.f32 %v1002_v20, 1e-24 }
 0x1e3   : > { %v1043_v25 = vmax.f32 %v1000_v34, 1e-24  ;;  %3881 = vst [vmem:[%s5118_s28 + $0x28] sm:$0xff] %v3650_v38   ;;  %v1099_v29 = vmul.f32 %v4310_v24, %v5007_v1 }
 0x1e4   : > { %1297 = vst [vmem:[%s5107_s13 + $0x68] sm:$0xff] %v1100_v37  ;;  %4323 = vrsqrt.f32 %v1044_v62 }
 0x1e5   : > { %v4312_v63 = vpop.eup %4311  ;;  %v3655_v56 = vpack.c.bf16 %v1100_v37, %v1099_v29  ;;  %1296 = vst [vmem:[%s5107_s13 + $0x60] sm:$0xff] %v1099_v29  ;;  %4325 = vrsqrt.f32 %v1043_v25  ;;  %v1006_v43 = vpop.xlane.xlu1 %1005 }
 0x1e6   : > { %v1004_v57 = vpop.xlane.xlu0 %1003  ;;  %v4314_v28 = vpop.eup %4313  ;;  %v1102_v42 = vmul.f32 %v4312_v63, %v5014_v7  ;;  %v1046_v3 = vmax.f32 %v1006_v43, 1e-24 }
 0x1e7   : > { %v1045_v50 = vmax.f32 %v1004_v57, 1e-24  ;;  %3882 = vst [vmem:[%s5118_s28 + $0x30] sm:$0xff] %v3655_v56   ;;  %v1101_v51 = vmul.f32 %v4314_v28, %v5017_v10 }
 0x1e8   : > { %1299 = vst [vmem:[%s5107_s13 + $0x78] sm:$0xff] %v1102_v42  ;;  %4327 = vrsqrt.f32 %v1046_v3 }
 0x1e9   : > { %v4316_v1 = vpop.eup %4315  ;;  %v3660_v55 = vpack.c.bf16 %v1102_v42, %v1101_v51  ;;  %1298 = vst [vmem:[%s5107_s13 + $0x70] sm:$0xff] %v1101_v51  ;;  %4329 = vrsqrt.f32 %v1045_v50  ;;  %v1010_v40 = vpop.xlane.xlu1 %1009 }
 0x1ea   : > { %v1008_v59 = vpop.xlane.xlu0 %1007  ;;  %v4318_v41 = vpop.eup %4317  ;;  %v1104_v0 = vmul.f32 %v4316_v1, %v5024_v11  ;;  %v1048_v7 = vmax.f32 %v1010_v40, 1e-24 }
 0x1eb   : > { %v1047_v2 = vmax.f32 %v1008_v59, 1e-24  ;;  %3883 = vst [vmem:[%s5118_s28 + $0x38] sm:$0xff] %v3660_v55   ;;  %v1103_v46 = vmul.f32 %v4318_v41, %v5027_v14 }
 0x1ec   : > { %1301 = vst [vmem:[%s5107_s13 + $0x88] sm:$0xff] %v1104_v0  ;;  %4331 = vrsqrt.f32 %v1048_v7 }
 0x1ed   : > { %v4320_v10 = vpop.eup %4319  ;;  %v3665_v6 = vpack.c.bf16 %v1104_v0, %v1103_v46  ;;  %1300 = vst [vmem:[%s5107_s13 + $0x80] sm:$0xff] %v1103_v46  ;;  %4333 = vrsqrt.f32 %v1047_v2  ;;  %v1014_v44 = vpop.xlane.xlu1 %1013 }
 0x1ee   : > { %v1012_v47 = vpop.xlane.xlu0 %1011  ;;  %v4322_v45 = vpop.eup %4321  ;;  %v1106_v4 = vmul.f32 %v4320_v10, %v5034_v18  ;;  %v1050_v11 = vmax.f32 %v1014_v44, 1e-24 }
 0x1ef   : > { %v1049_v5 = vmax.f32 %v1012_v47, 1e-24  ;;  %3884 = vst [vmem:[%s5118_s28 + $0x40] sm:$0xff] %v3665_v6   ;;  %v1105_v15 = vmul.f32 %v4322_v45, %v5037_v19 }
 0x1f0   : > { %1303 = vst [vmem:[%s5107_s13 + $0x98] sm:$0xff] %v1106_v4  ;;  %4335 = vrsqrt.f32 %v1050_v11 }
 0x1f1   : > { %v4324_v14 = vpop.eup %4323  ;;  %v3670_v48 = vpack.c.bf16 %v1106_v4, %v1105_v15  ;;  %1302 = vst [vmem:[%s5107_s13 + $0x90] sm:$0xff] %v1105_v15  ;;  %4337 = vrsqrt.f32 %v1049_v5  ;;  %v1018_v54 = vpop.xlane.xlu1 %1017 }
 0x1f2   : > { %v1016_v8 = vpop.xlane.xlu0 %1015  ;;  %v4326_v9 = vpop.eup %4325  ;;  %v1108_v60 = vmul.f32 %v4324_v14, %v5044_v22  ;;  %v1052_v18 = vmax.f32 %v1018_v54, 1e-24 }
 0x1f3   : > { %v1051_v49 = vmax.f32 %v1016_v8, 1e-24  ;;  %3885 = vst [vmem:[%s5118_s28 + $0x48] sm:$0xff] %v3670_v48   ;;  %v1107_v30 = vmul.f32 %v4326_v9, %v5047_v23 }
 0x1f4   : > { %1305 = vst [vmem:[%s5107_s13 + $0xa8] sm:$0xff] %v1108_v60  ;;  %4339 = vrsqrt.f32 %v1052_v18 }
 0x1f5   : > { %v4328_v19 = vpop.eup %4327  ;;  %v3675_v12 = vpack.c.bf16 %v1108_v60, %v1107_v30  ;;  %1304 = vst [vmem:[%s5107_s13 + $0xa0] sm:$0xff] %v1107_v30  ;;  %4341 = vrsqrt.f32 %v1051_v49  ;;  %v1022_v31 = vpop.xlane.xlu1 %1021 }
 0x1f6   : > { %v1020_v52 = vpop.xlane.xlu0 %1019  ;;  %v4330_v61 = vpop.eup %4329  ;;  %v1110_v22 = vmul.f32 %v4328_v19, %v5054_v26  ;;  %v1054_v35 = vmax.f32 %v1022_v31, 1e-24 }
 0x1f7   : > { %v1053_v17 = vmax.f32 %v1020_v52, 1e-24  ;;  %3886 = vst [vmem:[%s5118_s28 + $0x50] sm:$0xff] %v3675_v12   ;;  %v1109_v23 = vmul.f32 %v4330_v61, %v5057_v27 }
 0x1f8   : > { %1307 = vst [vmem:[%s5107_s13 + $0xb8] sm:$0xff] %v1110_v22  ;;  %4343 = vrsqrt.f32 %v1054_v35 }
 0x1f9   : > { %v4332_v58 = vpop.eup %4331  ;;  %v3680_v38 = vpack.c.bf16 %v1110_v22, %v1109_v23  ;;  %1306 = vst [vmem:[%s5107_s13 + $0xb0] sm:$0xff] %v1109_v23  ;;  %4345 = vrsqrt.f32 %v1053_v17 }
 0x1fa   : > { %v4334_v20 = vpop.eup %4333  ;;  %v1112_v34 = vmul.f32 %v4332_v58, %v5064_v32 }
 0x1fb   : > { %3887 = vst [vmem:[%s5118_s28 + $0x58] sm:$0xff] %v3680_v38   ;;  %v1111_v26 = vmul.f32 %v4334_v20, %v5067_v13 }
 0x1fc   : > { %1309 = vst [vmem:[%s5107_s13 + $0xc8] sm:$0xff] %v1112_v34 }
 0x1fd   : > { %v4336_v24 = vpop.eup %4335  ;;  %v3685_v27 = vpack.c.bf16 %v1112_v34, %v1111_v26  ;;  %1308 = vst [vmem:[%s5107_s13 + $0xc0] sm:$0xff] %v1111_v26 }
 0x1fe   : > { %v4338_v37 = vpop.eup %4337  ;;  %v1114_v62 = vmul.f32 %v4336_v24, %v5074_v33 }
 0x1ff   : > { %3888 = vst [vmem:[%s5118_s28 + $0x60] sm:$0xff] %v3685_v27   ;;  %v1113_v25 = vmul.f32 %v4338_v37, %v5077_v16 }
 0x200   : > { %1311 = vst [vmem:[%s5107_s13 + $0xd8] sm:$0xff] %v1114_v62 }
 0x201   : > { %v4340_v32 = vpop.eup %4339  ;;  %v3690_v29 = vpack.c.bf16 %v1114_v62, %v1113_v25  ;;  %1310 = vst [vmem:[%s5107_s13 + $0xd0] sm:$0xff] %v1113_v25 }
 0x202   : > { %v4342_v13 = vpop.eup %4341  ;;  %v1116_v63 = vmul.f32 %v4340_v32, %v5084_v53 }
 0x203   : > { %3889 = vst [vmem:[%s5118_s28 + $0x68] sm:$0xff] %v3690_v29   ;;  %v1115_v56 = vmul.f32 %v4342_v13, %v5087_v36 }
 0x204   : > { %1313 = vst [vmem:[%s5107_s13 + $0xe8] sm:$0xff] %v1116_v63 }
 0x205   : > { %v4344_v43 = vpop.eup %4343  ;;  %v3695_v33 = vpack.c.bf16 %v1116_v63, %v1115_v56  ;;  %1312 = vst [vmem:[%s5107_s13 + $0xe0] sm:$0xff] %v1115_v56 }
 0x206   : > { %v4346_v57 = vpop.eup %4345  ;;  %v1118_v16 = vmul.f32 %v4344_v43, %v5094_v39 }
 0x207   : > { %3890 = vst [vmem:[%s5118_s28 + $0x70] sm:$0xff] %v3695_v33   ;;  %v1117_v28 = vmul.f32 %v4346_v57, %v5097_v21 }
 0x208   : > { %1315 = vst [vmem:[%s5107_s13 + $0xf8] sm:$0xff] %v1118_v16 }
 0x209   : > { %v3700_v42 = vpack.c.bf16 %v1118_v16, %v1117_v28  ;;  %1314 = vst [vmem:[%s5107_s13 + $0xf0] sm:$0xff] %v1117_v28 }
 0x20b   : > { %3891 = vst [vmem:[%s5118_s28 + $0x78] sm:$0xff] %v3700_v42  }
 0x20c PF: > { %s1348_s6 = sshra.s32 %s4656_s30, 3  ;;  %s1384_s29 = sshra.s32 %s4670_s8, 3  ;;  %v5197_v53 = vld [vmem:[%s4690_s26 + $0x4] ss:$8 sps:$4 sm:$0xff]   ;;  %v5318_v27 = vld [vmem:[%s4690_s26] ss:$8 sps:$4 sm:$0xff]  }
 0x20d   : > { %s3276_s9 = sshll.u32 %s1348_s6, 2  ;;  %s5194_s15 = sshll.u32 %s1384_s29, 2  ;;  %6470 = vst [vmem:[#allocation8_spill] sm:$0xff] %v5197_v53  ;;  %1708 = vmatprep.mubr.bf16.mxu0 %v5197_v53  ;;  %v5321_v37 = vld [vmem:[%s4690_s26 + $0x14] ss:$8 sps:$4 sm:$0xff]  }
 0x20e   : > { %s5199_s10 = scalar_lea.vmem [#allocation2], %s3276_s9  ;;  %s5299_s11 = scalar_lea.vmem [#allocation3], %s5194_s15  ;;  %6491 = vst [vmem:[#allocation29_spill] sm:$0xff] %v5321_v37  ;;  %v5326_v62 = vld [vmem:[%s4690_s26 + $0x10] ss:$8 sps:$4 sm:$0xff]  }
 0x20f   : > { %v5202_v36 = vld [vmem:[%s5199_s10] sm:$0xf]  ;;  %v5205_v39 = vld [vmem:[%s5199_s10 + $0x4] sm:$0xf]  ;;  %v5208_v21 = vld [vmem:[%s5199_s10 + $0x8] sm:$0xf] }
 0x210   : > { %6471 = vst [vmem:[#allocation9_spill] sm:$0xff] %v5202_v36  ;;  %6472 = vst [vmem:[#allocation10_spill] sm:$0xff] %v5205_v39  ;;  %v5212_v3 = vld [vmem:[%s5199_s10 + $0xc] sm:$0xf]  ;;  %v5215_v50 = vld [vmem:[%s5199_s10 + $0x10] sm:$0xf] }
 0x211   : > { %6473 = vst [vmem:[#allocation11_spill] sm:$0xff] %v5208_v21  ;;  %6474 = vst [vmem:[#allocation12_spill] sm:$0xff] %v5212_v3  ;;  %v5218_v51 = vld [vmem:[%s5199_s10 + $0x14] sm:$0xf]  ;;  %v5221_v1 = vld [vmem:[%s5199_s10 + $0x18] sm:$0xf] }
 0x212   : > { %6475 = vst [vmem:[#allocation13_spill] sm:$0xff] %v5215_v50  ;;  %6476 = vst [vmem:[#allocation14_spill] sm:$0xff] %v5218_v51  ;;  %v5224_v55 = vld [vmem:[%s5199_s10 + $0x1c] sm:$0xf]  ;;  %v5227_v40 = vld [vmem:[%s5199_s10 + $0x20] sm:$0xf] }
 0x213   : > { %6477 = vst [vmem:[#allocation15_spill] sm:$0xff] %v5221_v1  ;;  %6478 = vst [vmem:[#allocation16_spill] sm:$0xff] %v5224_v55  ;;  %v5230_v59 = vld [vmem:[%s5199_s10 + $0x24] sm:$0xf]  ;;  %v5233_v41 = vld [vmem:[%s5199_s10 + $0x28] sm:$0xf] }
 0x214   : > { %6479 = vst [vmem:[#allocation17_spill] sm:$0xff] %v5227_v40  ;;  %6480 = vst [vmem:[#allocation18_spill] sm:$0xff] %v5230_v59  ;;  %v5236_v0 = vld [vmem:[%s5199_s10 + $0x2c] sm:$0xf]  ;;  %v5239_v7 = vld [vmem:[%s5199_s10 + $0x30] sm:$0xf] }
 0x215   : > { %v5242_v2 = vld [vmem:[%s5199_s10 + $0x34] sm:$0xf]  ;;  %v5245_v46 = vld [vmem:[%s5199_s10 + $0x38] sm:$0xf]  ;;  %v5248_v10 = vld [vmem:[%s5199_s10 + $0x3c] sm:$0xf] }
 0x216   : > { %v5251_v6 = vld [vmem:[%s5199_s10 + $0x40] sm:$0xf]  ;;  %v5254_v44 = vld [vmem:[%s5199_s10 + $0x44] sm:$0xf]  ;;  %v5257_v47 = vld [vmem:[%s5199_s10 + $0x48] sm:$0xf] }
 0x217   : > { %6481 = vst [vmem:[#allocation19_spill] sm:$0xff] %v5251_v6  ;;  %6482 = vst [vmem:[#allocation20_spill] sm:$0xff] %v5254_v44  ;;  %v5260_v45 = vld [vmem:[%s5199_s10 + $0x4c] sm:$0xf]  ;;  %v5263_v4 = vld [vmem:[%s5199_s10 + $0x50] sm:$0xf] }
 0x218   : > { %6483 = vst [vmem:[#allocation21_spill] sm:$0xff] %v5257_v47  ;;  %6484 = vst [vmem:[#allocation22_spill] sm:$0xff] %v5260_v45  ;;  %v5266_v11 = vld [vmem:[%s5199_s10 + $0x54] sm:$0xf]  ;;  %v5269_v5 = vld [vmem:[%s5199_s10 + $0x58] sm:$0xf] }
 0x219   : > { %6485 = vst [vmem:[#allocation23_spill] sm:$0xff] %v5263_v4  ;;  %6486 = vst [vmem:[#allocation24_spill] sm:$0xff] %v5266_v11  ;;  %v5272_v15 = vld [vmem:[%s5199_s10 + $0x5c] sm:$0xf]  ;;  %v5275_v14 = vld [vmem:[%s5199_s10 + $0x60] sm:$0xf] }
 0x21a   : > { %6487 = vst [vmem:[#allocation25_spill] sm:$0xff] %v5269_v5  ;;  %6488 = vst [vmem:[#allocation26_spill] sm:$0xff] %v5272_v15  ;;  %v5278_v48 = vld [vmem:[%s5199_s10 + $0x64] sm:$0xf]  ;;  %v5281_v54 = vld [vmem:[%s5199_s10 + $0x68] sm:$0xf] }
 0x21b   : > { %6489 = vst [vmem:[#allocation27_spill] sm:$0xff] %v5275_v14  ;;  %6490 = vst [vmem:[#allocation28_spill] sm:$0xff] %v5278_v48  ;;  %v5284_v8 = vld [vmem:[%s5199_s10 + $0x6c] sm:$0xf]  ;;  %v5287_v9 = vld [vmem:[%s5199_s10 + $0x70] sm:$0xf] }
 0x21c   : > { %v5290_v60 = vld [vmem:[%s5199_s10 + $0x74] sm:$0xf]  ;;  %v5293_v18 = vld [vmem:[%s5199_s10 + $0x78] sm:$0xf]  ;;  %v5296_v49 = vld [vmem:[%s5199_s10 + $0x7c] sm:$0xf] }
 0x21d   : > { %v4347_v30 = vld [vmem:[%s5299_s11 + $0x78] sm:$0xff]   ;;  %v4349_v12 = vld [vmem:[%s5299_s11 + $0x70] sm:$0xff]   ;;  %v4351_v52 = vld [vmem:[%s5299_s11 + $0x68] sm:$0xff]   ;;  %p3326_p4 = scmp.ne.s32.totalorder %s4457_s17, 0 }
 0x21e   : > { %v4348_v19 = vld [vmem:[%s5299_s11 + $0x38] sm:$0xff]   ;;  %3922 = vmatprep.subr.bf16.mxu0 %v4347_v30  ;;  %v4350_v31 = vld [vmem:[%s5299_s11 + $0x30] sm:$0xff]   ;;  %v4352_v61 = vld [vmem:[%s5299_s11 + $0x28] sm:$0xff]  }
 0x21f   : > { %3923 = vmatpush3.bf16.msra.mxu0 %v4348_v19  ;;  %v4353_v22 = vld [vmem:[%s5299_s11 + $0x60] sm:$0xff]   ;;  %v4355_v17 = vld [vmem:[%s5299_s11 + $0x58] sm:$0xff]   ;;  %v4357_v58 = vld [vmem:[%s5299_s11 + $0x50] sm:$0xff]  }
 0x220   : > { %3924 = vmatprep.subr.bf16.mxu0 %v4349_v12  ;;  %v4354_v35 = vld [vmem:[%s5299_s11 + $0x20] sm:$0xff]   ;;  %v4356_v23 = vld [vmem:[%s5299_s11 + $0x18] sm:$0xff]   ;;  %v4358_v38 = vld [vmem:[%s5299_s11 + $0x10] sm:$0xff]  }
 0x221   : > { %v4359_v20 = vld [vmem:[%s5299_s11 + $0x48] sm:$0xff]   ;;  %v4361_v26 = vld [vmem:[%s5299_s11 + $0x40] sm:$0xff]   ;;  %v5337_v29 = vld [vmem:[%s4690_s26 + $0x34] ss:$8 sps:$4 sm:$0xff]  }
 0x222   : > { %v4360_v34 = vld [vmem:[%s5299_s11 + $0x8] sm:$0xff]   ;;  %v4362_v24 = vld [vmem:[%s5299_s11] sm:$0xff]   ;;  %6494 = vst [vmem:[#allocation32_spill] sm:$0xff] %v5337_v29  ;;  %v5342_v13 = vld [vmem:[%s4690_s26 + $0x30] ss:$8 sps:$4 sm:$0xff]  }
 0x223   : > { %3925 = vmatpush3.bf16.msra.mxu0 %v4350_v31  ;;  %v5329_v25 = vld [vmem:[%s4690_s26 + $0x24] ss:$8 sps:$4 sm:$0xff]   ;;  %v5334_v32 = vld [vmem:[%s4690_s26 + $0x20] ss:$8 sps:$4 sm:$0xff]   ;;  %6495 = vst [vmem:[#allocation33_spill] sm:$0xff] %v5342_v13 }
 0x224   : > { %3926 = vmatprep.subr.bf16.mxu0 %v4351_v52  ;;  %6492 = vst [vmem:[#allocation30_spill] sm:$0xff] %v5329_v25  ;;  %6493 = vst [vmem:[#allocation31_spill] sm:$0xff] %v5334_v32  ;;  %v5345_v63 = vld [vmem:[%s4690_s26 + $0x44] ss:$8 sps:$4 sm:$0xff]   ;;  %v5350_v56 = vld [vmem:[%s4690_s26 + $0x40] ss:$8 sps:$4 sm:$0xff]  }
 0x225   : > { %6496 = vst [vmem:[#allocation34_spill] sm:$0xff] %v5345_v63  ;;  %6497 = vst [vmem:[#allocation35_spill] sm:$0xff] %v5350_v56  ;;  %v5353_v43 = vld [vmem:[%s4690_s26 + $0x54] ss:$8 sps:$4 sm:$0xff]   ;;  %v5358_v33 = vld [vmem:[%s4690_s26 + $0x50] ss:$8 sps:$4 sm:$0xff]  }
 0x226   : > { %6498 = vst [vmem:[#allocation36_spill] sm:$0xff] %v5353_v43  ;;  %6499 = vst [vmem:[#allocation37_spill] sm:$0xff] %v5358_v33  ;;  %v5361_v57 = vld [vmem:[%s4690_s26 + $0x64] ss:$8 sps:$4 sm:$0xff]   ;;  %v5366_v16 = vld [vmem:[%s4690_s26 + $0x60] ss:$8 sps:$4 sm:$0xff]  }
 0x227   : > { %3927 = vmatpush3.bf16.msra.mxu0 %v4352_v61  ;;  %6500 = vst [vmem:[#allocation38_spill] sm:$0xff] %v5361_v57  ;;  %6501 = vst [vmem:[#allocation39_spill] sm:$0xff] %v5366_v16  ;;  %v5369_v28 = vld [vmem:[%s4690_s26 + $0x74] ss:$8 sps:$4 sm:$0xff]   ;;  %v5374_v42 = vld [vmem:[%s4690_s26 + $0x70] ss:$8 sps:$4 sm:$0xff]  }
 0x228   : > { %3928 = vmatprep.subr.bf16.mxu0 %v4353_v22  ;;  %6502 = vst [vmem:[#allocation40_spill] sm:$0xff] %v5369_v28  ;;  %6503 = vst [vmem:[#allocation41_spill] sm:$0xff] %v5374_v42  ;;  %v5377_v30 = vld [vmem:[%s4690_s26 + $0x84] ss:$8 sps:$4 sm:$0xff]   ;;  %v5382_v19 = vld [vmem:[%s4690_s26 + $0x80] ss:$8 sps:$4 sm:$0xff]  }
 0x229   : > { %6504 = vst [vmem:[#allocation42_spill] sm:$0xff] %v5377_v30  ;;  %v5385_v12 = vld [vmem:[%s4690_s26 + $0x94] ss:$8 sps:$4 sm:$0xff]   ;;  %v5390_v31 = vld [vmem:[%s4690_s26 + $0x90] ss:$8 sps:$4 sm:$0xff]  }
 0x22a   : > { %6505 = vst [vmem:[#allocation43_spill] sm:$0xff] %v5385_v12  ;;  %v5393_v52 = vld [vmem:[%s4690_s26 + $0xa4] ss:$8 sps:$4 sm:$0xff]   ;;  %v5398_v61 = vld [vmem:[%s4690_s26 + $0xa0] ss:$8 sps:$4 sm:$0xff]  }
 0x22b   : > { %3929 = vmatpush3.bf16.msra.mxu0 %v4354_v35  ;;  %6506 = vst [vmem:[#allocation44_spill] sm:$0xff] %v5393_v52  ;;  %v5401_v22 = vld [vmem:[%s4690_s26 + $0xb4] ss:$8 sps:$4 sm:$0xff]   ;;  %v5406_v35 = vld [vmem:[%s4690_s26 + $0xb0] ss:$8 sps:$4 sm:$0xff]  }
 0x22c   : > { %3930 = vmatprep.subr.bf16.mxu0 %v4355_v17  ;;  %6507 = vst [vmem:[#allocation45_spill] sm:$0xff] %v5401_v22  ;;  %6508 = vst [vmem:[#allocation46_spill] sm:$0xff] %v5406_v35  ;;  %v5409_v17 = vld [vmem:[%s4690_s26 + $0xc4] ss:$8 sps:$4 sm:$0xff]  }
 0x22d   : > { %6509 = vst [vmem:[#allocation47_spill] sm:$0xff] %v5409_v17 }
 0x22f   : > { %3931 = vmatpush3.bf16.msra.mxu0 %v4356_v23  ;;  %v5414_v23 = vld [vmem:[%s4690_s26 + $0xc0] ss:$8 sps:$4 sm:$0xff]  }
 0x230   : > { %3932 = vmatprep.subr.bf16.mxu0 %v4357_v58  ;;  %6510 = vst [vmem:[#allocation48_spill] sm:$0xff] %v5414_v23  ;;  %v5417_v58 = vld [vmem:[%s4690_s26 + $0xd4] ss:$8 sps:$4 sm:$0xff]  }
 0x231   : > { %6511 = vst [vmem:[#allocation49_spill] sm:$0xff] %v5417_v58 }
 0x233   : > { %3933 = vmatpush3.bf16.msra.mxu0 %v4358_v38  ;;  %v5422_v38 = vld [vmem:[%s4690_s26 + $0xd0] ss:$8 sps:$4 sm:$0xff]  }
 0x234   : > { %3934 = vmatprep.subr.bf16.mxu0 %v4359_v20  ;;  %6512 = vst [vmem:[#allocation50_spill] sm:$0xff] %v5422_v38  ;;  %v5425_v20 = vld [vmem:[%s4690_s26 + $0xe4] ss:$8 sps:$4 sm:$0xff]  }
 0x235   : > { %6513 = vst [vmem:[#allocation51_spill] sm:$0xff] %v5425_v20 }
 0x237   : > { %3935 = vmatpush3.bf16.msra.mxu0 %v4360_v34  ;;  %v5430_v34 = vld [vmem:[%s4690_s26 + $0xe0] ss:$8 sps:$4 sm:$0xff]  }
 0x238   : > { %3936 = vmatprep.subr.bf16.mxu0 %v4361_v26  ;;  %6514 = vst [vmem:[#allocation52_spill] sm:$0xff] %v5430_v34  ;;  %v5433_v26 = vld [vmem:[%s4690_s26 + $0xf4] ss:$8 sps:$4 sm:$0xff]  }
 0x239   : > { %6515 = vst [vmem:[#allocation53_spill] sm:$0xff] %v5433_v26 }
 0x23b   : > { %3937 = vmatpush3.bf16.msra.mxu0 %v4362_v24  ;;  %v5438_v24 = vld [vmem:[%s4690_s26 + $0xf0] ss:$8 sps:$4 sm:$0xff]  }
 0x23c   : > { %6516 = vst [vmem:[#allocation54_spill] sm:$0xff] %v5438_v24 }
 0x23e   : > { %1709 = vmatmul.mubr.bf16.vlgmr.msra.gmra.mxu0 %v5318_v27 }
 0x23f   : > { %1716 = vmatprep.mubr.bf16.mxu0 %v5321_v37 }
 0x246   : > { %1717 = vmatmul.mubr.bf16.gmra.mxu0 %v5326_v62 }
 0x247   : > { %1724 = vmatprep.mubr.bf16.mxu0 %v5329_v25 }
 0x24e   : > { %1725 = vmatmul.mubr.bf16.gmra.mxu0 %v5334_v32 }
 0x24f   : > { %1732 = vmatprep.mubr.bf16.mxu0 %v5337_v29 }
 0x256   : > { %1733 = vmatmul.mubr.bf16.gmra.mxu0 %v5342_v13 }
 0x257   : > { %1740 = vmatprep.mubr.bf16.mxu0 %v5345_v63 }
 0x25e   : > { %1741 = vmatmul.mubr.bf16.gmra.mxu0 %v5350_v56 }
 0x25f   : > { %1748 = vmatprep.mubr.bf16.mxu0 %v5353_v43 }
 0x266   : > { %1749 = vmatmul.mubr.bf16.gmra.mxu0 %v5358_v33 }
 0x267   : > { %1756 = vmatprep.mubr.bf16.mxu0 %v5361_v57 }
 0x26e   : > { %1757 = vmatmul.mubr.bf16.gmra.mxu0 %v5366_v16 }
 0x26f   : > { %1764 = vmatprep.mubr.bf16.mxu0 %v5369_v28 }
 0x276   : > { %1765 = vmatmul.mubr.bf16.gmra.mxu0 %v5374_v42 }
 0x277   : > { %1772 = vmatprep.mubr.bf16.mxu0 %v5377_v30 }
 0x27e   : > { %1773 = vmatmul.mubr.bf16.gmra.mxu0 %v5382_v19 }
 0x27f   : > { %1780 = vmatprep.mubr.bf16.mxu0 %v5385_v12 }
 0x286   : > { %1781 = vmatmul.mubr.bf16.gmra.mxu0 %v5390_v31 }
 0x287   : > { %1788 = vmatprep.mubr.bf16.mxu0 %v5393_v52 }
 0x28e   : > { %1789 = vmatmul.mubr.bf16.gmra.mxu0 %v5398_v61 }
 0x28f   : > { %1796 = vmatprep.mubr.bf16.mxu0 %v5401_v22 }
 0x296   : > { %1797 = vmatmul.mubr.bf16.gmra.mxu0 %v5406_v35 }
 0x297   : > { %1804 = vmatprep.mubr.bf16.mxu0 %v5409_v17 }
 0x29e   : > { %1805 = vmatmul.mubr.bf16.gmra.mxu0 %v5414_v23 }
 0x29f   : > { %1812 = vmatprep.mubr.bf16.mxu0 %v5417_v58 }
 0x2a6   : > { %1813 = vmatmul.mubr.bf16.gmra.mxu0 %v5422_v38 }
 0x2a7   : > { %1820 = vmatprep.mubr.bf16.mxu0 %v5425_v20 }
 0x2ae   : > { %1821 = vmatmul.mubr.bf16.gmra.mxu0 %v5430_v34 }
 0x2af   : > { %1828 = vmatprep.mubr.bf16.mxu0 %v5433_v26 }
 0x2b6   : > { %1829 = vmatmul.mubr.bf16.gmra.mxu0 %v5438_v24 }
 0x2fe   : > { %v3938_v28 = vpop.f32.mrf.mxu0 }
 0x300   : > { %v3939_v57 = vpop.f32.mrf.mxu0 }
 0x301   : > { %v5441_v43 = vadd.f32 %v3939_v57, %v3938_v28 }
 0x302   : > { %v3941_v58 = vpop.f32.mrf.mxu0 }
 0x304   : > { %v3942_v63 = vpop.f32.mrf.mxu0 }
 0x305   : > { %v5443_v17 = vadd.f32 %v3942_v63, %v3941_v58 }
 0x306   : > { %v3944_v20 = vpop.f32.mrf.mxu0 }
 0x308   : > { %v3945_v29 = vpop.f32.mrf.mxu0 }
 0x309   : > { %v5445_v22 = vadd.f32 %v3945_v29, %v3944_v20 }
 0x30a   : > { %v3947_v25 = vpop.f32.mrf.mxu0 }
 0x30c   : > { %v3948_v52 = vpop.f32.mrf.mxu0 }
 0x30d   : > { %v5447_v37 = vadd.f32 %v3948_v52, %v3947_v25 }
 0x30e   : > { %v3950_v26 = vpop.f32.mrf.mxu0 }
 0x310   : > { %v3951_v12 = vpop.f32.mrf.mxu0 }
 0x311   : > { %v5449_v53 = vadd.f32 %v3951_v12, %v3950_v26 }
 0x312   : > { %v3953_v30 = vpop.f32.mrf.mxu0 }
 0x314   : > { %v3954_v42 = vpop.f32.mrf.mxu0 }
 0x315   : > { %v5451_v57 = vadd.f32 %v3954_v42, %v3953_v30 }
 0x316   : > { %v3956_v28 = vpop.f32.mrf.mxu0 }
 0x318   : > { %v3957_v24 = vpop.f32.mrf.mxu0 }
 0x319   : > { %v5453_v63 = vadd.f32 %v3957_v24, %v3956_v28 }
 0x31a   : > { %v3959_v58 = vpop.f32.mrf.mxu0 }
 0x31c   : > { %v3960_v36 = vpop.f32.mrf.mxu0 }
 0x31d   : > { %v5455_v29 = vadd.f32 %v3960_v36, %v3959_v58 }
 0x31e   : > { %v3962_v20 = vpop.f32.mrf.mxu0 }
 0x320   : > { %v3963_v39 = vpop.f32.mrf.mxu0 }
 0x321   : > { %v5457_v25 = vadd.f32 %v3963_v39, %v3962_v20 }
 0x322   : > { %v3965_v52 = vpop.f32.mrf.mxu0 }
 0x324   : > { %v3966_v6 = vpop.f32.mrf.mxu0 }
 0x325   : > { %v5459_v12 = vadd.f32 %v3966_v6, %v3965_v52 }
 0x326   : > { %v3968_v26 = vpop.f32.mrf.mxu0 }
 0x328   : > { %v3969_v44 = vpop.f32.mrf.mxu0 }
 0x329   : > { %v5461_v42 = vadd.f32 %v3969_v44, %v3968_v26 }
 0x32a   : > { %v3971_v30 = vpop.f32.mrf.mxu0 }
 0x32c   : > { %v3972_v16 = vpop.f32.mrf.mxu0 }
 0x32d   : > { %v5463_v24 = vadd.f32 %v3972_v16, %v3971_v30 }
 0x32e   : > { %v3974_v28 = vpop.f32.mrf.mxu0 }
 0x330   : > { %v3975_v34 = vpop.f32.mrf.mxu0 }
 0x331   : > { %v5465_v36 = vadd.f32 %v3975_v34, %v3974_v28 }
 0x332   : > { %v3977_v58 = vpop.f32.mrf.mxu0 }
 0x334   : > { %v3978_v21 = vpop.f32.mrf.mxu0 }
 0x335   : > { %v5467_v39 = vadd.f32 %v3978_v21, %v3977_v58 }
 0x336   : > { %v3980_v20 = vpop.f32.mrf.mxu0 }
 0x338   : > { %v3981_v3 = vpop.f32.mrf.mxu0 }
 0x339   : > { %v5469_v6 = vadd.f32 %v3981_v3, %v3980_v20 }
 0x33a   : > { %v3983_v52 = vpop.f32.mrf.mxu0 }
 0x33c   : > { %v3984_v47 = vpop.f32.mrf.mxu0 }
 0x33d   : > { %v5471_v44 = vadd.f32 %v3984_v47, %v3983_v52 }
 0x33e   : > { %v3986_v26 = vpop.f32.mrf.mxu0 }
 0x340   : > { %v3987_v45 = vpop.f32.mrf.mxu0 }
 0x341   : > { %v5473_v16 = vadd.f32 %v3987_v45, %v3986_v26 }
 0x342   : > { %v3989_v30 = vpop.f32.mrf.mxu0 }
 0x344   : > { %v3990_v33 = vpop.f32.mrf.mxu0 }
 0x345   : > { %v5475_v34 = vadd.f32 %v3990_v33, %v3989_v30 }
 0x346   : > { %v3992_v28 = vpop.f32.mrf.mxu0 }
 0x348   : > { %v3993_v38 = vpop.f32.mrf.mxu0 }
 0x349   : > { %v5477_v21 = vadd.f32 %v3993_v38, %v3992_v28 }
 0x34a   : > { %v3995_v58 = vpop.f32.mrf.mxu0 }
 0x34c   : > { %v3996_v50 = vpop.f32.mrf.mxu0 }
 0x34d   : > { %v5479_v3 = vadd.f32 %v3996_v50, %v3995_v58 }
 0x34e   : > { %v3998_v20 = vpop.f32.mrf.mxu0 }
 0x350   : > { %v3999_v51 = vpop.f32.mrf.mxu0 }
 0x351   : > { %v5481_v47 = vadd.f32 %v3999_v51, %v3998_v20 }
 0x352   : > { %v4001_v52 = vpop.f32.mrf.mxu0 }
 0x354   : > { %v4002_v4 = vpop.f32.mrf.mxu0 }
 0x355   : > { %v5483_v45 = vadd.f32 %v4002_v4, %v4001_v52 }
 0x356   : > { %v4004_v26 = vpop.f32.mrf.mxu0 }
 0x358   : > { %v4005_v11 = vpop.f32.mrf.mxu0 }
 0x359   : > { %v5485_v33 = vadd.f32 %v4005_v11, %v4004_v26 }
 0x35a   : > { %v4007_v30 = vpop.f32.mrf.mxu0 }
 0x35c   : > { %v4008_v56 = vpop.f32.mrf.mxu0 }
 0x35d   : > { %v5487_v38 = vadd.f32 %v4008_v56, %v4007_v30 }
 0x35e   : > { %v4010_v28 = vpop.f32.mrf.mxu0 }
 0x360   : > { %v4011_v23 = vpop.f32.mrf.mxu0 }
 0x361   : > { %v5489_v50 = vadd.f32 %v4011_v23, %v4010_v28 }
 0x362   : > { %v4013_v58 = vpop.f32.mrf.mxu0 }
 0x364   : > { %v4014_v1 = vpop.f32.mrf.mxu0 }
 0x365   : > { %v5491_v51 = vadd.f32 %v4014_v1, %v4013_v58 }
 0x366   : > { %v4016_v20 = vpop.f32.mrf.mxu0 }
 0x368   : > { %v4017_v55 = vpop.f32.mrf.mxu0 }
 0x369   : > { %v5493_v4 = vadd.f32 %v4017_v55, %v4016_v20 }
 0x36a   : > { %v4019_v52 = vpop.f32.mrf.mxu0 }
 0x36c   : > { %v4020_v5 = vpop.f32.mrf.mxu0 }
 0x36d   : > { %v5495_v11 = vadd.f32 %v4020_v5, %v4019_v52 }
 0x36e   : > { %v4022_v26 = vpop.f32.mrf.mxu0 }
 0x370   : > { %v4023_v15 = vpop.f32.mrf.mxu0 }
 0x371   : > { %v5497_v56 = vadd.f32 %v4023_v15, %v4022_v26 }
 0x372   : > { %v4025_v30 = vpop.f32.mrf.mxu0 }
 0x374   : > { %v4026_v13 = vpop.f32.mrf.mxu0 }
 0x375   : > { %v5499_v23 = vadd.f32 %v4026_v13, %v4025_v30 }
 0x376   : > { %v4028_v28 = vpop.f32.mrf.mxu0 }
 0x378   : > { %v4029_v35 = vpop.f32.mrf.mxu0 }
 0x379   : > { %v5501_v1 = vadd.f32 %v4029_v35, %v4028_v28  ;;  %1839 = sbr.rel (%p3326_p4) target bundleno = 910 (0x38e), region = 82 }
 0x37a   : > { %v4031_v58 = vpop.f32.mrf.mxu0 }
 0x37c   : > { %v4032_v40 = vpop.f32.mrf.mxu0 }
 0x37d   : > { %v5503_v55 = vadd.f32 %v4032_v40, %v4031_v58 }
 0x37e   : > { %1840 = vst [vmem:[#allocation4 + $0xb0] sm:$0xff] %v5441_v43  ;;  %1841 = vst [vmem:[#allocation4] sm:$0xff] %v5443_v17 }
 0x37f   : > { %1842 = vst [vmem:[#allocation4 + $0xd8] sm:$0xff] %v5445_v22  ;;  %1843 = vst [vmem:[#allocation4 + $0x18] sm:$0xff] %v5447_v37 }
 0x380   : > { %1844 = vst [vmem:[#allocation4 + $0x50] sm:$0xff] %v5449_v53  ;;  %1845 = vst [vmem:[#allocation4 + $0x68] sm:$0xff] %v5451_v57 }
 0x381   : > { %1846 = vst [vmem:[#allocation4 + $0x30] sm:$0xff] %v5453_v63  ;;  %1847 = vst [vmem:[#allocation4 + $0x48] sm:$0xff] %v5455_v29 }
 0x382   : > { %1848 = vst [vmem:[#allocation4 + $0x80] sm:$0xff] %v5457_v25  ;;  %1849 = vst [vmem:[#allocation4 + $0x88] sm:$0xff] %v5459_v12 }
 0x383   : > { %1850 = vst [vmem:[#allocation4 + $0xe8] sm:$0xff] %v5461_v42  ;;  %1851 = vst [vmem:[#allocation4 + $0xb8] sm:$0xff] %v5463_v24 }
 0x384   : > { %1852 = vst [vmem:[#allocation4 + $0x60] sm:$0xff] %v5465_v36  ;;  %1853 = vst [vmem:[#allocation4 + $0xf0] sm:$0xff] %v5467_v39 }
 0x385   : > { %1854 = vst [vmem:[#allocation4 + $0x8] sm:$0xff] %v5469_v6  ;;  %1855 = vst [vmem:[#allocation4 + $0x78] sm:$0xff] %v5471_v44 }
 0x386   : > { %1856 = vst [vmem:[#allocation4 + $0x38] sm:$0xff] %v5473_v16  ;;  %1857 = vst [vmem:[#allocation4 + $0x58] sm:$0xff] %v5475_v34 }
 0x387   : > { %1858 = vst [vmem:[#allocation4 + $0x40] sm:$0xff] %v5477_v21  ;;  %1859 = vst [vmem:[#allocation4 + $0xc8] sm:$0xff] %v5479_v3 }
 0x388   : > { %1860 = vst [vmem:[#allocation4 + $0xe0] sm:$0xff] %v5481_v47  ;;  %1861 = vst [vmem:[#allocation4 + $0x90] sm:$0xff] %v5483_v45 }
 0x389   : > { %1862 = vst [vmem:[#allocation4 + $0x70] sm:$0xff] %v5485_v33  ;;  %1863 = vst [vmem:[#allocation4 + $0xc0] sm:$0xff] %v5487_v38 }
 0x38a   : > { %1864 = vst [vmem:[#allocation4 + $0xa8] sm:$0xff] %v5489_v50  ;;  %1865 = vst [vmem:[#allocation4 + $0xd0] sm:$0xff] %v5491_v51 }
 0x38b   : > { %1866 = vst [vmem:[#allocation4 + $0x10] sm:$0xff] %v5493_v4  ;;  %1867 = vst [vmem:[#allocation4 + $0x28] sm:$0xff] %v5495_v11 }
 0x38c   : > { %1868 = vst [vmem:[#allocation4 + $0xa0] sm:$0xff] %v5497_v56  ;;  %1869 = vst [vmem:[#allocation4 + $0xf8] sm:$0xff] %v5499_v23 }
 0x38d   : > { %1870 = vst [vmem:[#allocation4 + $0x20] sm:$0xff] %v5501_v1  ;;  %1871 = vst [vmem:[#allocation4 + $0x98] sm:$0xff] %v5503_v55 }
 0x38e PF: > { %1875 = sbr.rel (%p464_p0) target bundleno = 935 (0x3a7), region = 86 }
 0x393   : > { %v1878_v15 = vld [vmem:[#allocation4 + $0xd8] sm:$0xff]  ;;  %v1880_v26 = vld [vmem:[#allocation4 + $0x50] sm:$0xff]  ;;  %v1881_v30 = vld [vmem:[#allocation4 + $0x68] sm:$0xff] }
 0x394   : > { %v1910_v20 = vadd.f32 %v5445_v22, %v1878_v15  ;;  %v1879_v52 = vld [vmem:[#allocation4 + $0x18] sm:$0xff]  ;;  %v1912_v58 = vadd.f32 %v5449_v53, %v1880_v26  ;;  %v1913_v59 = vadd.f32 %v5451_v57, %v1881_v30  ;;  %v1882_v14 = vld [vmem:[#allocation4 + $0x30] sm:$0xff]  ;;  %v1883_v48 = vld [vmem:[#allocation4 + $0x48] sm:$0xff] }
 0x395   : > { %v1876_v40 = vld [vmem:[#allocation4 + $0xb0] sm:$0xff]  ;;  %v1877_v5 = vld [vmem:[#allocation4] sm:$0xff]  ;;  %v1911_v28 = vadd.f32 %v5447_v37, %v1879_v52  ;;  %v1887_v15 = vld [vmem:[#allocation4 + $0xb8] sm:$0xff] }
 0x396   : > { %v1908_v13 = vadd.f32 %v5441_v43, %v1876_v40  ;;  %v1909_v35 = vadd.f32 %v5443_v17, %v1877_v5  ;;  %v1884_v32 = vld [vmem:[#allocation4 + $0x80] sm:$0xff]  ;;  %1942 = vst [vmem:[#allocation4 + $0xd8] sm:$0xff] %v1910_v20  ;;  %v1914_v43 = vadd.f32 %v5453_v63, %v1882_v14  ;;  %v1915_v17 = vadd.f32 %v5455_v29, %v1883_v48  ;;  %v1885_v40 = vld [vmem:[#allocation4 + $0x88] sm:$0xff]  ;;  %v1891_v63 = vld [vmem:[#allocation4 + $0x78] sm:$0xff] }
 0x397   : > { %v1916_v22 = vadd.f32 %v5457_v25, %v1884_v32  ;;  %v1886_v5 = vld [vmem:[#allocation4 + $0xe8] sm:$0xff]  ;;  %1943 = vst [vmem:[#allocation4 + $0x18] sm:$0xff] %v1911_v28  ;;  %1944 = vst [vmem:[#allocation4 + $0x50] sm:$0xff] %v1912_v58  ;;  %v1917_v53 = vadd.f32 %v5459_v12, %v1885_v40  ;;  %v1919_v57 = vadd.f32 %v5463_v24, %v1887_v15  ;;  %v1893_v29 = vld [vmem:[#allocation4 + $0x58] sm:$0xff] }
 0x398   : > { %1940 = vst [vmem:[#allocation4 + $0xb0] sm:$0xff] %v1908_v13  ;;  %1941 = vst [vmem:[#allocation4] sm:$0xff] %v1909_v35  ;;  %v1918_v37 = vadd.f32 %v5461_v42, %v1886_v5  ;;  %v1888_v13 = vld [vmem:[#allocation4 + $0x60] sm:$0xff]  ;;  %v1889_v35 = vld [vmem:[#allocation4 + $0xf0] sm:$0xff]  ;;  %v1923_v25 = vadd.f32 %v5471_v44, %v1891_v63  ;;  %v1925_v42 = vadd.f32 %v5475_v34, %v1893_v29 }
 0x399   : > { %1945 = vst [vmem:[#allocation4 + $0x68] sm:$0xff] %v1913_v59  ;;  %v1890_v20 = vld [vmem:[#allocation4 + $0x8] sm:$0xff]  ;;  %1946 = vst [vmem:[#allocation4 + $0x30] sm:$0xff] %v1914_v43  ;;  %v1920_v14 = vadd.f32 %v5465_v36, %v1888_v13  ;;  %v1921_v48 = vadd.f32 %v5467_v39, %v1889_v35  ;;  %v1892_v59 = vld [vmem:[#allocation4 + $0x38] sm:$0xff] }
 0x39a   : > { %1947 = vst [vmem:[#allocation4 + $0x48] sm:$0xff] %v1915_v17  ;;  %1948 = vst [vmem:[#allocation4 + $0x80] sm:$0xff] %v1916_v22  ;;  %v1922_v32 = vadd.f32 %v5469_v6, %v1890_v20  ;;  %v1924_v12 = vadd.f32 %v5473_v16, %v1892_v59  ;;  %v1894_v24 = vld [vmem:[#allocation4 + $0x40] sm:$0xff]  ;;  %v1895_v52 = vld [vmem:[#allocation4 + $0xc8] sm:$0xff] }
 0x39b   : > { %1949 = vst [vmem:[#allocation4 + $0x88] sm:$0xff] %v1917_v53  ;;  %1950 = vst [vmem:[#allocation4 + $0xe8] sm:$0xff] %v1918_v37  ;;  %v1896_v26 = vld [vmem:[#allocation4 + $0xe0] sm:$0xff]  ;;  %v1926_v36 = vadd.f32 %v5477_v21, %v1894_v24  ;;  %v1927_v39 = vadd.f32 %v5479_v3, %v1895_v52  ;;  %v1897_v30 = vld [vmem:[#allocation4 + $0x90] sm:$0xff] }
 0x39c   : > { %1951 = vst [vmem:[#allocation4 + $0xb8] sm:$0xff] %v1919_v57  ;;  %1952 = vst [vmem:[#allocation4 + $0x60] sm:$0xff] %v1920_v14  ;;  %v1928_v6 = vadd.f32 %v5481_v47, %v1896_v26  ;;  %v1898_v28 = vld [vmem:[#allocation4 + $0x70] sm:$0xff]  ;;  %v1899_v58 = vld [vmem:[#allocation4 + $0xc0] sm:$0xff]  ;;  %v1929_v44 = vadd.f32 %v5483_v45, %v1897_v30 }
 0x39d   : > { %1953 = vst [vmem:[#allocation4 + $0xf0] sm:$0xff] %v1921_v48  ;;  %1954 = vst [vmem:[#allocation4 + $0x8] sm:$0xff] %v1922_v32  ;;  %v1930_v16 = vadd.f32 %v5485_v33, %v1898_v28  ;;  %v1931_v34 = vadd.f32 %v5487_v38, %v1899_v58  ;;  %v1900_v43 = vld [vmem:[#allocation4 + $0xa8] sm:$0xff]  ;;  %v1901_v17 = vld [vmem:[#allocation4 + $0xd0] sm:$0xff] }
 0x39e   : > { %1955 = vst [vmem:[#allocation4 + $0x78] sm:$0xff] %v1923_v25  ;;  %1956 = vst [vmem:[#allocation4 + $0x38] sm:$0xff] %v1924_v12  ;;  %v1902_v22 = vld [vmem:[#allocation4 + $0x10] sm:$0xff]  ;;  %v1932_v21 = vadd.f32 %v5489_v50, %v1900_v43  ;;  %v1933_v3 = vadd.f32 %v5491_v51, %v1901_v17  ;;  %v1903_v40 = vld [vmem:[#allocation4 + $0x28] sm:$0xff] }
 0x39f   : > { %1957 = vst [vmem:[#allocation4 + $0x58] sm:$0xff] %v1925_v42  ;;  %1958 = vst [vmem:[#allocation4 + $0x40] sm:$0xff] %v1926_v36  ;;  %v1934_v47 = vadd.f32 %v5493_v4, %v1902_v22  ;;  %v1904_v5 = vld [vmem:[#allocation4 + $0xa0] sm:$0xff]  ;;  %v1905_v15 = vld [vmem:[#allocation4 + $0xf8] sm:$0xff]  ;;  %v1935_v45 = vadd.f32 %v5495_v11, %v1903_v40 }
 0x3a0   : > { %1959 = vst [vmem:[#allocation4 + $0xc8] sm:$0xff] %v1927_v39  ;;  %1960 = vst [vmem:[#allocation4 + $0xe0] sm:$0xff] %v1928_v6  ;;  %v1936_v33 = vadd.f32 %v5497_v56, %v1904_v5  ;;  %v1937_v38 = vadd.f32 %v5499_v23, %v1905_v15  ;;  %v1906_v53 = vld [vmem:[#allocation4 + $0x20] sm:$0xff]  ;;  %v1907_v37 = vld [vmem:[#allocation4 + $0x98] sm:$0xff] }
 0x3a1   : > { %1961 = vst [vmem:[#allocation4 + $0x90] sm:$0xff] %v1929_v44  ;;  %1962 = vst [vmem:[#allocation4 + $0x70] sm:$0xff] %v1930_v16  ;;  %v1938_v50 = vadd.f32 %v5501_v1, %v1906_v53  ;;  %v1939_v51 = vadd.f32 %v5503_v55, %v1907_v37 }
 0x3a2   : > { %1963 = vst [vmem:[#allocation4 + $0xc0] sm:$0xff] %v1931_v34  ;;  %1964 = vst [vmem:[#allocation4 + $0xa8] sm:$0xff] %v1932_v21 }
 0x3a3   : > { %1965 = vst [vmem:[#allocation4 + $0xd0] sm:$0xff] %v1933_v3  ;;  %1966 = vst [vmem:[#allocation4 + $0x10] sm:$0xff] %v1934_v47 }
 0x3a4   : > { %1967 = vst [vmem:[#allocation4 + $0x28] sm:$0xff] %v1935_v45  ;;  %1968 = vst [vmem:[#allocation4 + $0xa0] sm:$0xff] %v1936_v33 }
 0x3a5   : > { %1969 = vst [vmem:[#allocation4 + $0xf8] sm:$0xff] %v1937_v38  ;;  %1970 = vst [vmem:[#allocation4 + $0x20] sm:$0xff] %v1938_v50 }
 0x3a6   : > { %1971 = vst [vmem:[#allocation4 + $0x98] sm:$0xff] %v1939_v51 }
 0x3a7 PF: > { %2004 = vxpose.xlu0.c.b16.start [1/8] %v5382_v19, 128  ;;  %1972 = vxpose.xlu1.c.b16.start [1/8] %v5318_v27, 128  ;;  %v3343_v4 = vcombine.low %v5293_v18, %v5296_v49  ;;  %v3335_v11 = vcombine.low %v5245_v46, %v5248_v10  ;;  %v3342_v56 = vcombine.low %v5287_v9, %v5290_v60  ;;  %v6517_v10 = vld [vmem:[#allocation31_spill] sm:$0xff]  ;;  %v6518_v9 = vld [vmem:[#allocation28_spill] sm:$0xff]  ;;  %v6521_v18 = vld [vmem:[#allocation17_spill] sm:$0xff]  ;;  %p3344_p5 = scmp.ne.s32.totalorder %s4461_s18, 0 }
 0x3a8   : > { %v3334_v23 = vcombine.low %v5239_v7, %v5242_v2  ;;  %v3341_v27 = vcombine.low %v5281_v54, %v5284_v8  ;;  %v3333_v46 = vcombine.low %v5233_v41, %v5236_v0  ;;  %v6519_v60 = vld [vmem:[#allocation27_spill] sm:$0xff]  ;;  %v6520_v2 = vld [vmem:[#allocation18_spill] sm:$0xff]  ;;  %v6523_v19 = vld [vmem:[#allocation33_spill] sm:$0xff]  ;;  %s5702_s26 = scalar_lea.vmem (!%p3344_p5), [#allocation5], %s4670_s8 }
 0x3a9   : > { %4034 = vmatprep.subr.bf16.mxu1 %v3343_v4  ;;  %v3340_v7 = vcombine.low %v6519_v60, %v6518_v9  ;;  %v3332_v49 = vcombine.low %v6521_v18, %v6520_v2  ;;  %v6524_v54 = vld [vmem:[#allocation26_spill] sm:$0xff]  ;;  %v6525_v8 = vld [vmem:[#allocation25_spill] sm:$0xff]  ;;  %v6526_v0 = vld [vmem:[#allocation16_spill] sm:$0xff] }
 0x3aa   : > { %4035 = vmatpush3.bf16.msra.mxu1 %v3335_v11  ;;  %v3339_v41 = vcombine.low %v6525_v8, %v6524_v54  ;;  %v6528_v1 = vld [vmem:[#allocation48_spill] sm:$0xff]  ;;  %v6529_v55 = vld [vmem:[#allocation35_spill] sm:$0xff]  ;;  %v6532_v20 = vld [vmem:[#allocation14_spill] sm:$0xff] }
 0x3ab   : > { %2005 = vxpose.xlu0.c.b16.cont [2/8] %v5390_v31, 128  ;;  %1973 = vxpose.xlu1.c.b16.cont [2/8] %v5326_v62, 128  ;;  %v6522_v62 = vld [vmem:[#allocation46_spill] sm:$0xff]  ;;  %v6527_v31 = vld [vmem:[#allocation15_spill] sm:$0xff]  ;;  %v6530_v57 = vld [vmem:[#allocation24_spill] sm:$0xff] }
 0x3ac   : > { %4036 = vmatprep.subr.bf16.mxu1 %v3342_v56  ;;  %v6531_v13 = vld [vmem:[#allocation23_spill] sm:$0xff]  ;;  %v6533_v14 = vld [vmem:[#allocation13_spill] sm:$0xff]  ;;  %v6534_v32 = vld [vmem:[#allocation50_spill] sm:$0xff] }
 0x3ad   : > { %v3338_v35 = vcombine.low %v6531_v13, %v6530_v57  ;;  %v3330_v48 = vcombine.low %v6533_v14, %v6532_v20  ;;  %v6535_v63 = vld [vmem:[#allocation37_spill] sm:$0xff]  ;;  %v6536_v59 = vld [vmem:[#allocation22_spill] sm:$0xff]  ;;  %v6538_v12 = vld [vmem:[#allocation12_spill] sm:$0xff] }
 0x3ae   : > { %4037 = vmatpush3.bf16.msra.mxu1 %v3334_v23  ;;  %v6537_v29 = vld [vmem:[#allocation21_spill] sm:$0xff]  ;;  %v6539_v42 = vld [vmem:[#allocation11_spill] sm:$0xff]  ;;  %v6540_v52 = vld [vmem:[#allocation52_spill] sm:$0xff] }
 0x3af   : > { %2006 = vxpose.xlu0.c.b16.cont [3/8] %v5398_v61, 128  ;;  %1974 = vxpose.xlu1.c.b16.cont [3/8] %v6517_v10, 128  ;;  %v3331_v61 = vcombine.low %v6527_v31, %v6526_v0  ;;  %v3337_v25 = vcombine.low %v6537_v29, %v6536_v59  ;;  %v3329_v24 = vcombine.low %v6539_v42, %v6538_v12  ;;  %v6541_v26 = vld [vmem:[#allocation39_spill] sm:$0xff]  ;;  %v6542_v36 = vld [vmem:[#allocation20_spill] sm:$0xff]  ;;  %v6544_v30 = vld [vmem:[#allocation10_spill] sm:$0xff] }
 0x3b0   : > { %4038 = vmatprep.subr.bf16.mxu1 %v3341_v27  ;;  %v6543_v39 = vld [vmem:[#allocation19_spill] sm:$0xff]  ;;  %v6545_v28 = vld [vmem:[#allocation9_spill] sm:$0xff]  ;;  %v6546_v44 = vld [vmem:[#allocation54_spill] sm:$0xff] }
 0x3b1   : > { %v3336_v6 = vcombine.low %v6543_v39, %v6542_v36  ;;  %v3328_v58 = vcombine.low %v6545_v28, %v6544_v30  ;;  %v6547_v16 = vld [vmem:[#allocation41_spill] sm:$0xff]  ;;  %v6548_v34 = vld [vmem:[#allocation42_spill] sm:$0xff]  ;;  %v6549_v43 = vld [vmem:[#allocation8_spill] sm:$0xff] }
 0x3b2   : > { %4039 = vmatpush3.bf16.msra.mxu1 %v3333_v46  ;;  %v6550_v17 = vld [vmem:[#allocation43_spill] sm:$0xff]  ;;  %v6551_v22 = vld [vmem:[#allocation29_spill] sm:$0xff]  ;;  %v6552_v21 = vld [vmem:[#allocation44_spill] sm:$0xff] }
 0x3b3   : > { %2007 = vxpose.xlu0.c.b16.cont [4/8] %v6522_v62, 128  ;;  %1975 = vxpose.xlu1.c.b16.cont [4/8] %v6523_v19, 128  ;;  %v6553_v3 = vld [vmem:[#allocation30_spill] sm:$0xff]  ;;  %v6554_v47 = vld [vmem:[#allocation45_spill] sm:$0xff]  ;;  %v6555_v40 = vld [vmem:[#allocation32_spill] sm:$0xff] }
 0x3b4   : > { %4040 = vmatprep.subr.bf16.mxu1 %v3340_v7  ;;  %v6556_v5 = vld [vmem:[#allocation47_spill] sm:$0xff]  ;;  %v6557_v15 = vld [vmem:[#allocation34_spill] sm:$0xff]  ;;  %v6558_v45 = vld [vmem:[#allocation49_spill] sm:$0xff] }
 0x3b5   : > { %v6559_v33 = vld [vmem:[#allocation36_spill] sm:$0xff]  ;;  %v6560_v38 = vld [vmem:[#allocation51_spill] sm:$0xff]  ;;  %v6561_v53 = vld [vmem:[#allocation38_spill] sm:$0xff] }
 0x3b6   : > { %4041 = vmatpush3.bf16.msra.mxu1 %v3332_v49  ;;  %v6562_v37 = vld [vmem:[#allocation53_spill] sm:$0xff]  ;;  %v6563_v50 = vld [vmem:[#allocation40_spill] sm:$0xff] }
 0x3b7   : > { %2008 = vxpose.xlu0.c.b16.cont [5/8] %v6528_v1, 128  ;;  %1976 = vxpose.xlu1.c.b16.cont [5/8] %v6529_v55, 128 }
 0x3b8   : > { %4042 = vmatprep.subr.bf16.mxu1 %v3339_v41 }
 0x3ba   : > { %4043 = vmatpush3.bf16.msra.mxu1 %v3331_v61 }
 0x3bb   : > { %2009 = vxpose.xlu0.c.b16.cont [6/8] %v6534_v32, 128  ;;  %1977 = vxpose.xlu1.c.b16.cont [6/8] %v6535_v63, 128 }
 0x3bc   : > { %4044 = vmatprep.subr.bf16.mxu1 %v3338_v35 }
 0x3be   : > { %4045 = vmatpush3.bf16.msra.mxu1 %v3330_v48 }
 0x3bf   : > { %2010 = vxpose.xlu0.c.b16.cont [7/8] %v6540_v52, 128  ;;  %1978 = vxpose.xlu1.c.b16.cont [7/8] %v6541_v26, 128 }
 0x3c0   : > { %4046 = vmatprep.subr.bf16.mxu1 %v3337_v25 }
 0x3c2   : > { %4047 = vmatpush3.bf16.msra.mxu1 %v3329_v24 }
 0x3c3   : > { %2011 = vxpose.xlu0.c.b16.end [8/8] %v6546_v44, 128  ;;  %1979 = vxpose.xlu1.c.b16.end [8/8] %v6547_v16, 128 }
 0x3c4   : > { %4048 = vmatprep.subr.bf16.mxu1 %v3336_v6 }
 0x3c6   : > { %4049 = vmatpush3.bf16.msra.mxu1 %v3328_v58 }
 0x3c7   : > { %2020 = vxpose.xlu0.c.b16.start [1/8] %v6548_v34, 128  ;;  %1988 = vxpose.xlu1.c.b16.start [1/8] %v6549_v43, 128 }
 0x3cb   : > { %2021 = vxpose.xlu0.c.b16.cont [2/8] %v6550_v17, 128  ;;  %1989 = vxpose.xlu1.c.b16.cont [2/8] %v6551_v22, 128 }
 0x3cf   : > { %2022 = vxpose.xlu0.c.b16.cont [3/8] %v6552_v21, 128  ;;  %1990 = vxpose.xlu1.c.b16.cont [3/8] %v6553_v3, 128 }
 0x3d3   : > { %2023 = vxpose.xlu0.c.b16.cont [4/8] %v6554_v47, 128  ;;  %1991 = vxpose.xlu1.c.b16.cont [4/8] %v6555_v40, 128 }
 0x3d7   : > { %2024 = vxpose.xlu0.c.b16.cont [5/8] %v6556_v5, 128  ;;  %1992 = vxpose.xlu1.c.b16.cont [5/8] %v6557_v15, 128 }
 0x3db   : > { %2025 = vxpose.xlu0.c.b16.cont [6/8] %v6558_v45, 128  ;;  %1993 = vxpose.xlu1.c.b16.cont [6/8] %v6559_v33, 128 }
 0x3df   : > { %2026 = vxpose.xlu0.c.b16.cont [7/8] %v6560_v38, 128  ;;  %1994 = vxpose.xlu1.c.b16.cont [7/8] %v6561_v53, 128 }
 0x3e3   : > { %2027 = vxpose.xlu0.c.b16.end [8/8] %v6562_v37, 128  ;;  %1995 = vxpose.xlu1.c.b16.end [8/8] %v6563_v50, 128 }
 0x409   : > { %v2012_v51 = vpop.trf.xlu0  ;;  %v1980_v4 = vpop.trf.xlu1 }
 0x40a   : > { %2164 = vmatprep.mubr.bf16.mxu1 %v2012_v51 }
 0x40b   : > { %2165 = vmatmul.mubr.bf16.vlgmr.msra.gmra.mxu1 %v1980_v4 }
 0x40d   : > { %v2013_v11 = vpop.trf.xlu0  ;;  %v1981_v56 = vpop.trf.xlu1 }
 0x40e   : > { %2172 = vmatprep.mubr.bf16.mxu1 %v2013_v11 }
 0x411   : > { %v2014_v23 = vpop.trf.xlu0  ;;  %v1982_v27 = vpop.trf.xlu1 }
 0x413   : > { %2173 = vmatmul.mubr.bf16.gmra.mxu1 %v1981_v56 }
 0x414   : > { %2180 = vmatprep.mubr.bf16.mxu1 %v2014_v23 }
 0x415   : > { %v2015_v46 = vpop.trf.xlu0  ;;  %v1983_v10 = vpop.trf.xlu1 }
 0x419   : > { %v2016_v9 = vpop.trf.xlu0  ;;  %v1984_v60 = vpop.trf.xlu1 }
 0x41b   : > { %2181 = vmatmul.mubr.bf16.gmra.mxu1 %v1982_v27 }
 0x41c   : > { %2188 = vmatprep.mubr.bf16.mxu1 %v2015_v46 }
 0x41d   : > { %v2017_v7 = vpop.trf.xlu0  ;;  %v1985_v2 = vpop.trf.xlu1 }
 0x421   : > { %v2018_v18 = vpop.trf.xlu0  ;;  %v1986_v49 = vpop.trf.xlu1 }
 0x423   : > { %2189 = vmatmul.mubr.bf16.gmra.mxu1 %v1983_v10 }
 0x424   : > { %2196 = vmatprep.mubr.bf16.mxu1 %v2016_v9 }
 0x425   : > { %v2019_v62 = vpop.trf.xlu0  ;;  %v1987_v19 = vpop.trf.xlu1 }
 0x429   : > { %v2028_v54 = vpop.trf.xlu0  ;;  %v1996_v8 = vpop.trf.xlu1 }
 0x42b   : > { %2197 = vmatmul.mubr.bf16.gmra.mxu1 %v1984_v60 }
 0x42c   : > { %2204 = vmatprep.mubr.bf16.mxu1 %v2017_v7 }
 0x42d   : > { %v2029_v41 = vpop.trf.xlu0  ;;  %v1997_v0 = vpop.trf.xlu1 }
 0x431   : > { %v2030_v31 = vpop.trf.xlu0  ;;  %v1998_v61 = vpop.trf.xlu1 }
 0x433   : > { %2205 = vmatmul.mubr.bf16.gmra.mxu1 %v1985_v2 }
 0x434   : > { %2212 = vmatprep.mubr.bf16.mxu1 %v2018_v18 }
 0x435   : > { %v2031_v1 = vpop.trf.xlu0  ;;  %v1999_v55 = vpop.trf.xlu1 }
 0x439   : > { %v2032_v57 = vpop.trf.xlu0  ;;  %v2000_v13 = vpop.trf.xlu1 }
 0x43b   : > { %2213 = vmatmul.mubr.bf16.gmra.mxu1 %v1986_v49 }
 0x43c   : > { %2220 = vmatprep.mubr.bf16.mxu1 %v2019_v62 }
 0x43d   : > { %v2033_v35 = vpop.trf.xlu0  ;;  %v2001_v20 = vpop.trf.xlu1 }
 0x441   : > { %v2034_v14 = vpop.trf.xlu0  ;;  %v2002_v48 = vpop.trf.xlu1 }
 0x443   : > { %2221 = vmatmul.mubr.bf16.gmra.mxu1 %v1987_v19 }
 0x444   : > { %2228 = vmatprep.mubr.bf16.mxu1 %v2028_v54 }
 0x445   : > { %v2035_v32 = vpop.trf.xlu0  ;;  %v2003_v63 = vpop.trf.xlu1 }
 0x44b   : > { %2229 = vmatmul.mubr.bf16.gmra.mxu1 %v1996_v8 }
 0x44c   : > { %2236 = vmatprep.mubr.bf16.mxu1 %v2029_v41 }
 0x453   : > { %2237 = vmatmul.mubr.bf16.gmra.mxu1 %v1997_v0 }
 0x454   : > { %2244 = vmatprep.mubr.bf16.mxu1 %v2030_v31 }
 0x45b   : > { %2245 = vmatmul.mubr.bf16.gmra.mxu1 %v1998_v61 }
 0x45c   : > { %2252 = vmatprep.mubr.bf16.mxu1 %v2031_v1 }
 0x463   : > { %2253 = vmatmul.mubr.bf16.gmra.mxu1 %v1999_v55 }
 0x464   : > { %2260 = vmatprep.mubr.bf16.mxu1 %v2032_v57 }
 0x46b   : > { %2261 = vmatmul.mubr.bf16.gmra.mxu1 %v2000_v13 }
 0x46c   : > { %2268 = vmatprep.mubr.bf16.mxu1 %v2033_v35 }
 0x473   : > { %2269 = vmatmul.mubr.bf16.gmra.mxu1 %v2001_v20 }
 0x474   : > { %2276 = vmatprep.mubr.bf16.mxu1 %v2034_v14 }
 0x47b   : > { %2277 = vmatmul.mubr.bf16.gmra.mxu1 %v2002_v48 }
 0x47c   : > { %2284 = vmatprep.mubr.bf16.mxu1 %v2035_v32 }
 0x483   : > { %2285 = vmatmul.mubr.bf16.gmra.mxu1 %v2003_v63 }
 0x4cb   : > { %v4050_v59 = vpop.f32.mrf.mxu1 }
 0x4cd   : > { %v4051_v29 = vpop.f32.mrf.mxu1 }
 0x4ce   : > { %v5636_v25 = vadd.f32 %v4051_v29, %v4050_v59 }
 0x4cf   : > { %v4053_v12 = vpop.f32.mrf.mxu1 }
 0x4d1   : > { %v4054_v42 = vpop.f32.mrf.mxu1 }
 0x4d2   : > { %v5638_v24 = vadd.f32 %v4054_v42, %v4053_v12 }
 0x4d3   : > { %v4056_v52 = vpop.f32.mrf.mxu1 }
 0x4d5   : > { %v4057_v26 = vpop.f32.mrf.mxu1 }
 0x4d6   : > { %v5640_v36 = vadd.f32 %v4057_v26, %v4056_v52 }
 0x4d7   : > { %v4059_v39 = vpop.f32.mrf.mxu1 }
 0x4d9   : > { %v4060_v6 = vpop.f32.mrf.mxu1 }
 0x4da   : > { %v5642_v30 = vadd.f32 %v4060_v6, %v4059_v39 }
 0x4db   : > { %v4062_v28 = vpop.f32.mrf.mxu1 }
 0x4dd   : > { %v4063_v58 = vpop.f32.mrf.mxu1 }
 0x4de   : > { %v5644_v44 = vadd.f32 %v4063_v58, %v4062_v28 }
 0x4df   : > { %v4065_v16 = vpop.f32.mrf.mxu1 }
 0x4e1   : > { %v4066_v34 = vpop.f32.mrf.mxu1 }
 0x4e2   : > { %v5646_v43 = vadd.f32 %v4066_v34, %v4065_v16 }
 0x4e3   : > { %v4068_v17 = vpop.f32.mrf.mxu1 }
 0x4e5   : > { %v4069_v22 = vpop.f32.mrf.mxu1 }
 0x4e6   : > { %v5648_v21 = vadd.f32 %v4069_v22, %v4068_v17 }
 0x4e7   : > { %v4071_v3 = vpop.f32.mrf.mxu1 }
 0x4e9   : > { %v4072_v47 = vpop.f32.mrf.mxu1 }
 0x4ea   : > { %v5650_v40 = vadd.f32 %v4072_v47, %v4071_v3 }
 0x4eb   : > { %v4074_v5 = vpop.f32.mrf.mxu1 }
 0x4ed   : > { %v4075_v15 = vpop.f32.mrf.mxu1 }
 0x4ee   : > { %v5652_v45 = vadd.f32 %v4075_v15, %v4074_v5 }
 0x4ef   : > { %v4077_v33 = vpop.f32.mrf.mxu1 }
 0x4f1   : > { %v4078_v38 = vpop.f32.mrf.mxu1 }
 0x4f2   : > { %v5654_v53 = vadd.f32 %v4078_v38, %v4077_v33 }
 0x4f3   : > { %v4080_v37 = vpop.f32.mrf.mxu1 }
 0x4f5   : > { %v4081_v50 = vpop.f32.mrf.mxu1 }
 0x4f6   : > { %v5656_v51 = vadd.f32 %v4081_v50, %v4080_v37 }
 0x4f7   : > { %v4083_v4 = vpop.f32.mrf.mxu1 }
 0x4f9   : > { %v4084_v11 = vpop.f32.mrf.mxu1 }
 0x4fa   : > { %v5658_v56 = vadd.f32 %v4084_v11, %v4083_v4 }
 0x4fb   : > { %v4086_v23 = vpop.f32.mrf.mxu1 }
 0x4fd   : > { %v4087_v27 = vpop.f32.mrf.mxu1 }
 0x4fe   : > { %v5660_v46 = vadd.f32 %v4087_v27, %v4086_v23 }
 0x4ff   : > { %v4089_v10 = vpop.f32.mrf.mxu1 }
 0x501   : > { %v4090_v9 = vpop.f32.mrf.mxu1 }
 0x502   : > { %v5662_v60 = vadd.f32 %v4090_v9, %v4089_v10 }
 0x503   : > { %v4092_v7 = vpop.f32.mrf.mxu1 }
 0x505   : > { %v4093_v2 = vpop.f32.mrf.mxu1 }
 0x506   : > { %v5664_v18 = vadd.f32 %v4093_v2, %v4092_v7 }
 0x507   : > { %v4095_v49 = vpop.f32.mrf.mxu1 }
 0x509   : > { %v4096_v62 = vpop.f32.mrf.mxu1 }
 0x50a   : > { %v5666_v19 = vadd.f32 %v4096_v62, %v4095_v49 }
 0x50b   : > { %v4098_v54 = vpop.f32.mrf.mxu1 }
 0x50d   : > { %v4099_v8 = vpop.f32.mrf.mxu1 }
 0x50e   : > { %v5668_v41 = vadd.f32 %v4099_v8, %v4098_v54 }
 0x50f   : > { %v4101_v0 = vpop.f32.mrf.mxu1 }
 0x511   : > { %v4102_v31 = vpop.f32.mrf.mxu1 }
 0x512   : > { %v5670_v61 = vadd.f32 %v4102_v31, %v4101_v0 }
 0x513   : > { %v4104_v1 = vpop.f32.mrf.mxu1 }
 0x515   : > { %v4105_v55 = vpop.f32.mrf.mxu1 }
 0x516   : > { %v5672_v57 = vadd.f32 %v4105_v55, %v4104_v1 }
 0x517   : > { %v4107_v13 = vpop.f32.mrf.mxu1 }
 0x519   : > { %v4108_v35 = vpop.f32.mrf.mxu1 }
 0x51a   : > { %v5674_v20 = vadd.f32 %v4108_v35, %v4107_v13 }
 0x51b   : > { %v4110_v14 = vpop.f32.mrf.mxu1 }
 0x51d   : > { %v4111_v48 = vpop.f32.mrf.mxu1 }
 0x51e   : > { %v5676_v32 = vadd.f32 %v4111_v48, %v4110_v14 }
 0x51f   : > { %v4113_v63 = vpop.f32.mrf.mxu1 }
 0x521   : > { %v4114_v59 = vpop.f32.mrf.mxu1 }
 0x522   : > { %v5678_v29 = vadd.f32 %v4114_v59, %v4113_v63 }
 0x523   : > { %v4116_v12 = vpop.f32.mrf.mxu1 }
 0x525   : > { %v4117_v42 = vpop.f32.mrf.mxu1 }
 0x526   : > { %v5680_v52 = vadd.f32 %v4117_v42, %v4116_v12 }
 0x527   : > { %v4119_v26 = vpop.f32.mrf.mxu1 }
 0x529   : > { %v4120_v39 = vpop.f32.mrf.mxu1 }
 0x52a   : > { %v5682_v6 = vadd.f32 %v4120_v39, %v4119_v26 }
 0x52b   : > { %v4122_v28 = vpop.f32.mrf.mxu1 }
 0x52d   : > { %v4123_v58 = vpop.f32.mrf.mxu1 }
 0x52e   : > { %v5684_v16 = vadd.f32 %v4123_v58, %v4122_v28 }
 0x52f   : > { %v4125_v34 = vpop.f32.mrf.mxu1 }
 0x531   : > { %v4126_v17 = vpop.f32.mrf.mxu1 }
 0x532   : > { %v5686_v22 = vadd.f32 %v4126_v17, %v4125_v34 }
 0x533   : > { %v4128_v3 = vpop.f32.mrf.mxu1 }
 0x535   : > { %v4129_v47 = vpop.f32.mrf.mxu1 }
 0x536   : > { %v5688_v5 = vadd.f32 %v4129_v47, %v4128_v3 }
 0x537   : > { %v4131_v15 = vpop.f32.mrf.mxu1 }
 0x539   : > { %v4132_v33 = vpop.f32.mrf.mxu1 }
 0x53a   : > { %v5690_v38 = vadd.f32 %v4132_v33, %v4131_v15 }
 0x53b   : > { %v4134_v37 = vpop.f32.mrf.mxu1 }
 0x53d   : > { %v4135_v50 = vpop.f32.mrf.mxu1 }
 0x53e   : > { %v5692_v4 = vadd.f32 %v4135_v50, %v4134_v37 }
 0x53f   : > { %v4137_v11 = vpop.f32.mrf.mxu1 }
 0x541   : > { %v4138_v23 = vpop.f32.mrf.mxu1 }
 0x542   : > { %v5694_v27 = vadd.f32 %v4138_v23, %v4137_v11 }
 0x543   : > { %v4140_v10 = vpop.f32.mrf.mxu1 }
 0x545   : > { %v4141_v9 = vpop.f32.mrf.mxu1 }
 0x546   : > { %v5696_v7 = vadd.f32 %v4141_v9, %v4140_v10  ;;  %2295 = sbr.rel (%p3344_p5) target bundleno = 1371 (0x55b), region = 90 }
 0x547   : > { %v4143_v2 = vpop.f32.mrf.mxu1 }
 0x549   : > { %v4144_v49 = vpop.f32.mrf.mxu1 }
 0x54a   : > { %v5698_v62 = vadd.f32 %v4144_v49, %v4143_v2 }
 0x54b   : > { %2297 = vst [vmem:[%s5702_s26] sm:$0xff] %v5636_v25  ;;  %2298 = vst [vmem:[%s5702_s26 + $0x8] sm:$0xff] %v5638_v24 }
 0x54c   : > { %2299 = vst [vmem:[%s5702_s26 + $0x10] sm:$0xff] %v5640_v36  ;;  %2300 = vst [vmem:[%s5702_s26 + $0x18] sm:$0xff] %v5642_v30 }
 0x54d   : > { %2301 = vst [vmem:[%s5702_s26 + $0x20] sm:$0xff] %v5644_v44  ;;  %2302 = vst [vmem:[%s5702_s26 + $0x28] sm:$0xff] %v5646_v43 }
 0x54e   : > { %2303 = vst [vmem:[%s5702_s26 + $0x30] sm:$0xff] %v5648_v21  ;;  %2304 = vst [vmem:[%s5702_s26 + $0x38] sm:$0xff] %v5650_v40 }
 0x54f   : > { %2305 = vst [vmem:[%s5702_s26 + $0x40] sm:$0xff] %v5652_v45  ;;  %2306 = vst [vmem:[%s5702_s26 + $0x48] sm:$0xff] %v5654_v53 }
 0x550   : > { %2307 = vst [vmem:[%s5702_s26 + $0x50] sm:$0xff] %v5656_v51  ;;  %2308 = vst [vmem:[%s5702_s26 + $0x58] sm:$0xff] %v5658_v56 }
 0x551   : > { %2309 = vst [vmem:[%s5702_s26 + $0x60] sm:$0xff] %v5660_v46  ;;  %2310 = vst [vmem:[%s5702_s26 + $0x68] sm:$0xff] %v5662_v60 }
 0x552   : > { %2311 = vst [vmem:[%s5702_s26 + $0x70] sm:$0xff] %v5664_v18  ;;  %2312 = vst [vmem:[%s5702_s26 + $0x78] sm:$0xff] %v5666_v19 }
 0x553   : > { %2313 = vst [vmem:[%s5702_s26 + $0x80] sm:$0xff] %v5668_v41  ;;  %2314 = vst [vmem:[%s5702_s26 + $0x88] sm:$0xff] %v5670_v61 }
 0x554   : > { %2315 = vst [vmem:[%s5702_s26 + $0x90] sm:$0xff] %v5672_v57  ;;  %2316 = vst [vmem:[%s5702_s26 + $0x98] sm:$0xff] %v5674_v20 }
 0x555   : > { %2317 = vst [vmem:[%s5702_s26 + $0xa0] sm:$0xff] %v5676_v32  ;;  %2318 = vst [vmem:[%s5702_s26 + $0xa8] sm:$0xff] %v5678_v29 }
 0x556   : > { %2319 = vst [vmem:[%s5702_s26 + $0xb0] sm:$0xff] %v5680_v52  ;;  %2320 = vst [vmem:[%s5702_s26 + $0xb8] sm:$0xff] %v5682_v6 }
 0x557   : > { %2321 = vst [vmem:[%s5702_s26 + $0xc0] sm:$0xff] %v5684_v16  ;;  %2322 = vst [vmem:[%s5702_s26 + $0xc8] sm:$0xff] %v5686_v22 }
 0x558   : > { %2323 = vst [vmem:[%s5702_s26 + $0xd0] sm:$0xff] %v5688_v5  ;;  %2324 = vst [vmem:[%s5702_s26 + $0xd8] sm:$0xff] %v5690_v38 }
 0x559   : > { %2325 = vst [vmem:[%s5702_s26 + $0xe0] sm:$0xff] %v5692_v4  ;;  %2326 = vst [vmem:[%s5702_s26 + $0xe8] sm:$0xff] %v5694_v27 }
 0x55a   : > { %2327 = vst [vmem:[%s5702_s26 + $0xf0] sm:$0xff] %v5696_v7  ;;  %2328 = vst [vmem:[%s5702_s26 + $0xf8] sm:$0xff] %v5698_v62 }
 0x55b PF: > { %2332 = sbr.rel (%p445_p12) target bundleno = 1396 (0x574), region = 94  ;;  %s5771_s12 = scalar_lea.vmem (!%p445_p12), [#allocation5], %s4670_s8 }
 0x561   : > { %v2334_v54 = vld [vmem:[%s5771_s12] sm:$0xff]  ;;  %v2335_v8 = vld [vmem:[%s5771_s12 + $0x8] sm:$0xff]  ;;  %v2336_v0 = vld [vmem:[%s5771_s12 + $0x10] sm:$0xff] }
 0x562   : > { %v2366_v31 = vadd.f32 %v5636_v25, %v2334_v54  ;;  %v2367_v1 = vadd.f32 %v5638_v24, %v2335_v8  ;;  %v2368_v55 = vadd.f32 %v5640_v36, %v2336_v0  ;;  %v2337_v13 = vld [vmem:[%s5771_s12 + $0x18] sm:$0xff]  ;;  %v2338_v35 = vld [vmem:[%s5771_s12 + $0x20] sm:$0xff]  ;;  %v2339_v14 = vld [vmem:[%s5771_s12 + $0x28] sm:$0xff] }
 0x563   : > { %v2369_v48 = vadd.f32 %v5642_v30, %v2337_v13  ;;  %v2370_v63 = vadd.f32 %v5644_v44, %v2338_v35  ;;  %v2371_v59 = vadd.f32 %v5646_v43, %v2339_v14  ;;  %v2340_v25 = vld [vmem:[%s5771_s12 + $0x30] sm:$0xff]  ;;  %v2341_v12 = vld [vmem:[%s5771_s12 + $0x38] sm:$0xff]  ;;  %v2342_v24 = vld [vmem:[%s5771_s12 + $0x40] sm:$0xff] }
 0x564   : > { %2398 = vst [vmem:[%s5771_s12] sm:$0xff] %v2366_v31  ;;  %2399 = vst [vmem:[%s5771_s12 + $0x8] sm:$0xff] %v2367_v1  ;;  %v2372_v36 = vadd.f32 %v5648_v21, %v2340_v25  ;;  %v2373_v30 = vadd.f32 %v5650_v40, %v2341_v12  ;;  %v2374_v44 = vadd.f32 %v5652_v45, %v2342_v24  ;;  %v2343_v42 = vld [vmem:[%s5771_s12 + $0x48] sm:$0xff]  ;;  %v2344_v43 = vld [vmem:[%s5771_s12 + $0x50] sm:$0xff] }
 0x565   : > { %2400 = vst [vmem:[%s5771_s12 + $0x10] sm:$0xff] %v2368_v55  ;;  %v2345_v26 = vld [vmem:[%s5771_s12 + $0x58] sm:$0xff]  ;;  %2401 = vst [vmem:[%s5771_s12 + $0x18] sm:$0xff] %v2369_v48  ;;  %v2375_v39 = vadd.f32 %v5654_v53, %v2343_v42  ;;  %v2376_v21 = vadd.f32 %v5656_v51, %v2344_v43  ;;  %v2346_v28 = vld [vmem:[%s5771_s12 + $0x60] sm:$0xff] }
 0x566   : > { %2402 = vst [vmem:[%s5771_s12 + $0x20] sm:$0xff] %v2370_v63  ;;  %2403 = vst [vmem:[%s5771_s12 + $0x28] sm:$0xff] %v2371_v59  ;;  %v2377_v40 = vadd.f32 %v5658_v56, %v2345_v26  ;;  %v2347_v45 = vld [vmem:[%s5771_s12 + $0x68] sm:$0xff]  ;;  %v2348_v58 = vld [vmem:[%s5771_s12 + $0x70] sm:$0xff]  ;;  %v2378_v34 = vadd.f32 %v5660_v46, %v2346_v28 }
 0x567   : > { %2404 = vst [vmem:[%s5771_s12 + $0x30] sm:$0xff] %v2372_v36  ;;  %2405 = vst [vmem:[%s5771_s12 + $0x38] sm:$0xff] %v2373_v30  ;;  %v2379_v53 = vadd.f32 %v5662_v60, %v2347_v45  ;;  %v2380_v51 = vadd.f32 %v5664_v18, %v2348_v58  ;;  %v2349_v17 = vld [vmem:[%s5771_s12 + $0x78] sm:$0xff]  ;;  %v2350_v56 = vld [vmem:[%s5771_s12 + $0x80] sm:$0xff] }
 0x568   : > { %2406 = vst [vmem:[%s5771_s12 + $0x40] sm:$0xff] %v2374_v44  ;;  %v2351_v3 = vld [vmem:[%s5771_s12 + $0x88] sm:$0xff]  ;;  %2407 = vst [vmem:[%s5771_s12 + $0x48] sm:$0xff] %v2375_v39  ;;  %v2381_v47 = vadd.f32 %v5666_v19, %v2349_v17  ;;  %v2382_v46 = vadd.f32 %v5668_v41, %v2350_v56  ;;  %v2352_v15 = vld [vmem:[%s5771_s12 + $0x90] sm:$0xff] }
 0x569   : > { %2408 = vst [vmem:[%s5771_s12 + $0x50] sm:$0xff] %v2376_v21  ;;  %2409 = vst [vmem:[%s5771_s12 + $0x58] sm:$0xff] %v2377_v40  ;;  %v2383_v60 = vadd.f32 %v5670_v61, %v2351_v3  ;;  %v2353_v18 = vld [vmem:[%s5771_s12 + $0x98] sm:$0xff]  ;;  %v2354_v33 = vld [vmem:[%s5771_s12 + $0xa0] sm:$0xff]  ;;  %v2384_v37 = vadd.f32 %v5672_v57, %v2352_v15 }
 0x56a   : > { %2410 = vst [vmem:[%s5771_s12 + $0x60] sm:$0xff] %v2378_v34  ;;  %2411 = vst [vmem:[%s5771_s12 + $0x68] sm:$0xff] %v2379_v53  ;;  %v2385_v19 = vadd.f32 %v5674_v20, %v2353_v18  ;;  %v2386_v41 = vadd.f32 %v5676_v32, %v2354_v33  ;;  %v2355_v50 = vld [vmem:[%s5771_s12 + $0xa8] sm:$0xff]  ;;  %v2356_v61 = vld [vmem:[%s5771_s12 + $0xb0] sm:$0xff] }
 0x56b   : > { %2412 = vst [vmem:[%s5771_s12 + $0x70] sm:$0xff] %v2380_v51  ;;  %v2357_v11 = vld [vmem:[%s5771_s12 + $0xb8] sm:$0xff]  ;;  %2413 = vst [vmem:[%s5771_s12 + $0x78] sm:$0xff] %v2381_v47  ;;  %v2387_v23 = vadd.f32 %v5678_v29, %v2355_v50  ;;  %v2388_v57 = vadd.f32 %v5680_v52, %v2356_v61  ;;  %v2358_v10 = vld [vmem:[%s5771_s12 + $0xc0] sm:$0xff] }
 0x56c   : > { %2414 = vst [vmem:[%s5771_s12 + $0x80] sm:$0xff] %v2382_v46  ;;  %2415 = vst [vmem:[%s5771_s12 + $0x88] sm:$0xff] %v2383_v60  ;;  %v2389_v20 = vadd.f32 %v5682_v6, %v2357_v11  ;;  %v2359_v32 = vld [vmem:[%s5771_s12 + $0xc8] sm:$0xff]  ;;  %v2360_v9 = vld [vmem:[%s5771_s12 + $0xd0] sm:$0xff]  ;;  %v2390_v2 = vadd.f32 %v5684_v16, %v2358_v10 }
 0x56d   : > { %2416 = vst [vmem:[%s5771_s12 + $0x90] sm:$0xff] %v2384_v37  ;;  %2417 = vst [vmem:[%s5771_s12 + $0x98] sm:$0xff] %v2385_v19  ;;  %v2391_v29 = vadd.f32 %v5686_v22, %v2359_v32  ;;  %v2392_v52 = vadd.f32 %v5688_v5, %v2360_v9  ;;  %v2361_v49 = vld [vmem:[%s5771_s12 + $0xd8] sm:$0xff]  ;;  %v2362_v6 = vld [vmem:[%s5771_s12 + $0xe0] sm:$0xff] }
 0x56e   : > { %2418 = vst [vmem:[%s5771_s12 + $0xa0] sm:$0xff] %v2386_v41  ;;  %v2363_v54 = vld [vmem:[%s5771_s12 + $0xe8] sm:$0xff]  ;;  %2419 = vst [vmem:[%s5771_s12 + $0xa8] sm:$0xff] %v2387_v23  ;;  %v2393_v8 = vadd.f32 %v5690_v38, %v2361_v49  ;;  %v2394_v16 = vadd.f32 %v5692_v4, %v2362_v6  ;;  %v2364_v22 = vld [vmem:[%s5771_s12 + $0xf0] sm:$0xff] }
 0x56f   : > { %2420 = vst [vmem:[%s5771_s12 + $0xb0] sm:$0xff] %v2388_v57  ;;  %2421 = vst [vmem:[%s5771_s12 + $0xb8] sm:$0xff] %v2389_v20  ;;  %v2395_v0 = vadd.f32 %v5694_v27, %v2363_v54  ;;  %v2365_v31 = vld [vmem:[%s5771_s12 + $0xf8] sm:$0xff]  ;;  %v2396_v5 = vadd.f32 %v5696_v7, %v2364_v22 }
 0x570   : > { %2422 = vst [vmem:[%s5771_s12 + $0xc0] sm:$0xff] %v2390_v2  ;;  %2423 = vst [vmem:[%s5771_s12 + $0xc8] sm:$0xff] %v2391_v29  ;;  %v2397_v1 = vadd.f32 %v5698_v62, %v2365_v31 }
 0x571   : > { %2424 = vst [vmem:[%s5771_s12 + $0xd0] sm:$0xff] %v2392_v52  ;;  %2425 = vst [vmem:[%s5771_s12 + $0xd8] sm:$0xff] %v2393_v8 }
 0x572   : > { %2426 = vst [vmem:[%s5771_s12 + $0xe0] sm:$0xff] %v2394_v16  ;;  %2427 = vst [vmem:[%s5771_s12 + $0xe8] sm:$0xff] %v2395_v0 }
 0x573   : > { %2428 = vst [vmem:[%s5771_s12 + $0xf0] sm:$0xff] %v2396_v5  ;;  %2429 = vst [vmem:[%s5771_s12 + $0xf8] sm:$0xff] %v2397_v1 }
 0x574 PF: > { %p2430_p6 = scmp.eq.s32.totalorder %s4465_s19, 1  ;;  %p3346_p7 = scmp.ne.s32.totalorder %s4457_s17, 2 }
 0x575   : > { %s5952_s7 = scalar_lea.vmem (!%p3346_p7), %s6437_s3, %s4656_s30 }
 0x576   : > { %s5870_s0 = scalar_select %p2430_p6, 0.33333334, 1.0 }
 0x577   : > { %2435 = sbr.rel (%p3346_p7) target bundleno = 1439 (0x59f), region = 98 }
 0x57c   : > { %v5873_v38 = vld [vmem:[#allocation4 + $0xb0] sm:$0xff]  ;;  %v5875_v4 = vld [vmem:[#allocation4] sm:$0xff]  ;;  %v5877_v27 = vld [vmem:[#allocation4 + $0xd8] sm:$0xff]  ;;  %v5987_v10 = vstv %s5870_s0 }
 0x57d   : > { %v3705_v7 = vpack.c.bf16 %v5875_v4, %v5873_v38  ;;  %v5881_v62 = vld [vmem:[#allocation4 + $0x18] sm:$0xff]  ;;  %v5883_v55 = vld [vmem:[#allocation4 + $0x50] sm:$0xff]  ;;  %v5885_v13 = vld [vmem:[#allocation4 + $0x68] sm:$0xff] }
 0x57e   : > { %v3710_v35 = vpack.c.bf16 %v5881_v62, %v5877_v27  ;;  %v3715_v14 = vpack.c.bf16 %v5885_v13, %v5883_v55  ;;  %v5891_v48 = vld [vmem:[#allocation4 + $0x30] sm:$0xff]  ;;  %v5893_v63 = vld [vmem:[#allocation4 + $0x48] sm:$0xff]  ;;  %v5895_v59 = vld [vmem:[#allocation4 + $0x80] sm:$0xff] }
 0x57f   : > { %3706 = vst [vmem:[%s5199_s10] sm:$0xff] %v3705_v7   ;;  %v3720_v25 = vpack.c.bf16 %v5893_v63, %v5891_v48  ;;  %v5900_v12 = vld [vmem:[#allocation4 + $0x88] sm:$0xff]  ;;  %v5904_v36 = vld [vmem:[#allocation4 + $0xb8] sm:$0xff]  ;;  %v5912_v42 = vld [vmem:[#allocation4 + $0x60] sm:$0xff] }
 0x580   : > { %v5902_v24 = vld [vmem:[#allocation4 + $0xe8] sm:$0xff]  ;;  %3892 = vst [vmem:[%s5199_s10 + $0x8] sm:$0xff] %v3710_v35   ;;  %3893 = vst [vmem:[%s5199_s10 + $0x10] sm:$0xff] %v3715_v14   ;;  %v3725_v30 = vpack.c.bf16 %v5900_v12, %v5895_v59  ;;  %v5914_v43 = vld [vmem:[#allocation4 + $0xf0] sm:$0xff] }
 0x581   : > { %v3730_v44 = vpack.c.bf16 %v5904_v36, %v5902_v24  ;;  %v5916_v26 = vld [vmem:[#allocation4 + $0x8] sm:$0xff]  ;;  %3894 = vst [vmem:[%s5199_s10 + $0x18] sm:$0xff] %v3720_v25   ;;  %v3735_v39 = vpack.c.bf16 %v5914_v43, %v5912_v42  ;;  %v5921_v21 = vld [vmem:[#allocation4 + $0x78] sm:$0xff]  ;;  %v5933_v34 = vld [vmem:[#allocation4 + $0x40] sm:$0xff] }
 0x582   : > { %v5923_v40 = vld [vmem:[#allocation4 + $0x38] sm:$0xff]  ;;  %3895 = vst [vmem:[%s5199_s10 + $0x20] sm:$0xff] %v3725_v30   ;;  %v3740_v45 = vpack.c.bf16 %v5921_v21, %v5916_v26  ;;  %v5935_v53 = vld [vmem:[#allocation4 + $0xc8] sm:$0xff]  ;;  %v5937_v51 = vld [vmem:[#allocation4 + $0xe0] sm:$0xff] }
 0x583   : > { %v5925_v28 = vld [vmem:[#allocation4 + $0x58] sm:$0xff]  ;;  %3896 = vst [vmem:[%s5199_s10 + $0x28] sm:$0xff] %v3730_v44   ;;  %3897 = vst [vmem:[%s5199_s10 + $0x30] sm:$0xff] %v3735_v39   ;;  %v3750_v17 = vpack.c.bf16 %v5935_v53, %v5933_v34  ;;  %v5942_v56 = vld [vmem:[#allocation4 + $0x90] sm:$0xff] }
 0x584   : > { %v3745_v58 = vpack.c.bf16 %v5925_v28, %v5923_v40  ;;  %v5944_v3 = vld [vmem:[#allocation4 + $0x70] sm:$0xff]  ;;  %v5946_v47 = vld [vmem:[#allocation4 + $0xc0] sm:$0xff]  ;;  %3898 = vst [vmem:[%s5199_s10 + $0x38] sm:$0xff] %v3740_v45   ;;  %v3755_v46 = vpack.c.bf16 %v5942_v56, %v5937_v51  ;;  %v5960_v15 = vld [vmem:[#allocation4 + $0xa8] sm:$0xff] }
 0x585   : > { %v3760_v60 = vpack.c.bf16 %v5946_v47, %v5944_v3  ;;  %v5962_v18 = vld [vmem:[#allocation4 + $0xd0] sm:$0xff]  ;;  %3900 = vst [vmem:[%s5199_s10 + $0x48] sm:$0xff] %v3750_v17   ;;  %v5969_v19 = vld [vmem:[#allocation4 + $0x28] sm:$0xff]  ;;  %v5971_v41 = vld [vmem:[#allocation4 + $0xa0] sm:$0xff] }
 0x586   : > { %3899 = vst [vmem:[%s5199_s10 + $0x40] sm:$0xff] %v3745_v58   ;;  %v5964_v33 = vld [vmem:[#allocation4 + $0x10] sm:$0xff]  ;;  %v3765_v37 = vpack.c.bf16 %v5962_v18, %v5960_v15  ;;  %v5973_v50 = vld [vmem:[#allocation4 + $0xf8] sm:$0xff]  ;;  %3901 = vst [vmem:[%s5199_s10 + $0x50] sm:$0xff] %v3755_v46  }
 0x587   : > { %3902 = vst [vmem:[%s5199_s10 + $0x58] sm:$0xff] %v3760_v60   ;;  %v3770_v61 = vpack.c.bf16 %v5969_v19, %v5964_v33  ;;  %v3775_v11 = vpack.c.bf16 %v5973_v50, %v5971_v41  ;;  %v5981_v23 = vld [vmem:[#allocation4 + $0x20] sm:$0xff]  ;;  %v5983_v57 = vld [vmem:[#allocation4 + $0x98] sm:$0xff]  ;;  %v2630_v2 = vld [vmem:[%s5952_s7 + $0x8] sm:$0xff] }
 0x588   : > { %v2629_v20 = vld [vmem:[%s5952_s7] sm:$0xff]  ;;  %3903 = vst [vmem:[%s5199_s10 + $0x60] sm:$0xff] %v3765_v37   ;;  %v3780_v32 = vpack.c.bf16 %v5983_v57, %v5981_v23  ;;  %v2631_v29 = vld [vmem:[%s5952_s7 + $0x10] sm:$0xff]  ;;  %v2632_v52 = vld [vmem:[%s5952_s7 + $0x18] sm:$0xff]  ;;  %v2662_v49 = vadd.f32 %v2630_v2, %v5875_v4 }
 0x589   : > { %v2661_v9 = vadd.f32 %v2629_v20, %v5873_v38  ;;  %3904 = vst [vmem:[%s5199_s10 + $0x68] sm:$0xff] %v3770_v61   ;;  %3905 = vst [vmem:[%s5199_s10 + $0x70] sm:$0xff] %v3775_v11   ;;  %v2663_v6 = vadd.f32 %v2631_v29, %v5877_v27  ;;  %v2664_v54 = vadd.f32 %v2632_v52, %v5881_v62  ;;  %v2633_v8 = vld [vmem:[%s5952_s7 + $0x20] sm:$0xff]  ;;  %v2634_v16 = vld [vmem:[%s5952_s7 + $0x28] sm:$0xff] }
 0x58a   : > { %v2635_v0 = vld [vmem:[%s5952_s7 + $0x30] sm:$0xff]  ;;  %3906 = vst [vmem:[%s5199_s10 + $0x78] sm:$0xff] %v3780_v32   ;;  %v2665_v31 = vadd.f32 %v2633_v8, %v5883_v55  ;;  %v2666_v5 = vadd.f32 %v2634_v16, %v5885_v13  ;;  %v2636_v38 = vld [vmem:[%s5952_s7 + $0x38] sm:$0xff]  ;;  %v2637_v4 = vld [vmem:[%s5952_s7 + $0x40] sm:$0xff]  ;;  %v2695_v7 = vmul.f32 %v5987_v10, %v2662_v49 }
 0x58b   : > { %v2694_v22 = vmul.f32 %v5987_v10, %v2661_v9  ;;  %v2667_v1 = vadd.f32 %v2635_v0, %v5891_v48  ;;  %v2638_v27 = vld [vmem:[%s5952_s7 + $0x48] sm:$0xff]  ;;  %v2696_v62 = vmul.f32 %v5987_v10, %v2663_v6  ;;  %v2697_v35 = vmul.f32 %v5987_v10, %v2664_v54  ;;  %v2639_v13 = vld [vmem:[%s5952_s7 + $0x50] sm:$0xff]  ;;  %v2640_v14 = vld [vmem:[%s5952_s7 + $0x58] sm:$0xff] }
 0x58c   : > { %v2668_v55 = vadd.f32 %v2636_v38, %v5893_v63  ;;  %v2641_v48 = vld [vmem:[%s5952_s7 + $0x60] sm:$0xff]  ;;  %v2698_v25 = vmul.f32 %v5987_v10, %v2665_v31  ;;  %v2699_v30 = vmul.f32 %v5987_v10, %v2666_v5  ;;  %v2669_v39 = vadd.f32 %v2637_v4, %v5895_v59  ;;  %v2642_v45 = vld [vmem:[%s5952_s7 + $0x68] sm:$0xff]  ;;  %v2643_v58 = vld [vmem:[%s5952_s7 + $0x70] sm:$0xff]  ;;  %2727 = vst [vmem:[%s5952_s7 + $0x8] sm:$0xff] %v2695_v7 }
 0x58d   : > { %2726 = vst [vmem:[%s5952_s7] sm:$0xff] %v2694_v22  ;;  %v2700_v44 = vmul.f32 %v5987_v10, %v2667_v1  ;;  %v2644_v17 = vld [vmem:[%s5952_s7 + $0x78] sm:$0xff]  ;;  %2728 = vst [vmem:[%s5952_s7 + $0x10] sm:$0xff] %v2696_v62  ;;  %v2670_v46 = vadd.f32 %v2638_v27, %v5900_v12  ;;  %v2671_v60 = vadd.f32 %v2639_v13, %v5902_v24  ;;  %v2645_v61 = vld [vmem:[%s5952_s7 + $0x80] sm:$0xff] }
 0x58e   : > { %2729 = vst [vmem:[%s5952_s7 + $0x18] sm:$0xff] %v2697_v35  ;;  %v2701_v63 = vmul.f32 %v5987_v10, %v2668_v55  ;;  %v2672_v37 = vadd.f32 %v2640_v14, %v5904_v36  ;;  %2730 = vst [vmem:[%s5952_s7 + $0x20] sm:$0xff] %v2698_v25  ;;  %v2702_v59 = vmul.f32 %v5987_v10, %v2669_v39  ;;  %v2646_v32 = vld [vmem:[%s5952_s7 + $0x88] sm:$0xff]  ;;  %v2647_v24 = vld [vmem:[%s5952_s7 + $0x90] sm:$0xff] }
 0x58f   : > { %2731 = vst [vmem:[%s5952_s7 + $0x28] sm:$0xff] %v2699_v30  ;;  %2732 = vst [vmem:[%s5952_s7 + $0x30] sm:$0xff] %v2700_v44  ;;  %v2673_v11 = vadd.f32 %v2641_v48, %v5912_v42  ;;  %v2674_v20 = vadd.f32 %v2642_v45, %v5914_v43  ;;  %v2675_v12 = vadd.f32 %v2643_v58, %v5916_v26  ;;  %v2648_v36 = vld [vmem:[%s5952_s7 + $0x98] sm:$0xff]  ;;  %v2649_v52 = vld [vmem:[%s5952_s7 + $0xa0] sm:$0xff] }
 0x590   : > { %2733 = vst [vmem:[%s5952_s7 + $0x38] sm:$0xff] %v2701_v63  ;;  %v2703_v9 = vmul.f32 %v5987_v10, %v2670_v46  ;;  %v2704_v2 = vmul.f32 %v5987_v10, %v2671_v60  ;;  %v2705_v29 = vmul.f32 %v5987_v10, %v2672_v37  ;;  %v2676_v42 = vadd.f32 %v2644_v17, %v5921_v21  ;;  %v2650_v43 = vld [vmem:[%s5952_s7 + $0xa8] sm:$0xff]  ;;  %v2651_v26 = vld [vmem:[%s5952_s7 + $0xb0] sm:$0xff]  ;;  %v2652_v16 = vld [vmem:[%s5952_s7 + $0xb8] sm:$0xff] }
 0x591   : > { %2734 = vst [vmem:[%s5952_s7 + $0x40] sm:$0xff] %v2702_v59  ;;  %v2706_v49 = vmul.f32 %v5987_v10, %v2673_v11  ;;  %v2707_v6 = vmul.f32 %v5987_v10, %v2674_v20  ;;  %v2708_v54 = vmul.f32 %v5987_v10, %v2675_v12  ;;  %v2677_v8 = vadd.f32 %v2645_v61, %v5923_v40  ;;  %v2653_v5 = vld [vmem:[%s5952_s7 + $0xc0] sm:$0xff]  ;;  %v2654_v4 = vld [vmem:[%s5952_s7 + $0xc8] sm:$0xff]  ;;  %v2660_v25 = vld [vmem:[%s5952_s7 + $0xf8] sm:$0xff] }
 0x592   : > { %2735 = vst [vmem:[%s5952_s7 + $0x48] sm:$0xff] %v2703_v9  ;;  %2736 = vst [vmem:[%s5952_s7 + $0x50] sm:$0xff] %v2704_v2  ;;  %v2709_v21 = vmul.f32 %v5987_v10, %v2676_v42  ;;  %v2678_v0 = vadd.f32 %v2646_v32, %v5925_v28  ;;  %v2679_v22 = vadd.f32 %v2647_v24, %v5933_v34  ;;  %v2655_v34 = vld [vmem:[%s5952_s7 + $0xd0] sm:$0xff]  ;;  %v2657_v35 = vld [vmem:[%s5952_s7 + $0xe0] sm:$0xff] }
 0x593   : > { %2737 = vst [vmem:[%s5952_s7 + $0x58] sm:$0xff] %v2705_v29  ;;  %v2680_v31 = vadd.f32 %v2648_v36, %v5935_v53  ;;  %2738 = vst [vmem:[%s5952_s7 + $0x60] sm:$0xff] %v2706_v49  ;;  %v2710_v40 = vmul.f32 %v5987_v10, %v2677_v8  ;;  %v2681_v1 = vadd.f32 %v2649_v52, %v5937_v51  ;;  %v2656_v53 = vld [vmem:[%s5952_s7 + $0xd8] sm:$0xff] }
 0x594   : > { %2739 = vst [vmem:[%s5952_s7 + $0x68] sm:$0xff] %v2707_v6  ;;  %2740 = vst [vmem:[%s5952_s7 + $0x70] sm:$0xff] %v2708_v54  ;;  %v2682_v38 = vadd.f32 %v2650_v43, %v5942_v56  ;;  %v2683_v28 = vadd.f32 %v2651_v26, %v5944_v3  ;;  %v2711_v27 = vmul.f32 %v5987_v10, %v2678_v0  ;;  %v2658_v56 = vld [vmem:[%s5952_s7 + $0xe8] sm:$0xff]  ;;  %v2659_v3 = vld [vmem:[%s5952_s7 + $0xf0] sm:$0xff] }
 0x595   : > { %2741 = vst [vmem:[%s5952_s7 + $0x78] sm:$0xff] %v2709_v21  ;;  %v2712_v7 = vmul.f32 %v5987_v10, %v2679_v22  ;;  %v2713_v62 = vmul.f32 %v5987_v10, %v2680_v31  ;;  %v2684_v51 = vadd.f32 %v2652_v16, %v5946_v47  ;;  %2742 = vst [vmem:[%s5952_s7 + $0x80] sm:$0xff] %v2710_v40 }
 0x596   : > { %v2714_v55 = vmul.f32 %v5987_v10, %v2681_v1  ;;  %v2715_v13 = vmul.f32 %v5987_v10, %v2682_v38  ;;  %v2716_v14 = vmul.f32 %v5987_v10, %v2683_v28  ;;  %v2685_v48 = vadd.f32 %v2653_v5, %v5960_v15  ;;  %2743 = vst [vmem:[%s5952_s7 + $0x88] sm:$0xff] %v2711_v27 }
 0x597   : > { %2744 = vst [vmem:[%s5952_s7 + $0x90] sm:$0xff] %v2712_v7  ;;  %2745 = vst [vmem:[%s5952_s7 + $0x98] sm:$0xff] %v2713_v62  ;;  %v2717_v47 = vmul.f32 %v5987_v10, %v2684_v51  ;;  %v2686_v30 = vadd.f32 %v2654_v4, %v5962_v18  ;;  %v2687_v44 = vadd.f32 %v2655_v34, %v5964_v33 }
 0x598   : > { %v2688_v39 = vadd.f32 %v2656_v53, %v5969_v19  ;;  %2746 = vst [vmem:[%s5952_s7 + $0xa0] sm:$0xff] %v2714_v55  ;;  %2747 = vst [vmem:[%s5952_s7 + $0xa8] sm:$0xff] %v2715_v13  ;;  %v2718_v15 = vmul.f32 %v5987_v10, %v2685_v48  ;;  %v2689_v45 = vadd.f32 %v2657_v35, %v5971_v41 }
 0x599   : > { %2748 = vst [vmem:[%s5952_s7 + $0xb0] sm:$0xff] %v2716_v14  ;;  %v2690_v58 = vadd.f32 %v2658_v56, %v5973_v50  ;;  %v2691_v18 = vadd.f32 %v2659_v3, %v5981_v23  ;;  %2749 = vst [vmem:[%s5952_s7 + $0xb8] sm:$0xff] %v2717_v47  ;;  %v2719_v33 = vmul.f32 %v5987_v10, %v2686_v30 }
 0x59a   : > { %v2720_v19 = vmul.f32 %v5987_v10, %v2687_v44  ;;  %v2721_v17 = vmul.f32 %v5987_v10, %v2688_v39  ;;  %v2692_v63 = vadd.f32 %v2660_v25, %v5983_v57  ;;  %2750 = vst [vmem:[%s5952_s7 + $0xc0] sm:$0xff] %v2718_v15  ;;  %v2722_v41 = vmul.f32 %v5987_v10, %v2689_v45 }
 0x59b   : > { %v2723_v46 = vmul.f32 %v5987_v10, %v2690_v58  ;;  %v2724_v50 = vmul.f32 %v5987_v10, %v2691_v18  ;;  %2751 = vst [vmem:[%s5952_s7 + $0xc8] sm:$0xff] %v2719_v33 }
 0x59c   : > { %2752 = vst [vmem:[%s5952_s7 + $0xd0] sm:$0xff] %v2720_v19  ;;  %2753 = vst [vmem:[%s5952_s7 + $0xd8] sm:$0xff] %v2721_v17  ;;  %v2725_v23 = vmul.f32 %v5987_v10, %v2692_v63 }
 0x59d   : > { %2754 = vst [vmem:[%s5952_s7 + $0xe0] sm:$0xff] %v2722_v41  ;;  %2755 = vst [vmem:[%s5952_s7 + $0xe8] sm:$0xff] %v2723_v46 }
 0x59e   : > { %2756 = vst [vmem:[%s5952_s7 + $0xf0] sm:$0xff] %v2724_v50  ;;  %2757 = vst [vmem:[%s5952_s7 + $0xf8] sm:$0xff] %v2725_v23 }
 0x59f PF: > { %p3379_p8 = scmp.ne.s32.totalorder %s4461_s18, 1 }
 0x5a0   : > { %s6124_s30 = scalar_lea.vmem (!%p3379_p8), [#allocation5], %s4670_s8  ;;  %s6229_s14 = scalar_lea.vmem (!%p3379_p8), %s6438_s4, %s4670_s8 }
 0x5a1   : > { %2761 = sbr.rel (%p3379_p8) target bundleno = 1481 (0x5c9), region = 102 }
 0x5a6   : > { %v6127_v57 = vld [vmem:[%s6124_s30] sm:$0xff]  ;;  %v6130_v10 = vld [vmem:[%s6124_s30 + $0x8] sm:$0xff]  ;;  %v6133_v60 = vld [vmem:[%s6124_s30 + $0x10] sm:$0xff]  ;;  %v6272_v47 = vstv %s5870_s0 }
 0x5a7   : > { %v3785_v37 = vpack.c.bf16 %v6130_v10, %v6127_v57  ;;  %v6138_v61 = vld [vmem:[%s6124_s30 + $0x18] sm:$0xff]  ;;  %v6141_v59 = vld [vmem:[%s6124_s30 + $0x20] sm:$0xff]  ;;  %v6144_v11 = vld [vmem:[%s6124_s30 + $0x28] sm:$0xff] }
 0x5a8   : > { %v3790_v20 = vpack.c.bf16 %v6138_v61, %v6133_v60  ;;  %v3795_v12 = vpack.c.bf16 %v6144_v11, %v6141_v59  ;;  %v6151_v32 = vld [vmem:[%s6124_s30 + $0x30] sm:$0xff]  ;;  %v6154_v24 = vld [vmem:[%s6124_s30 + $0x38] sm:$0xff]  ;;  %v6157_v36 = vld [vmem:[%s6124_s30 + $0x40] sm:$0xff] }
 0x5a9   : > { %3786 = vst [vmem:[%s5299_s11] sm:$0xff] %v3785_v37   ;;  %v3800_v9 = vpack.c.bf16 %v6154_v24, %v6151_v32  ;;  %v6163_v2 = vld [vmem:[%s6124_s30 + $0x48] sm:$0xff]  ;;  %v6166_v29 = vld [vmem:[%s6124_s30 + $0x50] sm:$0xff]  ;;  %v6169_v42 = vld [vmem:[%s6124_s30 + $0x58] sm:$0xff] }
 0x5aa   : > { %3907 = vst [vmem:[%s5299_s11 + $0x8] sm:$0xff] %v3790_v20   ;;  %3908 = vst [vmem:[%s5299_s11 + $0x10] sm:$0xff] %v3795_v12   ;;  %v3805_v52 = vpack.c.bf16 %v6163_v2, %v6157_v36  ;;  %v3810_v43 = vpack.c.bf16 %v6169_v42, %v6166_v29  ;;  %v6178_v26 = vld [vmem:[%s6124_s30 + $0x60] sm:$0xff]  ;;  %v6181_v49 = vld [vmem:[%s6124_s30 + $0x68] sm:$0xff] }
 0x5ab   : > { %v6184_v6 = vld [vmem:[%s6124_s30 + $0x70] sm:$0xff]  ;;  %3909 = vst [vmem:[%s5299_s11 + $0x18] sm:$0xff] %v3800_v9   ;;  %v3815_v54 = vpack.c.bf16 %v6181_v49, %v6178_v26  ;;  %v6190_v8 = vld [vmem:[%s6124_s30 + $0x78] sm:$0xff]  ;;  %v6193_v16 = vld [vmem:[%s6124_s30 + $0x80] sm:$0xff] }
 0x5ac   : > { %v6196_v21 = vld [vmem:[%s6124_s30 + $0x88] sm:$0xff]  ;;  %3910 = vst [vmem:[%s5299_s11 + $0x20] sm:$0xff] %v3805_v52   ;;  %3911 = vst [vmem:[%s5299_s11 + $0x28] sm:$0xff] %v3810_v43   ;;  %v3820_v0 = vpack.c.bf16 %v6190_v8, %v6184_v6  ;;  %v6205_v31 = vld [vmem:[%s6124_s30 + $0x90] sm:$0xff] }
 0x5ad   : > { %v3825_v22 = vpack.c.bf16 %v6196_v21, %v6193_v16  ;;  %v6208_v5 = vld [vmem:[%s6124_s30 + $0x98] sm:$0xff]  ;;  %v6211_v40 = vld [vmem:[%s6124_s30 + $0xa0] sm:$0xff]  ;;  %3912 = vst [vmem:[%s5299_s11 + $0x30] sm:$0xff] %v3815_v54   ;;  %v6217_v38 = vld [vmem:[%s6124_s30 + $0xa8] sm:$0xff] }
 0x5ae   : > { %v3830_v1 = vpack.c.bf16 %v6208_v5, %v6205_v31  ;;  %v6220_v28 = vld [vmem:[%s6124_s30 + $0xb0] sm:$0xff]  ;;  %v6223_v4 = vld [vmem:[%s6124_s30 + $0xb8] sm:$0xff]  ;;  %3913 = vst [vmem:[%s5299_s11 + $0x38] sm:$0xff] %v3820_v0   ;;  %v3835_v34 = vpack.c.bf16 %v6217_v38, %v6211_v40  ;;  %v6238_v27 = vld [vmem:[%s6124_s30 + $0xc0] sm:$0xff] }
 0x5af   : > { %3914 = vst [vmem:[%s5299_s11 + $0x40] sm:$0xff] %v3825_v22   ;;  %v3840_v53 = vpack.c.bf16 %v6223_v4, %v6220_v28  ;;  %v6241_v7 = vld [vmem:[%s6124_s30 + $0xc8] sm:$0xff]  ;;  %v6244_v62 = vld [vmem:[%s6124_s30 + $0xd0] sm:$0xff]  ;;  %v6250_v35 = vld [vmem:[%s6124_s30 + $0xd8] sm:$0xff] }
 0x5b0   : > { %3915 = vst [vmem:[%s5299_s11 + $0x48] sm:$0xff] %v3830_v1   ;;  %v3845_v51 = vpack.c.bf16 %v6241_v7, %v6238_v27  ;;  %v6253_v56 = vld [vmem:[%s6124_s30 + $0xe0] sm:$0xff]  ;;  %v6256_v3 = vld [vmem:[%s6124_s30 + $0xe8] sm:$0xff]  ;;  %3916 = vst [vmem:[%s5299_s11 + $0x50] sm:$0xff] %v3835_v34   ;;  %v3850_v55 = vpack.c.bf16 %v6250_v35, %v6244_v62 }
 0x5b1   : > { %3917 = vst [vmem:[%s5299_s11 + $0x58] sm:$0xff] %v3840_v53   ;;  %v3855_v13 = vpack.c.bf16 %v6256_v3, %v6253_v56  ;;  %v6265_v14 = vld [vmem:[%s6124_s30 + $0xf0] sm:$0xff]  ;;  %v6268_v48 = vld [vmem:[%s6124_s30 + $0xf8] sm:$0xff]  ;;  %v2956_v25 = vld [vmem:[%s6229_s14] sm:$0xff] }
 0x5b2   : > { %3918 = vst [vmem:[%s5299_s11 + $0x60] sm:$0xff] %v3845_v51   ;;  %v3860_v30 = vpack.c.bf16 %v6268_v48, %v6265_v14  ;;  %v2988_v44 = vadd.f32 %v2956_v25, %v6127_v57  ;;  %v2957_v39 = vld [vmem:[%s6229_s14 + $0x8] sm:$0xff]  ;;  %v2958_v15 = vld [vmem:[%s6229_s14 + $0x10] sm:$0xff]  ;;  %v2959_v45 = vld [vmem:[%s6229_s14 + $0x18] sm:$0xff] }
 0x5b3   : > { %3919 = vst [vmem:[%s5299_s11 + $0x68] sm:$0xff] %v3850_v55   ;;  %3920 = vst [vmem:[%s5299_s11 + $0x70] sm:$0xff] %v3855_v13   ;;  %v2989_v58 = vadd.f32 %v2957_v39, %v6130_v10  ;;  %v2990_v18 = vadd.f32 %v2958_v15, %v6133_v60  ;;  %v2991_v33 = vadd.f32 %v2959_v45, %v6138_v61  ;;  %v2960_v19 = vld [vmem:[%s6229_s14 + $0x20] sm:$0xff]  ;;  %v2961_v17 = vld [vmem:[%s6229_s14 + $0x28] sm:$0xff] }
 0x5b4   : > { %v2962_v63 = vld [vmem:[%s6229_s14 + $0x30] sm:$0xff]  ;;  %3921 = vst [vmem:[%s5299_s11 + $0x78] sm:$0xff] %v3860_v30   ;;  %v3021_v41 = vmul.f32 %v6272_v47, %v2988_v44  ;;  %v2992_v46 = vadd.f32 %v2960_v19, %v6141_v59  ;;  %v2993_v50 = vadd.f32 %v2961_v17, %v6144_v11  ;;  %v2963_v57 = vld [vmem:[%s6229_s14 + $0x38] sm:$0xff]  ;;  %v2964_v10 = vld [vmem:[%s6229_s14 + $0x40] sm:$0xff] }
 0x5b5   : > { %v2994_v23 = vadd.f32 %v2962_v63, %v6151_v32  ;;  %v2965_v60 = vld [vmem:[%s6229_s14 + $0x48] sm:$0xff]  ;;  %v3022_v37 = vmul.f32 %v6272_v47, %v2989_v58  ;;  %v3023_v61 = vmul.f32 %v6272_v47, %v2990_v18  ;;  %v3024_v20 = vmul.f32 %v6272_v47, %v2991_v33  ;;  %v2966_v11 = vld [vmem:[%s6229_s14 + $0x50] sm:$0xff]  ;;  %v2967_v12 = vld [vmem:[%s6229_s14 + $0x58] sm:$0xff] }
 0x5b6   : > { %v2995_v59 = vadd.f32 %v2963_v57, %v6154_v24  ;;  %v2968_v32 = vld [vmem:[%s6229_s14 + $0x60] sm:$0xff]  ;;  %3053 = vst [vmem:[%s6229_s14] sm:$0xff] %v3021_v41  ;;  %v3025_v9 = vmul.f32 %v6272_v47, %v2992_v46  ;;  %v3026_v52 = vmul.f32 %v6272_v47, %v2993_v50  ;;  %v2996_v54 = vadd.f32 %v2964_v10, %v6157_v36  ;;  %v2969_v0 = vld [vmem:[%s6229_s14 + $0x68] sm:$0xff]  ;;  %v2970_v22 = vld [vmem:[%s6229_s14 + $0x70] sm:$0xff] }
 0x5b7   : > { %v3027_v43 = vmul.f32 %v6272_v47, %v2994_v23  ;;  %v2971_v1 = vld [vmem:[%s6229_s14 + $0x78] sm:$0xff]  ;;  %3054 = vst [vmem:[%s6229_s14 + $0x8] sm:$0xff] %v3022_v37  ;;  %3055 = vst [vmem:[%s6229_s14 + $0x10] sm:$0xff] %v3023_v61  ;;  %v2997_v34 = vadd.f32 %v2965_v60, %v6163_v2  ;;  %v2998_v53 = vadd.f32 %v2966_v11, %v6166_v29  ;;  %v2972_v55 = vld [vmem:[%s6229_s14 + $0x80] sm:$0xff] }
 0x5b8   : > { %3056 = vst [vmem:[%s6229_s14 + $0x18] sm:$0xff] %v3024_v20  ;;  %v3028_v24 = vmul.f32 %v6272_v47, %v2995_v59  ;;  %v2999_v51 = vadd.f32 %v2967_v12, %v6169_v42  ;;  %3057 = vst [vmem:[%s6229_s14 + $0x20] sm:$0xff] %v3025_v9  ;;  %v3029_v36 = vmul.f32 %v6272_v47, %v2996_v54  ;;  %v2973_v30 = vld [vmem:[%s6229_s14 + $0x88] sm:$0xff]  ;;  %v2974_v29 = vld [vmem:[%s6229_s14 + $0x90] sm:$0xff] }
 0x5b9   : > { %3058 = vst [vmem:[%s6229_s14 + $0x28] sm:$0xff] %v3026_v52  ;;  %3059 = vst [vmem:[%s6229_s14 + $0x30] sm:$0xff] %v3027_v43  ;;  %v3000_v13 = vadd.f32 %v2968_v32, %v6178_v26  ;;  %v3001_v25 = vadd.f32 %v2969_v0, %v6181_v49  ;;  %v3002_v2 = vadd.f32 %v2970_v22, %v6184_v6  ;;  %v2975_v42 = vld [vmem:[%s6229_s14 + $0x98] sm:$0xff]  ;;  %v2976_v45 = vld [vmem:[%s6229_s14 + $0xa0] sm:$0xff] }
 0x5ba   : > { %3060 = vst [vmem:[%s6229_s14 + $0x38] sm:$0xff] %v3028_v24  ;;  %v3030_v44 = vmul.f32 %v6272_v47, %v2997_v34  ;;  %v3031_v39 = vmul.f32 %v6272_v47, %v2998_v53  ;;  %v3032_v15 = vmul.f32 %v6272_v47, %v2999_v51  ;;  %v3003_v26 = vadd.f32 %v2971_v1, %v6190_v8  ;;  %v2977_v49 = vld [vmem:[%s6229_s14 + $0xa8] sm:$0xff]  ;;  %v2978_v6 = vld [vmem:[%s6229_s14 + $0xb0] sm:$0xff]  ;;  %v2979_v17 = vld [vmem:[%s6229_s14 + $0xb8] sm:$0xff] }
 0x5bb   : > { %3061 = vst [vmem:[%s6229_s14 + $0x40] sm:$0xff] %v3029_v36  ;;  %v3033_v58 = vmul.f32 %v6272_v47, %v3000_v13  ;;  %v3034_v18 = vmul.f32 %v6272_v47, %v3001_v25  ;;  %v3035_v33 = vmul.f32 %v6272_v47, %v3002_v2  ;;  %v3004_v19 = vadd.f32 %v2972_v55, %v6193_v16  ;;  %v2980_v50 = vld [vmem:[%s6229_s14 + $0xc0] sm:$0xff]  ;;  %v2981_v10 = vld [vmem:[%s6229_s14 + $0xc8] sm:$0xff]  ;;  %v2987_v9 = vld [vmem:[%s6229_s14 + $0xf8] sm:$0xff] }
 0x5bc   : > { %3062 = vst [vmem:[%s6229_s14 + $0x48] sm:$0xff] %v3030_v44  ;;  %3063 = vst [vmem:[%s6229_s14 + $0x50] sm:$0xff] %v3031_v39  ;;  %v3036_v8 = vmul.f32 %v6272_v47, %v3003_v26  ;;  %v3005_v63 = vadd.f32 %v2973_v30, %v6196_v21  ;;  %v3006_v41 = vadd.f32 %v2974_v29, %v6205_v31  ;;  %v2982_v31 = vld [vmem:[%s6229_s14 + $0xd0] sm:$0xff]  ;;  %v2984_v20 = vld [vmem:[%s6229_s14 + $0xe0] sm:$0xff] }
 0x5bd   : > { %3064 = vst [vmem:[%s6229_s14 + $0x58] sm:$0xff] %v3032_v15  ;;  %v3007_v46 = vadd.f32 %v2975_v42, %v6208_v5  ;;  %3065 = vst [vmem:[%s6229_s14 + $0x60] sm:$0xff] %v3033_v58  ;;  %v3037_v16 = vmul.f32 %v6272_v47, %v3004_v19  ;;  %v3008_v23 = vadd.f32 %v2976_v45, %v6211_v40  ;;  %v2983_v5 = vld [vmem:[%s6229_s14 + $0xd8] sm:$0xff] }
 0x5be   : > { %3066 = vst [vmem:[%s6229_s14 + $0x68] sm:$0xff] %v3034_v18  ;;  %3067 = vst [vmem:[%s6229_s14 + $0x70] sm:$0xff] %v3035_v33  ;;  %v3009_v57 = vadd.f32 %v2977_v49, %v6217_v38  ;;  %v3010_v21 = vadd.f32 %v2978_v6, %v6220_v28  ;;  %v3038_v60 = vmul.f32 %v6272_v47, %v3005_v63  ;;  %v2985_v38 = vld [vmem:[%s6229_s14 + $0xe8] sm:$0xff]  ;;  %v2986_v28 = vld [vmem:[%s6229_s14 + $0xf0] sm:$0xff] }
 0x5bf   : > { %3068 = vst [vmem:[%s6229_s14 + $0x78] sm:$0xff] %v3036_v8  ;;  %v3039_v37 = vmul.f32 %v6272_v47, %v3006_v41  ;;  %v3040_v61 = vmul.f32 %v6272_v47, %v3007_v46  ;;  %v3011_v40 = vadd.f32 %v2979_v17, %v6223_v4  ;;  %3069 = vst [vmem:[%s6229_s14 + $0x80] sm:$0xff] %v3037_v16 }
 0x5c0   : > { %v3041_v59 = vmul.f32 %v6272_v47, %v3008_v23  ;;  %v3042_v11 = vmul.f32 %v6272_v47, %v3009_v57  ;;  %v3043_v12 = vmul.f32 %v6272_v47, %v3010_v21  ;;  %v3012_v32 = vadd.f32 %v2980_v50, %v6238_v27  ;;  %3070 = vst [vmem:[%s6229_s14 + $0x88] sm:$0xff] %v3038_v60 }
 0x5c1   : > { %3071 = vst [vmem:[%s6229_s14 + $0x90] sm:$0xff] %v3039_v37  ;;  %3072 = vst [vmem:[%s6229_s14 + $0x98] sm:$0xff] %v3040_v61  ;;  %v3044_v4 = vmul.f32 %v6272_v47, %v3011_v40  ;;  %v3013_v52 = vadd.f32 %v2981_v10, %v6241_v7  ;;  %v3014_v43 = vadd.f32 %v2982_v31, %v6244_v62 }
 0x5c2   : > { %v3015_v54 = vadd.f32 %v2983_v5, %v6250_v35  ;;  %3073 = vst [vmem:[%s6229_s14 + $0xa0] sm:$0xff] %v3041_v59  ;;  %3074 = vst [vmem:[%s6229_s14 + $0xa8] sm:$0xff] %v3042_v11  ;;  %v3045_v27 = vmul.f32 %v6272_v47, %v3012_v32  ;;  %v3016_v0 = vadd.f32 %v2984_v20, %v6253_v56 }
 0x5c3   : > { %3075 = vst [vmem:[%s6229_s14 + $0xb0] sm:$0xff] %v3043_v12  ;;  %v3017_v22 = vadd.f32 %v2985_v38, %v6256_v3  ;;  %v3018_v7 = vadd.f32 %v2986_v28, %v6265_v14  ;;  %3076 = vst [vmem:[%s6229_s14 + $0xb8] sm:$0xff] %v3044_v4  ;;  %v3046_v62 = vmul.f32 %v6272_v47, %v3013_v52 }
 0x5c4   : > { %v3047_v35 = vmul.f32 %v6272_v47, %v3014_v43  ;;  %v3048_v1 = vmul.f32 %v6272_v47, %v3015_v54  ;;  %v3019_v24 = vadd.f32 %v2987_v9, %v6268_v48  ;;  %3077 = vst [vmem:[%s6229_s14 + $0xc0] sm:$0xff] %v3045_v27  ;;  %v3049_v56 = vmul.f32 %v6272_v47, %v3016_v0 }
 0x5c5   : > { %v3050_v34 = vmul.f32 %v6272_v47, %v3017_v22  ;;  %v3051_v3 = vmul.f32 %v6272_v47, %v3018_v7  ;;  %3078 = vst [vmem:[%s6229_s14 + $0xc8] sm:$0xff] %v3046_v62 }
 0x5c6   : > { %3079 = vst [vmem:[%s6229_s14 + $0xd0] sm:$0xff] %v3047_v35  ;;  %3080 = vst [vmem:[%s6229_s14 + $0xd8] sm:$0xff] %v3048_v1  ;;  %v3052_v14 = vmul.f32 %v6272_v47, %v3019_v24 }
 0x5c7   : > { %3081 = vst [vmem:[%s6229_s14 + $0xe0] sm:$0xff] %v3049_v56  ;;  %3082 = vst [vmem:[%s6229_s14 + $0xe8] sm:$0xff] %v3050_v34 }
 0x5c8   : > { %3083 = vst [vmem:[%s6229_s14 + $0xf0] sm:$0xff] %v3051_v3  ;;  %3084 = vst [vmem:[%s6229_s14 + $0xf8] sm:$0xff] %v3052_v14 }
 0x5c9 PF: > { %s15_s23 = sadd.s32 1, %s4481_s23   ;;  %s6564_s8 = sld [smem:[#allocation7_spill]] }
 0x5ca   : > { %p12_p9 = scmp.ge.s32.totalorder %s15_s23, 14   ;;  %s6565_s15 = smov %s4453_s16 }
 0x5cb   : > { %s6566_s16 = smov %s4573_s5  ;;  %s6567_s17 = smov %s4469_s20 }
 0x5cc   : > { %s6568_s18 = smov %s4473_s21  ;;  %s6569_s19 = smov %s4477_s22 }
 0x5cd   : > { %s6570_s20 = smov %s6574_s24  ;;  %s6571_s21 = smov %s6578_s25 }
 0x5ce   :  { %14 = sbr.rel (!%p12_p9) target bundleno = 7 (0x7), region = 158 }
 0x5cf   : > { %s6572_s22 = smov %s6564_s8 }

</bundles_post_ra>
